<compile_context>
chip_gen: v5e
topology: v5e:2x2
jax: 0.10.0
libtpu: 0.0.40
codegen_flags: <defaults>
</compile_context>

<pallas_src>
import numpy as np
import jax
import jax.numpy as jnp
from jax.experimental import pallas as pl
from jax.experimental.pallas import tpu as pltpu

LEAK = 0.2
EPS = 1e-5


def _leaky(t):
    return jnp.where(t > 0, t, LEAK * t)


def _sum_lane_blocks(t, ch_width):
    """Sum a (rows, n_blocks*ch_width) slab over its lane blocks -> (rows, ch_width).

    n_blocks must be a power of two; done with log2(n_blocks) aligned lane folds.
    """
    w = t.shape[1]
    while w > ch_width:
        w //= 2
        t = t[:, :w] + t[:, w:]
    return t


def _bn_lane(h, gamma, beta, n_blocks):
    """Training-mode BatchNorm over (rows x n_blocks lane-blocks) per channel.

    One-pass stats (sum, sum of squares); biased variance, clamped at 0.
    """
    ch = h.shape[1] // n_blocks
    cnt = float(h.shape[0] * n_blocks)
    s1 = jnp.sum(_sum_lane_blocks(h, ch), axis=0, keepdims=True)          # (1, ch)
    s2 = jnp.sum(_sum_lane_blocks(h * h, ch), axis=0, keepdims=True)      # (1, ch)
    mean = s1 / cnt
    var = jnp.maximum(s2 / cnt - mean * mean, 0.0)
    scale = gamma * jax.lax.rsqrt(var + EPS)                              # (1, ch)
    shift = beta - mean * scale
    scale_t = jnp.concatenate([scale] * n_blocks, axis=1)                 # (1, n_blocks*ch)
    shift_t = jnp.concatenate([shift] * n_blocks, axis=1)
    return h * scale_t + shift_t


def _disc_kernel(x_ref, g1_ref, b1_ref, gam1_ref, bet1_ref,
                 w2_ref, b2_ref, gam2_ref, bet2_ref,
                 w3_ref, b3_ref,
                 wl1_ref, bl1_ref, wl2_ref, bl2_ref,
                 o_ref):
    xb = x_ref[...].astype(jnp.bfloat16)                                  # (N, 64)

    # ---- Conv1d(1->64, k4, s2, p1): one lane-layout bf16 matmul (N,64)@(64,2048).
    #      Output lane 64*b + ch holds conv position (2b if b<16 else 2(b-16)+1).
    c1 = jnp.dot(xb, g1_ref[...], preferred_element_type=jnp.float32)     # (N, 2048)

    # ---- MaxPool1d(2,2) = max of the two lane halves; then +bias, LeakyReLU, BN1.
    h1 = jnp.maximum(c1[:, :1024], c1[:, 1024:]) + b1_ref[...]            # (N, 1024)
    h1 = _leaky(h1)
    h1 = _bn_lane(h1, gam1_ref[...], bet1_ref[...], n_blocks=16)

    # ---- Conv1d(64->128, k4, s2, p1): one bf16 matmul (N,1024)@(1024,1024).
    #      Output lane 128*bo + co holds conv2 position (2bo if bo<4 else 2(bo-4)+1).
    c2 = jnp.dot(h1.astype(jnp.bfloat16), w2_ref[...],
                 preferred_element_type=jnp.float32)                      # (N, 1024)

    # ---- MaxPool1d(2,2) + bias + LeakyReLU + BN2.
    h2 = jnp.maximum(c2[:, :512], c2[:, 512:]) + b2_ref[...]              # (N, 512)
    h2 = _leaky(h2)
    h2 = _bn_lane(h2, gam2_ref[...], bet2_ref[...], n_blocks=4)

    # ---- Conv1d(128->128, k4, s1, p0) over the 4 remaining positions (== squeeze):
    #      one bf16 matmul (N,512)@(512,128), K exactly 512, no im2col copies.
    feat = jnp.dot(h2.astype(jnp.bfloat16), w3_ref[...],
                   preferred_element_type=jnp.float32) + b3_ref[...]      # (N, 128)

    # ---- Linear(128->24) + Tanh, zero-padded to 128 lanes (lane-dense tail).
    z = jnp.tanh(jnp.dot(feat.astype(jnp.bfloat16), wl1_ref[...],
                         preferred_element_type=jnp.float32) + bl1_ref[...])  # (N, 128)

    # ---- Linear(24->1) + Sigmoid on the VPU/EUP (lane reduce + stable sigmoid).
    logit = jnp.sum(z * wl2_ref[...], axis=-1, keepdims=True) + bl2_ref[...]  # (N, 1)
    e = jnp.exp(-jnp.abs(logit))
    o_ref[...] = jnp.where(logit >= 0, 1.0 / (1.0 + e), e / (1.0 + e))


def pack_params(p):
    """One-time packing: conv weights -> lane-layout block matrices, bf16 MXU casts."""
    f32, mx = np.float32, jnp.bfloat16

    # conv1 (64, 1, 4) -> G1 (64 spatial, 32 pos-blocks x 64 ch); padding folded in
    # by dropping taps that fall outside the signal. Blocks: [even pos | odd pos].
    w1 = np.asarray(p['conv1_w'], f32)
    g1 = np.zeros((64, 32 * 64), f32)
    for b in range(32):
        pos = 2 * b if b < 16 else 2 * (b - 16) + 1
        for k in range(4):
            m = 2 * pos + k - 1                       # raw x index (pad=1)
            if 0 <= m < 64:
                g1[m, 64 * b:64 * (b + 1)] = w1[:, 0, k]

    # conv2 (128, 64, 4) -> W2 (16 pooled-pos x 64 ci, 8 pos-blocks x 128 co).
    w2 = np.asarray(p['conv2_w'], f32)
    W2 = np.zeros((16 * 64, 8 * 128), f32)
    for bo, q in enumerate((0, 2, 4, 6, 1, 3, 5, 7)):  # blocks: [even pos | odd pos]
        for k in range(4):
            j = 2 * q + k - 1                          # pooled1 position (pad=1)
            if 0 <= j < 16:
                W2[64 * j:64 * (j + 1), 128 * bo:128 * (bo + 1)] = w2[:, :, k].T

    # conv3 (128, 128, 4) -> (4 taps x 128 ci, 128 co)
    W3 = np.transpose(np.asarray(p['conv3_w'], f32), (2, 1, 0)).reshape(4 * 128, 128)

    # lane-dense tail: pad the 24-wide linear to 128 output lanes.
    wl1 = np.zeros((128, 128), f32); wl1[:, :24] = np.asarray(p['lin1_w'], f32).T
    bl1 = np.zeros((1, 128), f32);   bl1[0, :24] = np.asarray(p['lin1_b'], f32)
    wl2 = np.zeros((1, 128), f32);   wl2[0, :24] = np.asarray(p['lin2_w'], f32)[0]

    return {
        'g1':   jnp.asarray(g1, mx),
        'b1t':  jnp.asarray(np.tile(np.asarray(p['conv1_b'], f32), 16)[None, :]),  # (1, 1024)
        'gam1': p['bn1_g'].reshape(1, -1), 'bet1': p['bn1_b'].reshape(1, -1),
        'w2':   jnp.asarray(W2, mx),
        'b2t':  jnp.asarray(np.tile(np.asarray(p['conv2_b'], f32), 4)[None, :]),   # (1, 512)
        'gam2': p['bn2_g'].reshape(1, -1), 'bet2': p['bn2_b'].reshape(1, -1),
        'w3':   jnp.asarray(W3, mx),
        'b3':   p['conv3_b'].reshape(1, -1),
        'wl1':  jnp.asarray(wl1, mx),
        'bl1':  jnp.asarray(bl1),
        'wl2':  jnp.asarray(wl2),
        'bl2':  p['lin2_b'].reshape(1, 1),
    }


def discriminator_pallas(x, pp):
    """x: (N, 1, 64) float32 (PyTorch NCL), pp: pack_params output. Returns (N, 1)."""
    n = x.shape[0]
    x2 = x.reshape(n, x.shape[-1])          # drop the unit channel dim (free bitcast)

    args = (x2,
            pp['g1'], pp['b1t'], pp['gam1'], pp['bet1'],
            pp['w2'], pp['b2t'], pp['gam2'], pp['bet2'],
            pp['w3'], pp['b3'],
            pp['wl1'], pp['bl1'], pp['wl2'], pp['bl2'])

    vmem = pl.BlockSpec(memory_space=pltpu.MemorySpace.VMEM)
    return pl.pallas_call(
        _disc_kernel,
        out_shape=jax.ShapeDtypeStruct((n, 1), jnp.float32),
        in_specs=[vmem] * len(args),
        out_specs=vmem,
    )(*args)


def reference_forward(x, p):
    """Plain-JAX f32 mirror of the PyTorch module (training-mode BatchNorm)."""
    def conv1d(h, w, b, stride, pad):
        out = jax.lax.conv_general_dilated(
            h, w, window_strides=(stride,), padding=[(pad, pad)],
            dimension_numbers=('NCH', 'OIH', 'NCH'))
        return out + b[None, :, None]

    def maxpool(h):
        return jax.lax.reduce_window(h, -jnp.inf, jax.lax.max,
                                     (1, 1, 2), (1, 1, 2), 'VALID')

    def bn(h, g, b):
        mean = jnp.mean(h, axis=(0, 2), keepdims=True)
        var = jnp.mean((h - mean) ** 2, axis=(0, 2), keepdims=True)
        return (h - mean) / jnp.sqrt(var + EPS) * g[None, :, None] + b[None, :, None]

    h = conv1d(x, p['conv1_w'], p['conv1_b'], 2, 1)
    h = bn(_leaky(maxpool(h)), p['bn1_g'], p['bn1_b'])
    h = conv1d(h, p['conv2_w'], p['conv2_b'], 2, 1)
    h = bn(_leaky(maxpool(h)), p['bn2_g'], p['bn2_b'])
    h = conv1d(h, p['conv3_w'], p['conv3_b'], 1, 0)
    h = jnp.squeeze(h)                                               # (N, 128)
    z = jnp.tanh(h @ p['lin1_w'].T + p['lin1_b'])
    return jax.nn.sigmoid(z @ p['lin2_w'].T + p['lin2_b'])


def make_params(key):
    keys = jax.random.split(key, 16)

    def rnd(k, shape, scale=0.1):
        return scale * jax.random.normal(k, shape, dtype=jnp.float32)

    return {
        'conv1_w': rnd(keys[0], (64, 1, 4)),    'conv1_b': rnd(keys[1], (64,)),
        'bn1_g': 1.0 + rnd(keys[2], (64,)),     'bn1_b': rnd(keys[3], (64,)),
        'conv2_w': rnd(keys[4], (128, 64, 4)),  'conv2_b': rnd(keys[5], (128,)),
        'bn2_g': 1.0 + rnd(keys[6], (128,)),    'bn2_b': rnd(keys[7], (128,)),
        'conv3_w': rnd(keys[8], (128, 128, 4)), 'conv3_b': rnd(keys[9], (128,)),
        'lin1_w': rnd(keys[10], (24, 128)),     'lin1_b': rnd(keys[11], (24,)),
        'lin2_w': rnd(keys[12], (1, 24)),       'lin2_b': rnd(keys[13], (1,)),
    }


if __name__ == "__main__":
    key = jax.random.PRNGKey(0)
    params = make_params(key)
    # Input length must be 64 so the trunk reduces the spatial dim to 1 (as the
    # Linear(128, ...) after squeeze() requires).
    x = jax.random.normal(jax.random.split(key, 16)[14], (2, 1, 64), dtype=jnp.float32)

    packed = pack_params(params)                       # one-time weight packing
    disc = jax.jit(discriminator_pallas)

    out = jax.block_until_ready(disc(x, packed))
    ref = jax.block_until_ready(reference_forward(x, params))

    assert out.shape == (2, 1), out.shape
    assert bool(jnp.all(jnp.isfinite(out)))
    # bf16 MXU inputs (f32 accumulation) vs f32 reference -> relaxed tolerance.
    assert float(jnp.max(jnp.abs(out - ref))) < 1e-2, (out, ref)
    print("KERNEL_OK")
</pallas_src>

<mosaic_0001>
module attributes {stable_mosaic.version = 11 : i64} {
  func.func @_disc_kernel(%arg0: memref<2x64xf32, #tpu.memory_space<vmem>>, %arg1: memref<64x2048xbf16, #tpu.memory_space<vmem>>, %arg2: memref<1x1024xf32, #tpu.memory_space<vmem>>, %arg3: memref<1x64xf32, #tpu.memory_space<vmem>>, %arg4: memref<1x64xf32, #tpu.memory_space<vmem>>, %arg5: memref<1024x1024xbf16, #tpu.memory_space<vmem>>, %arg6: memref<1x512xf32, #tpu.memory_space<vmem>>, %arg7: memref<1x128xf32, #tpu.memory_space<vmem>>, %arg8: memref<1x128xf32, #tpu.memory_space<vmem>>, %arg9: memref<512x128xbf16, #tpu.memory_space<vmem>>, %arg10: memref<1x128xf32, #tpu.memory_space<vmem>>, %arg11: memref<128x128xbf16, #tpu.memory_space<vmem>>, %arg12: memref<1x128xf32, #tpu.memory_space<vmem>>, %arg13: memref<1x128xf32, #tpu.memory_space<vmem>>, %arg14: memref<1x1xf32, #tpu.memory_space<vmem>>, %arg15: memref<2x1xf32, #tpu.memory_space<vmem>>) attributes {dimension_semantics = [], scalar_prefetch = 0 : i64, scratch_operands = 0 : i64, tpu.core_type = #tpu.core_type<tc>} {
    %c0 = arith.constant 0 : index
    %c0_0 = arith.constant 0 : index
    %0 = vector.load %arg0[%c0, %c0_0] : memref<2x64xf32, #tpu.memory_space<vmem>>, vector<2x64xf32>
    %1 = arith.truncf %0 : vector<2x64xf32> to vector<2x64xbf16>
    %c0_1 = arith.constant 0 : index
    %c0_2 = arith.constant 0 : index
    %2 = vector.load %arg1[%c0_1, %c0_2] : memref<64x2048xbf16, #tpu.memory_space<vmem>>, vector<64x2048xbf16>
    %cst = arith.constant dense<0.000000e+00> : vector<2x2048xf32>
    %3 = tpu.matmul %1, %2, %cst {dimension_numbers = #tpu.dot_dimension_numbers<[1], [0], [0], [1], [0, 0, 1, 1], [], []>} : vector<2x64xbf16>, vector<64x2048xbf16>, vector<2x2048xf32> -> vector<2x2048xf32>
    %4 = vector.extract_strided_slice %3 {offsets = [0, 0], sizes = [2, 1024], strides = [1, 1]} : vector<2x2048xf32> to vector<2x1024xf32>
    %5 = vector.extract_strided_slice %3 {offsets = [0, 1024], sizes = [2, 1024], strides = [1, 1]} : vector<2x2048xf32> to vector<2x1024xf32>
    %6 = arith.maximumf %4, %5 : vector<2x1024xf32>
    %c0_3 = arith.constant 0 : index
    %c0_4 = arith.constant 0 : index
    %7 = vector.load %arg2[%c0_3, %c0_4] : memref<1x1024xf32, #tpu.memory_space<vmem>>, vector<1x1024xf32>
    %8 = vector.broadcast %7 : vector<1x1024xf32> to vector<2x1024xf32>
    %9 = arith.addf %6, %8 : vector<2x1024xf32>
    %cst_5 = arith.constant 0.000000e+00 : f32
    %10 = vector.broadcast %cst_5 : f32 to vector<2x1024xf32>
    %11 = arith.cmpf ogt, %9, %10 : vector<2x1024xf32>
    %cst_6 = arith.constant 2.000000e-01 : f32
    %12 = vector.broadcast %cst_6 : f32 to vector<2x1024xf32>
    %13 = arith.mulf %12, %9 : vector<2x1024xf32>
    %14 = arith.select %11, %9, %13 : vector<2x1024xi1>, vector<2x1024xf32>
    %c0_7 = arith.constant 0 : index
    %c0_8 = arith.constant 0 : index
    %15 = vector.load %arg3[%c0_7, %c0_8] : memref<1x64xf32, #tpu.memory_space<vmem>>, vector<1x64xf32>
    %c0_9 = arith.constant 0 : index
    %c0_10 = arith.constant 0 : index
    %16 = vector.load %arg4[%c0_9, %c0_10] : memref<1x64xf32, #tpu.memory_space<vmem>>, vector<1x64xf32>
    %17 = vector.extract_strided_slice %14 {offsets = [0, 0], sizes = [2, 512], strides = [1, 1]} : vector<2x1024xf32> to vector<2x512xf32>
    %18 = vector.extract_strided_slice %14 {offsets = [0, 512], sizes = [2, 512], strides = [1, 1]} : vector<2x1024xf32> to vector<2x512xf32>
    %19 = arith.addf %17, %18 : vector<2x512xf32>
    %20 = vector.extract_strided_slice %19 {offsets = [0, 0], sizes = [2, 256], strides = [1, 1]} : vector<2x512xf32> to vector<2x256xf32>
    %21 = vector.extract_strided_slice %19 {offsets = [0, 256], sizes = [2, 256], strides = [1, 1]} : vector<2x512xf32> to vector<2x256xf32>
    %22 = arith.addf %20, %21 : vector<2x256xf32>
    %23 = vector.extract_strided_slice %22 {offsets = [0, 0], sizes = [2, 128], strides = [1, 1]} : vector<2x256xf32> to vector<2x128xf32>
    %24 = vector.extract_strided_slice %22 {offsets = [0, 128], sizes = [2, 128], strides = [1, 1]} : vector<2x256xf32> to vector<2x128xf32>
    %25 = arith.addf %23, %24 : vector<2x128xf32>
    %26 = vector.extract_strided_slice %25 {offsets = [0, 0], sizes = [2, 64], strides = [1, 1]} : vector<2x128xf32> to vector<2x64xf32>
    %27 = vector.extract_strided_slice %25 {offsets = [0, 64], sizes = [2, 64], strides = [1, 1]} : vector<2x128xf32> to vector<2x64xf32>
    %28 = arith.addf %26, %27 : vector<2x64xf32>
    %cst_11 = arith.constant dense<0.000000e+00> : vector<64xf32>
    %29 = vector.multi_reduction <add>, %28, %cst_11 [0] : vector<2x64xf32> to vector<64xf32>
    %30 = vector.shape_cast %29 : vector<64xf32> to vector<1x64xf32>
    %31 = arith.mulf %14, %14 : vector<2x1024xf32>
    %32 = vector.extract_strided_slice %31 {offsets = [0, 0], sizes = [2, 512], strides = [1, 1]} : vector<2x1024xf32> to vector<2x512xf32>
    %33 = vector.extract_strided_slice %31 {offsets = [0, 512], sizes = [2, 512], strides = [1, 1]} : vector<2x1024xf32> to vector<2x512xf32>
    %34 = arith.addf %32, %33 : vector<2x512xf32>
    %35 = vector.extract_strided_slice %34 {offsets = [0, 0], sizes = [2, 256], strides = [1, 1]} : vector<2x512xf32> to vector<2x256xf32>
    %36 = vector.extract_strided_slice %34 {offsets = [0, 256], sizes = [2, 256], strides = [1, 1]} : vector<2x512xf32> to vector<2x256xf32>
    %37 = arith.addf %35, %36 : vector<2x256xf32>
    %38 = vector.extract_strided_slice %37 {offsets = [0, 0], sizes = [2, 128], strides = [1, 1]} : vector<2x256xf32> to vector<2x128xf32>
    %39 = vector.extract_strided_slice %37 {offsets = [0, 128], sizes = [2, 128], strides = [1, 1]} : vector<2x256xf32> to vector<2x128xf32>
    %40 = arith.addf %38, %39 : vector<2x128xf32>
    %41 = vector.extract_strided_slice %40 {offsets = [0, 0], sizes = [2, 64], strides = [1, 1]} : vector<2x128xf32> to vector<2x64xf32>
    %42 = vector.extract_strided_slice %40 {offsets = [0, 64], sizes = [2, 64], strides = [1, 1]} : vector<2x128xf32> to vector<2x64xf32>
    %43 = arith.addf %41, %42 : vector<2x64xf32>
    %cst_12 = arith.constant dense<0.000000e+00> : vector<64xf32>
    %44 = vector.multi_reduction <add>, %43, %cst_12 [0] : vector<2x64xf32> to vector<64xf32>
    %45 = vector.shape_cast %44 : vector<64xf32> to vector<1x64xf32>
    %cst_13 = arith.constant 3.200000e+01 : f32
    %46 = vector.broadcast %cst_13 : f32 to vector<1x64xf32>
    %47 = arith.divf %30, %46 : vector<1x64xf32>
    %cst_14 = arith.constant 3.200000e+01 : f32
    %48 = vector.broadcast %cst_14 : f32 to vector<1x64xf32>
    %49 = arith.divf %45, %48 : vector<1x64xf32>
    %50 = arith.mulf %47, %47 : vector<1x64xf32>
    %51 = arith.subf %49, %50 : vector<1x64xf32>
    %cst_15 = arith.constant 0.000000e+00 : f32
    %52 = vector.broadcast %cst_15 : f32 to vector<1x64xf32>
    %53 = arith.maximumf %51, %52 : vector<1x64xf32>
    %cst_16 = arith.constant 9.99999974E-6 : f32
    %54 = vector.broadcast %cst_16 : f32 to vector<1x64xf32>
    %55 = arith.addf %53, %54 : vector<1x64xf32>
    %56 = math.rsqrt %55 : vector<1x64xf32>
    %57 = arith.mulf %15, %56 : vector<1x64xf32>
    %58 = arith.mulf %47, %57 : vector<1x64xf32>
    %59 = arith.subf %16, %58 : vector<1x64xf32>
    %60 = tpu.concatenate %57, %57, %57, %57, %57, %57, %57, %57, %57, %57, %57, %57, %57, %57, %57, %57 in 1 : vector<1x64xf32>, vector<1x64xf32>, vector<1x64xf32>, vector<1x64xf32>, vector<1x64xf32>, vector<1x64xf32>, vector<1x64xf32>, vector<1x64xf32>, vector<1x64xf32>, vector<1x64xf32>, vector<1x64xf32>, vector<1x64xf32>, vector<1x64xf32>, vector<1x64xf32>, vector<1x64xf32>, vector<1x64xf32> -> vector<1x1024xf32>
    %61 = tpu.concatenate %59, %59, %59, %59, %59, %59, %59, %59, %59, %59, %59, %59, %59, %59, %59, %59 in 1 : vector<1x64xf32>, vector<1x64xf32>, vector<1x64xf32>, vector<1x64xf32>, vector<1x64xf32>, vector<1x64xf32>, vector<1x64xf32>, vector<1x64xf32>, vector<1x64xf32>, vector<1x64xf32>, vector<1x64xf32>, vector<1x64xf32>, vector<1x64xf32>, vector<1x64xf32>, vector<1x64xf32>, vector<1x64xf32> -> vector<1x1024xf32>
    %62 = vector.broadcast %60 : vector<1x1024xf32> to vector<2x1024xf32>
    %63 = arith.mulf %14, %62 : vector<2x1024xf32>
    %64 = vector.broadcast %61 : vector<1x1024xf32> to vector<2x1024xf32>
    %65 = arith.addf %63, %64 : vector<2x1024xf32>
    %66 = arith.truncf %65 : vector<2x1024xf32> to vector<2x1024xbf16>
    %c0_17 = arith.constant 0 : index
    %c0_18 = arith.constant 0 : index
    %67 = vector.load %arg5[%c0_17, %c0_18] : memref<1024x1024xbf16, #tpu.memory_space<vmem>>, vector<1024x1024xbf16>
    %cst_19 = arith.constant dense<0.000000e+00> : vector<2x1024xf32>
    %68 = tpu.matmul %66, %67, %cst_19 {dimension_numbers = #tpu.dot_dimension_numbers<[1], [0], [0], [1], [0, 0, 1, 1], [], []>} : vector<2x1024xbf16>, vector<1024x1024xbf16>, vector<2x1024xf32> -> vector<2x1024xf32>
    %69 = vector.extract_strided_slice %68 {offsets = [0, 0], sizes = [2, 512], strides = [1, 1]} : vector<2x1024xf32> to vector<2x512xf32>
    %70 = vector.extract_strided_slice %68 {offsets = [0, 512], sizes = [2, 512], strides = [1, 1]} : vector<2x1024xf32> to vector<2x512xf32>
    %71 = arith.maximumf %69, %70 : vector<2x512xf32>
    %c0_20 = arith.constant 0 : index
    %c0_21 = arith.constant 0 : index
    %72 = vector.load %arg6[%c0_20, %c0_21] : memref<1x512xf32, #tpu.memory_space<vmem>>, vector<1x512xf32>
    %73 = vector.broadcast %72 : vector<1x512xf32> to vector<2x512xf32>
    %74 = arith.addf %71, %73 : vector<2x512xf32>
    %cst_22 = arith.constant 0.000000e+00 : f32
    %75 = vector.broadcast %cst_22 : f32 to vector<2x512xf32>
    %76 = arith.cmpf ogt, %74, %75 : vector<2x512xf32>
    %cst_23 = arith.constant 2.000000e-01 : f32
    %77 = vector.broadcast %cst_23 : f32 to vector<2x512xf32>
    %78 = arith.mulf %77, %74 : vector<2x512xf32>
    %79 = arith.select %76, %74, %78 : vector<2x512xi1>, vector<2x512xf32>
    %c0_24 = arith.constant 0 : index
    %c0_25 = arith.constant 0 : index
    %80 = vector.load %arg7[%c0_24, %c0_25] : memref<1x128xf32, #tpu.memory_space<vmem>>, vector<1x128xf32>
    %c0_26 = arith.constant 0 : index
    %c0_27 = arith.constant 0 : index
    %81 = vector.load %arg8[%c0_26, %c0_27] : memref<1x128xf32, #tpu.memory_space<vmem>>, vector<1x128xf32>
    %82 = vector.extract_strided_slice %79 {offsets = [0, 0], sizes = [2, 256], strides = [1, 1]} : vector<2x512xf32> to vector<2x256xf32>
    %83 = vector.extract_strided_slice %79 {offsets = [0, 256], sizes = [2, 256], strides = [1, 1]} : vector<2x512xf32> to vector<2x256xf32>
    %84 = arith.addf %82, %83 : vector<2x256xf32>
    %85 = vector.extract_strided_slice %84 {offsets = [0, 0], sizes = [2, 128], strides = [1, 1]} : vector<2x256xf32> to vector<2x128xf32>
    %86 = vector.extract_strided_slice %84 {offsets = [0, 128], sizes = [2, 128], strides = [1, 1]} : vector<2x256xf32> to vector<2x128xf32>
    %87 = arith.addf %85, %86 : vector<2x128xf32>
    %cst_28 = arith.constant dense<0.000000e+00> : vector<128xf32>
    %88 = vector.multi_reduction <add>, %87, %cst_28 [0] : vector<2x128xf32> to vector<128xf32>
    %89 = vector.shape_cast %88 : vector<128xf32> to vector<1x128xf32>
    %90 = arith.mulf %79, %79 : vector<2x512xf32>
    %91 = vector.extract_strided_slice %90 {offsets = [0, 0], sizes = [2, 256], strides = [1, 1]} : vector<2x512xf32> to vector<2x256xf32>
    %92 = vector.extract_strided_slice %90 {offsets = [0, 256], sizes = [2, 256], strides = [1, 1]} : vector<2x512xf32> to vector<2x256xf32>
    %93 = arith.addf %91, %92 : vector<2x256xf32>
    %94 = vector.extract_strided_slice %93 {offsets = [0, 0], sizes = [2, 128], strides = [1, 1]} : vector<2x256xf32> to vector<2x128xf32>
    %95 = vector.extract_strided_slice %93 {offsets = [0, 128], sizes = [2, 128], strides = [1, 1]} : vector<2x256xf32> to vector<2x128xf32>
    %96 = arith.addf %94, %95 : vector<2x128xf32>
    %cst_29 = arith.constant dense<0.000000e+00> : vector<128xf32>
    %97 = vector.multi_reduction <add>, %96, %cst_29 [0] : vector<2x128xf32> to vector<128xf32>
    %98 = vector.shape_cast %97 : vector<128xf32> to vector<1x128xf32>
    %cst_30 = arith.constant 8.000000e+00 : f32
    %99 = vector.broadcast %cst_30 : f32 to vector<1x128xf32>
    %100 = arith.divf %89, %99 : vector<1x128xf32>
    %cst_31 = arith.constant 8.000000e+00 : f32
    %101 = vector.broadcast %cst_31 : f32 to vector<1x128xf32>
    %102 = arith.divf %98, %101 : vector<1x128xf32>
    %103 = arith.mulf %100, %100 : vector<1x128xf32>
    %104 = arith.subf %102, %103 : vector<1x128xf32>
    %cst_32 = arith.constant 0.000000e+00 : f32
    %105 = vector.broadcast %cst_32 : f32 to vector<1x128xf32>
    %106 = arith.maximumf %104, %105 : vector<1x128xf32>
    %cst_33 = arith.constant 9.99999974E-6 : f32
    %107 = vector.broadcast %cst_33 : f32 to vector<1x128xf32>
    %108 = arith.addf %106, %107 : vector<1x128xf32>
    %109 = math.rsqrt %108 : vector<1x128xf32>
    %110 = arith.mulf %80, %109 : vector<1x128xf32>
    %111 = arith.mulf %100, %110 : vector<1x128xf32>
    %112 = arith.subf %81, %111 : vector<1x128xf32>
    %113 = tpu.concatenate %110, %110, %110, %110 in 1 : vector<1x128xf32>, vector<1x128xf32>, vector<1x128xf32>, vector<1x128xf32> -> vector<1x512xf32>
    %114 = tpu.concatenate %112, %112, %112, %112 in 1 : vector<1x128xf32>, vector<1x128xf32>, vector<1x128xf32>, vector<1x128xf32> -> vector<1x512xf32>
    %115 = vector.broadcast %113 : vector<1x512xf32> to vector<2x512xf32>
    %116 = arith.mulf %79, %115 : vector<2x512xf32>
    %117 = vector.broadcast %114 : vector<1x512xf32> to vector<2x512xf32>
    %118 = arith.addf %116, %117 : vector<2x512xf32>
    %119 = arith.truncf %118 : vector<2x512xf32> to vector<2x512xbf16>
    %c0_34 = arith.constant 0 : index
    %c0_35 = arith.constant 0 : index
    %120 = vector.load %arg9[%c0_34, %c0_35] : memref<512x128xbf16, #tpu.memory_space<vmem>>, vector<512x128xbf16>
    %cst_36 = arith.constant dense<0.000000e+00> : vector<2x128xf32>
    %121 = tpu.matmul %119, %120, %cst_36 {dimension_numbers = #tpu.dot_dimension_numbers<[1], [0], [0], [1], [0, 0, 1, 1], [], []>} : vector<2x512xbf16>, vector<512x128xbf16>, vector<2x128xf32> -> vector<2x128xf32>
    %c0_37 = arith.constant 0 : index
    %c0_38 = arith.constant 0 : index
    %122 = vector.load %arg10[%c0_37, %c0_38] : memref<1x128xf32, #tpu.memory_space<vmem>>, vector<1x128xf32>
    %123 = vector.broadcast %122 : vector<1x128xf32> to vector<2x128xf32>
    %124 = arith.addf %121, %123 : vector<2x128xf32>
    %125 = arith.truncf %124 : vector<2x128xf32> to vector<2x128xbf16>
    %c0_39 = arith.constant 0 : index
    %c0_40 = arith.constant 0 : index
    %126 = vector.load %arg11[%c0_39, %c0_40] : memref<128x128xbf16, #tpu.memory_space<vmem>>, vector<128x128xbf16>
    %cst_41 = arith.constant dense<0.000000e+00> : vector<2x128xf32>
    %127 = tpu.matmul %125, %126, %cst_41 {dimension_numbers = #tpu.dot_dimension_numbers<[1], [0], [0], [1], [0, 0, 1, 1], [], []>} : vector<2x128xbf16>, vector<128x128xbf16>, vector<2x128xf32> -> vector<2x128xf32>
    %c0_42 = arith.constant 0 : index
    %c0_43 = arith.constant 0 : index
    %128 = vector.load %arg12[%c0_42, %c0_43] : memref<1x128xf32, #tpu.memory_space<vmem>>, vector<1x128xf32>
    %129 = vector.broadcast %128 : vector<1x128xf32> to vector<2x128xf32>
    %130 = arith.addf %127, %129 : vector<2x128xf32>
    %131 = math.tanh %130 : vector<2x128xf32>
    %c0_44 = arith.constant 0 : index
    %c0_45 = arith.constant 0 : index
    %132 = vector.load %arg13[%c0_44, %c0_45] : memref<1x128xf32, #tpu.memory_space<vmem>>, vector<1x128xf32>
    %133 = vector.broadcast %132 : vector<1x128xf32> to vector<2x128xf32>
    %134 = arith.mulf %131, %133 : vector<2x128xf32>
    %cst_46 = arith.constant dense<0.000000e+00> : vector<2xf32>
    %135 = vector.multi_reduction <add>, %134, %cst_46 [1] : vector<2x128xf32> to vector<2xf32>
    %136 = vector.shape_cast %135 : vector<2xf32> to vector<2x1xf32>
    %c0_47 = arith.constant 0 : index
    %c0_48 = arith.constant 0 : index
    %137 = vector.load %arg14[%c0_47, %c0_48] : memref<1x1xf32, #tpu.memory_space<vmem>>, vector<1x1xf32>
    %138 = vector.broadcast %137 : vector<1x1xf32> to vector<2x1xf32>
    %139 = arith.addf %136, %138 : vector<2x1xf32>
    %140 = math.absf %139 : vector<2x1xf32>
    %cst_49 = arith.constant 0.000000e+00 : f32
    %141 = vector.broadcast %cst_49 : f32 to vector<2x1xf32>
    %142 = arith.subf %141, %140 : vector<2x1xf32>
    %143 = math.exp %142 : vector<2x1xf32>
    %cst_50 = arith.constant 0.000000e+00 : f32
    %144 = vector.broadcast %cst_50 : f32 to vector<2x1xf32>
    %145 = arith.cmpf oge, %139, %144 : vector<2x1xf32>
    %cst_51 = arith.constant 1.000000e+00 : f32
    %146 = vector.broadcast %cst_51 : f32 to vector<2x1xf32>
    %147 = arith.addf %146, %143 : vector<2x1xf32>
    %cst_52 = arith.constant 1.000000e+00 : f32
    %148 = vector.broadcast %cst_52 : f32 to vector<2x1xf32>
    %149 = arith.divf %148, %147 : vector<2x1xf32>
    %cst_53 = arith.constant 1.000000e+00 : f32
    %150 = vector.broadcast %cst_53 : f32 to vector<2x1xf32>
    %151 = arith.addf %150, %143 : vector<2x1xf32>
    %152 = arith.divf %143, %151 : vector<2x1xf32>
    %153 = arith.select %145, %149, %152 : vector<2x1xi1>, vector<2x1xf32>
    %c0_54 = arith.constant 0 : index
    %c0_55 = arith.constant 0 : index
    %154 = vector.load %arg15[%c0_54, %c0_55] : memref<2x1xf32, #tpu.memory_space<vmem>>, vector<2x1xf32>
    tpu.vector_store %arg15[%c0_54, %c0_55], %153 {strides = array<i32>} : memref<2x1xf32, #tpu.memory_space<vmem>>, vector<2x1xf32>,
    return
  }
}

</mosaic_0001>

<bundles_post_ra>
// kernel: discriminator_pallas.1
= control target key start
LH: loop header
LB: loop body
LE: loop exit
PB: predicated region body
PF: predicated region fallthrough
CT: control target
= control target key end

     0   :  { %s9397_s0 = inlined_call_operand.hbm [shape: f32[2,64], index: 0, kind: input, shape index: {}]   ;;  %s9398_s1 = inlined_call_operand.hbm [shape: bf16[64,2048], index: 1, kind: input, shape index: {}]   ;;  %s9399_s2 = inlined_call_operand.hbm [shape: f32[1,1024], index: 2, kind: input, shape index: {}]   ;;  %s9400_s3 = inlined_call_operand.hbm [shape: f32[1,64], index: 3, kind: input, shape index: {}]   ;;  %s9401_s4 = inlined_call_operand.hbm [shape: f32[1,64], index: 4, kind: input, shape index: {}]   ;;  %s9402_s5 = inlined_call_operand.hbm [shape: bf16[1024,1024], index: 5, kind: input, shape index: {}]   ;;  %s9403_s6 = inlined_call_operand.hbm [shape: f32[1,512], index: 6, kind: input, shape index: {}]   ;;  %s9404_s7 = inlined_call_operand.hbm [shape: f32[1,128], index: 7, kind: input, shape index: {}]   ;;  %s9405_s8 = inlined_call_operand.hbm [shape: f32[1,128], index: 8, kind: input, shape index: {}]   ;;  %s9406_s9 = inlined_call_operand.hbm [shape: bf16[512,128], index: 9, kind: input, shape index: {}]   ;;  %s9407_s10 = inlined_call_operand.hbm [shape: f32[1,128], index: 10, kind: input, shape index: {}]   ;;  %s9408_s11 = inlined_call_operand.hbm [shape: bf16[128,128], index: 11, kind: input, shape index: {}]   ;;  %s9409_s12 = inlined_call_operand.hbm [shape: f32[1,128], index: 12, kind: input, shape index: {}]   ;;  %s9410_s13 = inlined_call_operand.hbm [shape: f32[1,128], index: 13, kind: input, shape index: {}]   ;;  %s9411_s14 = inlined_call_operand.<no memory space> [shape: f32[1,1], index: 14, kind: input, shape index: {}]   ;;  %s9412_s15 = inlined_call_operand.vmem [shape: f32[2,1], index: 15, kind: output, shape index: {}]  }
   0x1   :  { %v20_v0 = vstv %s9411_s14 }
   0x2   :  { %21 = vst [vmem:[#allocation2] sm:$0x1] %v20_v0 }
   0x3   :  { %22 = vsyncpa [#allocation4], 0 }
   0x4   :  { %23 = vsyncpa [#allocation6], 0 }
   0x5   :  { %24 = vsyncpa [#allocation9], 0 }
   0x6   :  { %25 = vsyncpa [#allocation12], 0 }
   0x7   :  { %26 = vsyncpa [#allocation15], 0 }
   0x8   :  { %27 = vsyncpa [#allocation18], 0 }
   0x9   :  { %28 = vsyncpa [#allocation21], 0  ;;  %s45_s22 = sshll.u32 %s9398_s1, 4  ;;  %s46_s22 = int_to_ptr.hbm [resolvable:$true] %s45_s22 }
   0xa   :  { %29 = vsyncpa [#allocation24], 0  ;;  %s8953_s23 = smov [#allocation5]   ;;  %s70_s14 = sshll.u32 %s9400_s3, 4  ;;  %s71_s14 = int_to_ptr.hbm [resolvable:$true] %s70_s14 }
   0xb   :  { %s47_s24 = sshll.u32 %s8953_s23, 4  ;;  %s8954_s27 = smov 1024   ;;  %s48_s24 = int_to_ptr.vmem [resolvable:$true] %s47_s24 }
   0xc   :  { %s8955_s28 = smov 64   ;;  %s8956_s29 = smov [#allocation8]  }
   0xd   :  { %53 = dma.hbm_to_vmem [thread:$0]  %s46_s22, 8192, %s48_s24, [#allocation6], %s8954_s27, %s8954_s27, %s8955_s28  }
   0xe   :  { %s72_s30 = sshll.u32 %s8956_s29, 4  ;;  %s91_s1 = sshll.u32 %s9402_s5, 4  ;;  %s73_s30 = int_to_ptr.vmem [resolvable:$true] %s72_s30  ;;  %s92_s1 = int_to_ptr.hbm [resolvable:$true] %s91_s1 }
   0xf   :  { %75 = dma.hbm_to_vmem [thread:$0]  %s71_s14, 16, %s73_s30, [#allocation9]  }
  0x10   :  { %s8957_s18 = smov [#allocation11]   ;;  %s116_s3 = sshll.u32 %s9404_s7, 4  ;;  %s117_s3 = int_to_ptr.hbm [resolvable:$true] %s116_s3 }
  0x11   :  { %s93_s19 = sshll.u32 %s8957_s18, 4  ;;  %s8958_s23 = smov 512   ;;  %s94_s19 = int_to_ptr.vmem [resolvable:$true] %s93_s19 }
  0x12   :  { %s8959_s25 = smov 32   ;;  %s8960_s22 = smov [#allocation14]  }
  0x13   :  { %99 = dma.hbm_to_vmem [thread:$0]  %s92_s1, 65536, %s94_s19, [#allocation12], %s8958_s23, %s8958_s23, %s8959_s25  }
  0x14   :  { %s118_s24 = sshll.u32 %s8960_s22, 4  ;;  %s137_s5 = sshll.u32 %s9406_s9, 4  ;;  %s119_s24 = int_to_ptr.vmem [resolvable:$true] %s118_s24  ;;  %s138_s5 = int_to_ptr.hbm [resolvable:$true] %s137_s5 }
  0x15   :  { %121 = dma.hbm_to_vmem [thread:$0]  %s117_s3, 16, %s119_s24, [#allocation15]  }
  0x16   :  { %s8961_s14 = smov [#allocation17]   ;;  %s161_s17 = sshll.u32 %s9408_s11, 4  ;;  %s162_s17 = int_to_ptr.hbm [resolvable:$true] %s161_s17 }
  0x17   :  { %s139_s29 = sshll.u32 %s8961_s14, 4  ;;  %s8962_s7 = smov 4   ;;  %s140_s29 = int_to_ptr.vmem [resolvable:$true] %s139_s29 }
  0x18   :  { %145 = dma.hbm_to_vmem [thread:$0]  %s138_s5, 4096, %s140_s29, [#allocation18], %s8955_s28, %s8955_s28, %s8962_s7  }
  0x19   :  { %s35_s19 = sshll.u32 %s9397_s0, 4  ;;  %s8963_s9 = smov [#allocation20]   ;;  %s36_s19 = int_to_ptr.hbm [resolvable:$true] %s35_s19 }
  0x1a   :  { %s163_s20 = sshll.u32 %s8963_s9, 4  ;;  %s8964_s21 = smov [#allocation3]   ;;  %s164_s20 = int_to_ptr.vmem [resolvable:$true] %s163_s20 }
  0x1b   :  { %169 = dma.hbm_to_vmem [thread:$0]  %s162_s17, 1024, %s164_s20, [#allocation21], %s8955_s28, %s8955_s28, %s8962_s7  }
  0x1c   :  { %s37_s3 = sshll.u32 %s8964_s21, 4  ;;  %s59_s25 = sshll.u32 %s9399_s2, 4  ;;  %s38_s3 = int_to_ptr.vmem [resolvable:$true] %s37_s3  ;;  %s60_s25 = int_to_ptr.hbm [resolvable:$true] %s59_s25 }
  0x1d   :  { %40 = dma.hbm_to_vmem [thread:$0]  %s36_s19, 32, %s38_s3, [#allocation4]  }
  0x1e   :  { %s81_s0 = sshll.u32 %s9401_s4, 4  ;;  %s8965_s26 = smov [#allocation7]   ;;  %s82_s0 = int_to_ptr.hbm [resolvable:$true] %s81_s0 }
  0x1f   :  { %s61_s27 = sshll.u32 %s8965_s26, 4  ;;  %s8966_s5 = smov [#allocation10]   ;;  %s62_s27 = int_to_ptr.vmem [resolvable:$true] %s61_s27 }
  0x20   :  { %64 = dma.hbm_to_vmem [thread:$0]  %s60_s25, 128, %s62_s27, [#allocation6]  }
  0x21   :  { %s83_s14 = sshll.u32 %s8966_s5, 4  ;;  %s105_s16 = sshll.u32 %s9403_s6, 4  ;;  %s84_s14 = int_to_ptr.vmem [resolvable:$true] %s83_s14  ;;  %s106_s16 = int_to_ptr.hbm [resolvable:$true] %s105_s16 }
  0x22   :  { %86 = dma.hbm_to_vmem [thread:$0]  %s82_s0, 16, %s84_s14, [#allocation9]  }
  0x23   :  { %s127_s7 = sshll.u32 %s9405_s8, 4  ;;  %s8967_s1 = smov [#allocation13]   ;;  %s128_s7 = int_to_ptr.hbm [resolvable:$true] %s127_s7 }
  0x24   :  { %s107_s4 = sshll.u32 %s8967_s1, 4  ;;  %s8968_s18 = smov [#allocation16]   ;;  %s108_s4 = int_to_ptr.vmem [resolvable:$true] %s107_s4 }
  0x25   :  { %110 = dma.hbm_to_vmem [thread:$0]  %s106_s16, 64, %s108_s4, [#allocation12]  }
  0x26   :  { %s129_s19 = sshll.u32 %s8968_s18, 4  ;;  %s151_s21 = sshll.u32 %s9407_s10, 4  ;;  %s130_s19 = int_to_ptr.vmem [resolvable:$true] %s129_s19  ;;  %s152_s21 = int_to_ptr.hbm [resolvable:$true] %s151_s21 }
  0x27   :  { %132 = dma.hbm_to_vmem [thread:$0]  %s128_s7, 16, %s130_s19, [#allocation15]  }
  0x28   :  { %s175_s11 = sshll.u32 %s9409_s12, 4  ;;  %s8969_s23 = smov [#allocation19]   ;;  %s176_s11 = int_to_ptr.hbm [resolvable:$true] %s175_s11 }
  0x29   :  { %s153_s8 = sshll.u32 %s8969_s23, 4  ;;  %s8970_s25 = smov [#allocation22]   ;;  %s154_s8 = int_to_ptr.vmem [resolvable:$true] %s153_s8 }
  0x2a   :  { %156 = dma.hbm_to_vmem [thread:$0]  %s152_s21, 16, %s154_s8, [#allocation18]  }
  0x2b   :  { %s177_s22 = sshll.u32 %s8970_s25, 4  ;;  %s186_s26 = sshll.u32 %s9410_s13, 4  ;;  %s178_s22 = int_to_ptr.vmem [resolvable:$true] %s177_s22  ;;  %s187_s26 = int_to_ptr.hbm [resolvable:$true] %s186_s26 }
  0x2c   :  { %180 = dma.hbm_to_vmem [thread:$0]  %s176_s11, 16, %s178_s22, [#allocation21]  }
  0x2d   :  { %s8971_s10 = smov [#allocation23]  }
  0x2e   :  { %s188_s27 = sshll.u32 %s8971_s10, 4  ;;  %s189_s27 = int_to_ptr.vmem [resolvable:$true] %s188_s27 }
  0x2f   :  { %191 = dma.hbm_to_vmem [thread:$0]  %s187_s26, 16, %s189_s27, [#allocation24]  }
  0x30   :  { %8937 = dma.done.wait [#allocation4], 32  }
  0x31   :  { %8938 = vsyncadd [#allocation4], 4294967264 }
  0x32   :  { %8939 = dma.done.wait [#allocation6], 8320  }
  0x33   :  { %8940 = vsyncadd [#allocation6], 4294958976 }
  0x34   :  { %8941 = dma.done.wait [#allocation9], 32  }
  0x35   :  { %8942 = vsyncadd [#allocation9], 4294967264 }
  0x36   :  { %8943 = dma.done.wait [#allocation12], 65600  }
  0x37   :  { %8944 = vsyncadd [#allocation12], 4294901696 }
  0x38   :  { %8945 = dma.done.wait [#allocation15], 32  }
  0x39   :  { %8946 = vsyncadd [#allocation15], 4294967264 }
  0x3a   :  { %8947 = dma.done.wait [#allocation18], 4112  }
  0x3b   :  { %8948 = vsyncadd [#allocation18], 4294963184 }
  0x3c   :  { %8949 = dma.done.wait [#allocation21], 1040  }
  0x3d   :  { %8950 = vsyncadd [#allocation21], 4294966256 }
  0x3e   :  { %8951 = dma.done.wait [#allocation24], 16  }
  0x3f   :  { %8952 = vsyncadd [#allocation24], 4294967280  ;;  %v5660_v1 = vld [vmem:[#allocation5 + $0x180] sm:$0xf]  ;;  %v5668_v3 = vld [vmem:[#allocation5 + $0x188] sm:$0xf] }
  0x40   :  { %v8002_v2 = vld [vmem:[#allocation5 + $0x1bc] sm:$0xf0]  ;;  %v8003_v5 = vld [vmem:[#allocation5 + $0x1c4] sm:$0xf0]  ;;  %v7995_v6 = vld [vmem:[#allocation5 + $0x18c] sm:$0xf] }
  0x41   :  { %v5661_v4 = vor.u32 %v8002_v2, %v5660_v1  ;;  %v5670_v7 = vld [vmem:[#allocation5 + $0x1c8] sm:$0xf0]  ;;  %v5669_v8 = vor.u32 %v8003_v5, %v5668_v3  ;;  %v5676_v10 = vld [vmem:[#allocation5 + $0x190] sm:$0xf]  ;;  %v5596_v12 = vld [vmem:[#allocation5 + $0x100] sm:$0xf] }
  0x42   :  { %v5673_v9 = vor.u32 %v7995_v6, %v5670_v7  ;;  %v8004_v11 = vld [vmem:[#allocation5 + $0x1cc] sm:$0xf0]  ;;  %v7986_v14 = vld [vmem:[#allocation5 + $0x13c] sm:$0xf0]  ;;  %v5604_v15 = vld [vmem:[#allocation5 + $0x108] sm:$0xf] }
  0x43   :  { %645 = vmatpush.bf16.msra.mxu1 %v5661_v4  ;;  %v5677_v13 = vor.u32 %v8004_v11, %v5676_v10  ;;  %v7987_v16 = vld [vmem:[#allocation5 + $0x144] sm:$0xf0]  ;;  %671 = vmatpush.bf16.msra.mxu2 %v5669_v8  ;;  %v5597_v17 = vor.u32 %v7986_v14, %v5596_v12  ;;  %v7979_v19 = vld [vmem:[#allocation5 + $0x10c] sm:$0xf]  ;;  %v5612_v21 = vld [vmem:[#allocation5 + $0x110] sm:$0xf] }
  0x44   :  { %684 = vmatpush.bf16.msra.mxu3 %v5673_v9  ;;  %v5605_v18 = vor.u32 %v7987_v16, %v5604_v15  ;;  %v5606_v20 = vld [vmem:[#allocation5 + $0x148] sm:$0xf0]  ;;  %v7988_v23 = vld [vmem:[#allocation5 + $0x14c] sm:$0xf0]  ;;  %v5532_v24 = vld [vmem:[#allocation5 + $0x80] sm:$0xf] }
  0x45   :  { %697 = vmatpush.bf16.msra.mxu0 %v5677_v13  ;;  %v5609_v22 = vor.u32 %v7979_v19, %v5606_v20  ;;  %v7970_v25 = vld [vmem:[#allocation5 + $0xbc] sm:$0xf0]  ;;  %v5613_v26 = vor.u32 %v7988_v23, %v5612_v21  ;;  %v5540_v27 = vld [vmem:[#allocation5 + $0x88] sm:$0xf]  ;;  %v7963_v29 = vld [vmem:[#allocation5 + $0x8c] sm:$0xf] }
  0x46   :  { %v7971_v28 = vld [vmem:[#allocation5 + $0xc4] sm:$0xf0]  ;;  %v5533_v30 = vor.u32 %v7970_v25, %v5532_v24  ;;  %v5542_v31 = vld [vmem:[#allocation5 + $0xc8] sm:$0xf0]  ;;  %v5548_v32 = vld [vmem:[#allocation5 + $0x90] sm:$0xf] }
  0x47   :  { %646 = vmatpush.bf16.msra.mxu1 %v5597_v17  ;;  %v7972_v33 = vld [vmem:[#allocation5 + $0xcc] sm:$0xf0]  ;;  %672 = vmatpush.bf16.msra.mxu2 %v5605_v18  ;;  %v5541_v34 = vor.u32 %v7971_v28, %v5540_v27  ;;  %v5545_v35 = vor.u32 %v7963_v29, %v5542_v31  ;;  %v5468_v36 = vld [vmem:[#allocation5] sm:$0xf]  ;;  %v5476_v38 = vld [vmem:[#allocation5 + $0x8] sm:$0xf] }
  0x48   :  { %685 = vmatpush.bf16.msra.mxu3 %v5609_v22  ;;  %v7954_v37 = vld [vmem:[#allocation5 + $0x3c] sm:$0xf0]  ;;  %v5549_v39 = vor.u32 %v7972_v33, %v5548_v32  ;;  %v7955_v40 = vld [vmem:[#allocation5 + $0x44] sm:$0xf0]  ;;  %v7947_v41 = vld [vmem:[#allocation5 + $0xc] sm:$0xf] }
  0x49   :  { %698 = vmatpush.bf16.msra.mxu0 %v5613_v26  ;;  %v5478_v42 = vld [vmem:[#allocation5 + $0x48] sm:$0xf0]  ;;  %v5484_v43 = vld [vmem:[#allocation5 + $0x10] sm:$0xf]  ;;  %v251_v45 = vld [vmem:[#allocation3] sm:$0x3]  ;;  %v5469_v46 = vor.u32 %v7954_v37, %v5468_v36  ;;  %v5477_v50 = vor.u32 %v7955_v40, %v5476_v38 }
  0x4a   :  { %v7956_v44 = vld [vmem:[#allocation5 + $0x4c] sm:$0xf0]  ;;  %v7994_v47 = vld [vmem:[#allocation5 + $0x184] sm:$0xf]  ;;  %v5684_v49 = vld [vmem:[#allocation5 + $0x198] sm:$0xf]  ;;  %v5481_v51 = vor.u32 %v7947_v41, %v5478_v42  ;;  %v9104_v58 = vpack.c.bf16 %v251_v45, %v251_v45 }
  0x4b   :  { %647 = vmatpush.bf16.msra.mxu1 %v5533_v30  ;;  %v5662_v48 = vld [vmem:[#allocation5 + $0x1c0] sm:$0xf0]  ;;  %673 = vmatpush.bf16.msra.mxu2 %v5541_v34  ;;  %v8005_v52 = vld [vmem:[#allocation5 + $0x1d4] sm:$0xf0]  ;;  %v5485_v53 = vor.u32 %v7956_v44, %v5484_v43  ;;  %v7997_v55 = vld [vmem:[#allocation5 + $0x19c] sm:$0xf] }
  0x4c   :  { %686 = vmatpush.bf16.msra.mxu3 %v5545_v35  ;;  %v5665_v54 = vor.u32 %v7994_v47, %v5662_v48  ;;  %v5686_v56 = vld [vmem:[#allocation5 + $0x1d8] sm:$0xf0]  ;;  %v5692_v57 = vld [vmem:[#allocation5 + $0x1a0] sm:$0xf]  ;;  %v5685_v59 = vor.u32 %v8005_v52, %v5684_v49  ;;  %v7978_v61 = vld [vmem:[#allocation5 + $0x104] sm:$0xf] }
  0x4d   :  { %699 = vmatpush.bf16.msra.mxu0 %v5549_v39  ;;  %v8006_v60 = vld [vmem:[#allocation5 + $0x1dc] sm:$0xf0]  ;;  %v5598_v62 = vld [vmem:[#allocation5 + $0x140] sm:$0xf0]  ;;  %vm637_vm0 = vcmask 523264   ;;  %v5689_v1 = vor.u32 %v7997_v55, %v5686_v56  ;;  %vm921_vm9 = vcmask 517120  }
  0x4e   :  { %v5620_v63 = vld [vmem:[#allocation5 + $0x118] sm:$0xf]  ;;  %v5693_v2 = vor.u32 %v8006_v60, %v5692_v57  ;;  %v5601_v3 = vor.u32 %v7978_v61, %v5598_v62  ;;  %v7981_v4 = vld [vmem:[#allocation5 + $0x11c] sm:$0xf]  ;;  %v5628_v6 = vld [vmem:[#allocation5 + $0x120] sm:$0xf] }
  0x4f   :  { %648 = vmatpush.bf16.msra.mxu1 %v5469_v46  ;;  %v7989_v0 = vld [vmem:[#allocation5 + $0x154] sm:$0xf0]  ;;  %674 = vmatpush.bf16.msra.mxu2 %v5477_v50  ;;  %v5622_v5 = vld [vmem:[#allocation5 + $0x158] sm:$0xf0]  ;;  %v7990_v8 = vld [vmem:[#allocation5 + $0x15c] sm:$0xf0] }
  0x50   :  { %687 = vmatpush.bf16.msra.mxu3 %v5481_v51  ;;  %v5621_v7 = vor.u32 %v7989_v0, %v5620_v63  ;;  %v7962_v9 = vld [vmem:[#allocation5 + $0x84] sm:$0xf]  ;;  %v5556_v11 = vld [vmem:[#allocation5 + $0x98] sm:$0xf]  ;;  %v5625_v13 = vor.u32 %v7981_v4, %v5622_v5  ;;  %v7965_v14 = vld [vmem:[#allocation5 + $0x9c] sm:$0xf]  ;;  %v5629_v15 = vor.u32 %v7990_v8, %v5628_v6 }
  0x51   :  { %700 = vmatpush.bf16.msra.mxu0 %v5485_v53  ;;  %v5534_v10 = vld [vmem:[#allocation5 + $0xc0] sm:$0xf0]  ;;  %v7973_v12 = vld [vmem:[#allocation5 + $0xd4] sm:$0xf0]  ;;  %v5558_v17 = vld [vmem:[#allocation5 + $0xd8] sm:$0xf0] }
  0x52   :  { %5722 = vmatmul.msk.bf16.vlgmr.msra.gmra.mxu1 %vm637_vm0, %v9104_v58  ;;  %5724 = vmatmul.msk.bf16.vlgmr.msra.gmra.mxu2 %vm637_vm0, %v9104_v58  ;;  %v5537_v16 = vor.u32 %v7962_v9, %v5534_v10  ;;  %v5564_v18 = vld [vmem:[#allocation5 + $0xa0] sm:$0xf]  ;;  %v5557_v20 = vor.u32 %v7973_v12, %v5556_v11  ;;  %v7946_v21 = vld [vmem:[#allocation5 + $0x4] sm:$0xf]  ;;  %v5492_v23 = vld [vmem:[#allocation5 + $0x18] sm:$0xf]  ;;  %v5561_v27 = vor.u32 %v7965_v14, %v5558_v17 }
  0x53   :  { %658 = vmatpush.bf16.msrb.mxu1 %v5665_v54  ;;  %723 = vmatpush.bf16.msrb.mxu2 %v5685_v59  ;;  %v7974_v19 = vld [vmem:[#allocation5 + $0xdc] sm:$0xf0]  ;;  %v5470_v22 = vld [vmem:[#allocation5 + $0x40] sm:$0xf0]  ;;  %v7957_v24 = vld [vmem:[#allocation5 + $0x54] sm:$0xf0] }
  0x54   :  { %5725 = vmatmul.msk.bf16.vlgmr.msra.gmra.mxu3 %vm637_vm0, %v9104_v58  ;;  %5726 = vmatmul.msk.bf16.vlgmr.msra.gmra.mxu0 %vm637_vm0, %v9104_v58  ;;  %v7996_v25 = vld [vmem:[#allocation5 + $0x194] sm:$0xf]  ;;  %v5700_v28 = vld [vmem:[#allocation5 + $0x1a8] sm:$0xf]  ;;  %v5565_v30 = vor.u32 %v7974_v19, %v5564_v18  ;;  %v5473_v31 = vor.u32 %v7946_v21, %v5470_v22  ;;  %v7949_v32 = vld [vmem:[#allocation5 + $0x1c] sm:$0xf]  ;;  %v5493_v35 = vor.u32 %v7957_v24, %v5492_v23 }
  0x55   :  { %736 = vmatpush.bf16.msrb.mxu3 %v5689_v1  ;;  %749 = vmatpush.bf16.msrb.mxu0 %v5693_v2  ;;  %v5678_v26 = vld [vmem:[#allocation5 + $0x1d0] sm:$0xf0]  ;;  %v8007_v29 = vld [vmem:[#allocation5 + $0x1e4] sm:$0xf0]  ;;  %v5494_v33 = vld [vmem:[#allocation5 + $0x58] sm:$0xf0] }
  0x56   :  { %v5500_v34 = vld [vmem:[#allocation5 + $0x20] sm:$0xf]  ;;  %v5681_v37 = vor.u32 %v7996_v25, %v5678_v26  ;;  %v7999_v38 = vld [vmem:[#allocation5 + $0x1ac] sm:$0xf]  ;;  %v5701_v40 = vor.u32 %v8007_v29, %v5700_v28  ;;  %v5708_v41 = vld [vmem:[#allocation5 + $0x1b0] sm:$0xf]  ;;  %v5497_v43 = vor.u32 %v7949_v32, %v5494_v33 }
  0x57   :  { %659 = vmatpush.bf16.msrb.mxu1 %v5601_v3  ;;  %724 = vmatpush.bf16.msrb.mxu2 %v5621_v7  ;;  %v7958_v36 = vld [vmem:[#allocation5 + $0x5c] sm:$0xf0]  ;;  %v5702_v39 = vld [vmem:[#allocation5 + $0x1e8] sm:$0xf0]  ;;  %v8008_v42 = vld [vmem:[#allocation5 + $0x1ec] sm:$0xf0] }
  0x58   :  { %v5501_v44 = vor.u32 %v7958_v36, %v5500_v34  ;;  %v5705_v45 = vor.u32 %v7999_v38, %v5702_v39  ;;  %v7980_v46 = vld [vmem:[#allocation5 + $0x114] sm:$0xf]  ;;  %v5636_v48 = vld [vmem:[#allocation5 + $0x128] sm:$0xf]  ;;  %v5709_v49 = vor.u32 %v8008_v42, %v5708_v41  ;;  %v7983_v51 = vld [vmem:[#allocation5 + $0x12c] sm:$0xf] }
  0x59   :  { %737 = vmatpush.bf16.msrb.mxu3 %v5625_v13  ;;  %750 = vmatpush.bf16.msrb.mxu0 %v5629_v15  ;;  %v5614_v47 = vld [vmem:[#allocation5 + $0x150] sm:$0xf0]  ;;  %v7991_v50 = vld [vmem:[#allocation5 + $0x164] sm:$0xf0]  ;;  %v5638_v52 = vld [vmem:[#allocation5 + $0x168] sm:$0xf0] }
  0x5a   :  { %v5644_v53 = vld [vmem:[#allocation5 + $0x130] sm:$0xf]  ;;  %v5617_v55 = vor.u32 %v7980_v46, %v5614_v47  ;;  %v5637_v56 = vor.u32 %v7991_v50, %v5636_v48  ;;  %v5641_v57 = vor.u32 %v7983_v51, %v5638_v52  ;;  %v7964_v59 = vld [vmem:[#allocation5 + $0x94] sm:$0xf]  ;;  %v5572_v61 = vld [vmem:[#allocation5 + $0xa8] sm:$0xf] }
  0x5b   :  { %660 = vmatpush.bf16.msrb.mxu1 %v5537_v16  ;;  %725 = vmatpush.bf16.msrb.mxu2 %v5557_v20  ;;  %v7992_v54 = vld [vmem:[#allocation5 + $0x16c] sm:$0xf0]  ;;  %v5550_v60 = vld [vmem:[#allocation5 + $0xd0] sm:$0xf0]  ;;  %v7975_v63 = vld [vmem:[#allocation5 + $0xe4] sm:$0xf0] }
  0x5c   :  { %v5645_v62 = vor.u32 %v7992_v54, %v5644_v53  ;;  %v7967_v0 = vld [vmem:[#allocation5 + $0xac] sm:$0xf]  ;;  %v5580_v2 = vld [vmem:[#allocation5 + $0xb0] sm:$0xf]  ;;  %v5553_v4 = vor.u32 %v7964_v59, %v5550_v60  ;;  %v7948_v5 = vld [vmem:[#allocation5 + $0x14] sm:$0xf]  ;;  %v5573_v7 = vor.u32 %v7975_v63, %v5572_v61 }
  0x5d   :  { %738 = vmatpush.bf16.msrb.mxu3 %v5561_v27  ;;  %751 = vmatpush.bf16.msrb.mxu0 %v5565_v30  ;;  %v5574_v1 = vld [vmem:[#allocation5 + $0xe8] sm:$0xf0]  ;;  %v7976_v3 = vld [vmem:[#allocation5 + $0xec] sm:$0xf0]  ;;  %v5486_v6 = vld [vmem:[#allocation5 + $0x50] sm:$0xf0] }
  0x5e   :  { %v5577_v8 = vor.u32 %v7967_v0, %v5574_v1  ;;  %v5508_v9 = vld [vmem:[#allocation5 + $0x28] sm:$0xf]  ;;  %v7951_v11 = vld [vmem:[#allocation5 + $0x2c] sm:$0xf]  ;;  %v5581_v12 = vor.u32 %v7976_v3, %v5580_v2  ;;  %v5516_v14 = vld [vmem:[#allocation5 + $0x30] sm:$0xf]  ;;  %v5489_v19 = vor.u32 %v7948_v5, %v5486_v6 }
  0x5f   :  { %661 = vmatpush.bf16.msrb.mxu1 %v5473_v31  ;;  %726 = vmatpush.bf16.msrb.mxu2 %v5493_v35  ;;  %v7959_v10 = vld [vmem:[#allocation5 + $0x64] sm:$0xf0]  ;;  %v5510_v13 = vld [vmem:[#allocation5 + $0x68] sm:$0xf0]  ;;  %v7960_v15 = vld [vmem:[#allocation5 + $0x6c] sm:$0xf0] }
  0x60   :  { %v7998_v16 = vld [vmem:[#allocation5 + $0x1a4] sm:$0xf]  ;;  %v5716_v18 = vld [vmem:[#allocation5 + $0x1b8] sm:$0xf]  ;;  %v8001_v21 = vld [vmem:[#allocation5 + $0x1bc] sm:$0xf]  ;;  %v5509_v23 = vor.u32 %v7959_v10, %v5508_v9  ;;  %v5513_v24 = vor.u32 %v7951_v11, %v5510_v13  ;;  %v5517_v25 = vor.u32 %v7960_v15, %v5516_v14 }
  0x61   :  { %739 = vmatpush.bf16.msrb.mxu3 %v5497_v43  ;;  %752 = vmatpush.bf16.msrb.mxu0 %v5501_v44  ;;  %v5694_v17 = vld [vmem:[#allocation5 + $0x1e0] sm:$0xf0]  ;;  %v8009_v20 = vld [vmem:[#allocation5 + $0x1f4] sm:$0xf0]  ;;  %v5718_v22 = vld [vmem:[#allocation5 + $0x1f8] sm:$0xf0] }
  0x62   :  { %5723 = vmatmul.msk.bf16.vlgmr.msrb.gmra.mxu1 %vm637_vm0, %v9104_v58  ;;  %5728 = vmatmul.msk.bf16.vlgmr.msrb.gmra.mxu2 %vm637_vm0, %v9104_v58  ;;  %v5697_v26 = vor.u32 %v7998_v16, %v5694_v17  ;;  %v5717_v27 = vor.u32 %v8009_v20, %v5716_v18  ;;  %v5721_v28 = vor.u32 %v8001_v21, %v5718_v22  ;;  %v7982_v29 = vld [vmem:[#allocation5 + $0x124] sm:$0xf]  ;;  %v5652_v31 = vld [vmem:[#allocation5 + $0x138] sm:$0xf]  ;;  %v7985_v33 = vld [vmem:[#allocation5 + $0x13c] sm:$0xf] }
  0x63   :  { %710 = vmatpush.bf16.msra.mxu1 %v5681_v37  ;;  %775 = vmatpush.bf16.msra.mxu2 %v5701_v40  ;;  %v5630_v30 = vld [vmem:[#allocation5 + $0x160] sm:$0xf0]  ;;  %v7993_v32 = vld [vmem:[#allocation5 + $0x174] sm:$0xf0]  ;;  %v5654_v34 = vld [vmem:[#allocation5 + $0x178] sm:$0xf0] }
  0x64   :  { %5729 = vmatmul.msk.bf16.vlgmr.msrb.gmra.mxu3 %vm637_vm0, %v9104_v58  ;;  %5730 = vmatmul.msk.bf16.vlgmr.msrb.gmra.mxu0 %vm637_vm0, %v9104_v58  ;;  %v5633_v35 = vor.u32 %v7982_v29, %v5630_v30  ;;  %v5653_v36 = vor.u32 %v7993_v32, %v5652_v31  ;;  %v5657_v37 = vor.u32 %v7985_v33, %v5654_v34  ;;  %v7966_v38 = vld [vmem:[#allocation5 + $0xa4] sm:$0xf]  ;;  %v5588_v40 = vld [vmem:[#allocation5 + $0xb8] sm:$0xf]  ;;  %v7969_v42 = vld [vmem:[#allocation5 + $0xbc] sm:$0xf] }
  0x65   :  { %788 = vmatpush.bf16.msra.mxu3 %v5705_v45  ;;  %801 = vmatpush.bf16.msra.mxu0 %v5709_v49  ;;  %v5566_v39 = vld [vmem:[#allocation5 + $0xe0] sm:$0xf0]  ;;  %v7977_v41 = vld [vmem:[#allocation5 + $0xf4] sm:$0xf0]  ;;  %v5590_v43 = vld [vmem:[#allocation5 + $0xf8] sm:$0xf0] }
  0x66   :  { %v5569_v44 = vor.u32 %v7966_v38, %v5566_v39  ;;  %v5589_v45 = vor.u32 %v7977_v41, %v5588_v40  ;;  %v5593_v46 = vor.u32 %v7969_v42, %v5590_v43  ;;  %v7950_v47 = vld [vmem:[#allocation5 + $0x24] sm:$0xf]  ;;  %v5524_v49 = vld [vmem:[#allocation5 + $0x38] sm:$0xf]  ;;  %v7953_v51 = vld [vmem:[#allocation5 + $0x3c] sm:$0xf] }
  0x67   :  { %711 = vmatpush.bf16.msra.mxu1 %v5617_v55  ;;  %776 = vmatpush.bf16.msra.mxu2 %v5637_v56  ;;  %v5502_v48 = vld [vmem:[#allocation5 + $0x60] sm:$0xf0]  ;;  %v7961_v50 = vld [vmem:[#allocation5 + $0x74] sm:$0xf0]  ;;  %v5526_v52 = vld [vmem:[#allocation5 + $0x78] sm:$0xf0] }
  0x68   :  { %v8000_v53 = vld [vmem:[#allocation5 + $0x1b4] sm:$0xf]  ;;  %v5505_v55 = vor.u32 %v7950_v47, %v5502_v48  ;;  %v5525_v56 = vor.u32 %v7961_v50, %v5524_v49  ;;  %v857_v29 = vld [vmem:[#allocation7] sm:$0xff] }
  0x69   :  { %789 = vmatpush.bf16.msra.mxu3 %v5641_v57  ;;  %802 = vmatpush.bf16.msra.mxu0 %v5645_v62  ;;  %v5710_v54 = vld [vmem:[#allocation5 + $0x1f0] sm:$0xf0]  ;;  %v5529_v57 = vor.u32 %v7953_v51, %v5526_v52  ;;  %v865_v31 = vperm.slane %v857_v29, 6  ;;  %v863_v34 = vperm.slane %v857_v29, 4  ;;  %v861_v38 = vperm.slane %v857_v29, 2 }
  0x6a   :  { %v5713_v59 = vor.u32 %v8000_v53, %v5710_v54  ;;  %v7984_v60 = vld [vmem:[#allocation5 + $0x134] sm:$0xf]  ;;  %v866_v40 = vperm.slane %v857_v29, 7  ;;  %v859_v42 = vperm.slane %v857_v29, 0 }
  0x6b   :  { %712 = vmatpush.bf16.msra.mxu1 %v5553_v4  ;;  %777 = vmatpush.bf16.msra.mxu2 %v5573_v7  ;;  %v5646_v61 = vld [vmem:[#allocation5 + $0x170] sm:$0xf0] }
  0x6c   :  { %v5649_v62 = vor.u32 %v7984_v60, %v5646_v61  ;;  %v7968_v63 = vld [vmem:[#allocation5 + $0xb4] sm:$0xf] }
  0x6d   :  { %790 = vmatpush.bf16.msra.mxu3 %v5577_v8  ;;  %803 = vmatpush.bf16.msra.mxu0 %v5581_v12  ;;  %v5582_v0 = vld [vmem:[#allocation5 + $0xf0] sm:$0xf0] }
  0x6e   :  { %v5585_v1 = vor.u32 %v7968_v63, %v5582_v0  ;;  %v7952_v2 = vld [vmem:[#allocation5 + $0x34] sm:$0xf] }
  0x6f   :  { %713 = vmatpush.bf16.msra.mxu1 %v5489_v19  ;;  %778 = vmatpush.bf16.msra.mxu2 %v5509_v23  ;;  %v5518_v3 = vld [vmem:[#allocation5 + $0x70] sm:$0xf0] }
  0x70   :  { %v5521_v4 = vor.u32 %v7952_v2, %v5518_v3 }
  0x71   :  { %791 = vmatpush.bf16.msra.mxu3 %v5513_v24  ;;  %804 = vmatpush.bf16.msra.mxu0 %v5517_v25 }
  0x72   :  { %5727 = vmatmul.msk.bf16.vlgmr.msra.gmra.mxu1 %vm637_vm0, %v9104_v58  ;;  %5732 = vmatmul.msk.bf16.vlgmr.msra.gmra.mxu2 %vm637_vm0, %v9104_v58 }
  0x73   :  { %762 = vmatpush.bf16.msrb.mxu1 %v5697_v26  ;;  %827 = vmatpush.bf16.msrb.mxu2 %v5717_v27 }
  0x74   :  { %5733 = vmatmul.msk.bf16.vlgmr.msra.gmra.mxu3 %vm637_vm0, %v9104_v58  ;;  %5734 = vmatmul.msk.bf16.vlgmr.msra.gmra.mxu0 %vm637_vm0, %v9104_v58 }
  0x75   :  { %840 = vmatpush.bf16.msrb.mxu3 %v5721_v28 }
  0x77   :  { %763 = vmatpush.bf16.msrb.mxu1 %v5633_v35  ;;  %828 = vmatpush.bf16.msrb.mxu2 %v5653_v36 }
  0x79   :  { %841 = vmatpush.bf16.msrb.mxu3 %v5657_v37 }
  0x7b   :  { %764 = vmatpush.bf16.msrb.mxu1 %v5569_v44  ;;  %829 = vmatpush.bf16.msrb.mxu2 %v5589_v45  ;;  %v860_v44 = vperm.slane %v857_v29, 1 }
  0x7d   :  { %842 = vmatpush.bf16.msrb.mxu3 %v5593_v46  ;;  %v862_v46 = vperm.slane %v857_v29, 3 }
  0x7f   :  { %765 = vmatpush.bf16.msrb.mxu1 %v5505_v55  ;;  %830 = vmatpush.bf16.msrb.mxu2 %v5525_v56  ;;  %v864_v55 = vperm.slane %v857_v29, 5 }
  0x81   :  { %843 = vmatpush.bf16.msrb.mxu3 %v5529_v57 }
  0x82   :  { %5731 = vmatmul.msk.bf16.vlgmr.msrb.gmra.mxu1 %vm637_vm0, %v9104_v58  ;;  %5736 = vmatmul.msk.bf16.vlgmr.msrb.gmra.mxu2 %vm637_vm0, %v9104_v58 }
  0x83   :  { %814 = vmatpush.bf16.msra.mxu1 %v5713_v59 }
  0x84   :  { %5737 = vmatmul.msk.bf16.vlgmr.msrb.gmra.mxu3 %vm637_vm0, %v9104_v58 }
  0x87   :  { %815 = vmatpush.bf16.msra.mxu1 %v5649_v62 }
  0x8b   :  { %816 = vmatpush.bf16.msra.mxu1 %v5585_v1 }
  0x8f   :  { %817 = vmatpush.bf16.msra.mxu1 %v5521_v4 }
  0x92   :  { %5735 = vmatmul.msk.bf16.vlgmr.msra.gmra.mxu1 %vm637_vm0, %v9104_v58 }
  0xcf   :  { %v650_v5 = vpop.f32.mrf.mxu1 }
  0xd1   :  { %v702_v6 = vpop.f32.mrf.mxu0 }
  0xd5   :  { %v676_v7 = vpop.f32.mrf.mxu2 }
  0xd7   :  { %v689_v8 = vpop.f32.mrf.mxu3  ;;  %v652_v9 = vpop.f32.mrf.mxu1 }
  0xd9   :  { %v704_v10 = vpop.f32.mrf.mxu0 }
  0xdd   :  { %v678_v11 = vpop.f32.mrf.mxu2 }
  0xdf   :  { %v691_v12 = vpop.f32.mrf.mxu3  ;;  %v663_v13 = vpop.f32.mrf.mxu1 }
  0xe1   :  { %v754_v14 = vpop.f32.mrf.mxu0 }
  0xe2   :  { %v849_v41 = vmax.f32 %v650_v5, %v754_v14 }
  0xe4   :  { %v875_v51 = vadd.f32 %v859_v42, %v849_v41 }
  0xe5   :  { %v728_v15 = vpop.f32.mrf.mxu2 }
  0xe6   :  { %v891_v0 = vmul.f32 0.2, %v875_v51  ;;  %vm883_vm6 = vcmp.gt.f32.partialorder %v875_v51, 0.0 }
  0xe7   :  { %v741_v16 = vpop.f32.mrf.mxu3  ;;  %v665_v17 = vpop.f32.mrf.mxu1 }
  0xe8   :  { %v9150_v11 = vsel %vm883_vm6, %v875_v51, %v891_v0 }
  0xe9   :  { %v756_v18 = vpop.f32.mrf.mxu0 }
  0xed   :  { %v730_v19 = vpop.f32.mrf.mxu2 }
  0xef   :  { %v743_v20 = vpop.f32.mrf.mxu3  ;;  %v715_v21 = vpop.f32.mrf.mxu1 }
  0xf1   :  { %v806_v22 = vpop.f32.mrf.mxu0 }
  0xf2   :  { %v853_v33 = vmax.f32 %v702_v6, %v806_v22 }
  0xf4   :  { %v879_v48 = vadd.f32 %v863_v34, %v853_v33 }
  0xf5   :  { %v780_v23 = vpop.f32.mrf.mxu2 }
  0xf6   :  { %v851_v37 = vmax.f32 %v676_v7, %v780_v23  ;;  %v895_v59 = vmul.f32 0.2, %v879_v48  ;;  %vm887_vm2 = vcmp.gt.f32.partialorder %v879_v48, 0.0 }
  0xf7   :  { %v793_v58 = vpop.f32.mrf.mxu3  ;;  %v717_v24 = vpop.f32.mrf.mxu1 }
  0xf8   :  { %v852_v45 = vmax.f32 %v689_v8, %v793_v58  ;;  %v877_v49 = vadd.f32 %v861_v38, %v851_v37  ;;  %v9140_v5 = vsel %vm887_vm2, %v879_v48, %v895_v59  ;;  %vm4959_vm2 = vcmask 1041408  }
  0xf9   :  { %v808_v25 = vpop.f32.mrf.mxu0  ;;  %v933_v58 = vmul.f32 %v9140_v5, %v9140_v5 }
  0xfa   :  { %v878_v53 = vadd.f32 %v862_v46, %v852_v45  ;;  %v893_v61 = vmul.f32 0.2, %v877_v49  ;;  %vm885_vm3 = vcmp.gt.f32.partialorder %v877_v49, 0.0 }
  0xfc   :  { %v894_v2 = vmul.f32 0.2, %v878_v53  ;;  %vm886_vm7 = vcmp.gt.f32.partialorder %v878_v53, 0.0  ;;  %v9142_v6 = vsel %vm885_vm3, %v877_v49, %v893_v61 }
  0xfd   :  { %v782_v26 = vpop.f32.mrf.mxu2  ;;  %v931_v25 = vmul.f32 %v9142_v6, %v9142_v6 }
  0xfe   :  { %v9152_v12 = vsel %vm886_vm7, %v878_v53, %v894_v2 }
  0xff   :  { %v795_v27 = vpop.f32.mrf.mxu3  ;;  %v767_v28 = vpop.f32.mrf.mxu1  ;;  %v932_v26 = vmul.f32 %v9152_v12, %v9152_v12 }
 0x100   :  { %v850_v43 = vmax.f32 %v663_v13, %v767_v28  ;;  %v929_v28 = vmul.f32 %v9150_v11, %v9150_v11 }
 0x102   :  { %v876_v52 = vadd.f32 %v860_v44, %v850_v43 }
 0x104   :  { %v892_v1 = vmul.f32 0.2, %v876_v52  ;;  %vm884_vm5 = vcmp.gt.f32.partialorder %v876_v52, 0.0 }
 0x105   :  { %v832_v30 = vpop.f32.mrf.mxu2 }
 0x106   :  { %v855_v35 = vmax.f32 %v728_v15, %v832_v30  ;;  %v9146_v9 = vsel %vm884_vm5, %v876_v52, %v892_v1  ;;  %v909_v15 = vadd.f32 %v9140_v5, %v9150_v11 }
 0x107   :  { %v845_v32 = vpop.f32.mrf.mxu3  ;;  %v769_v36 = vpop.f32.mrf.mxu1  ;;  %v930_v19 = vmul.f32 %v9146_v9, %v9146_v9 }
 0x108   :  { %v856_v39 = vmax.f32 %v741_v16, %v845_v32  ;;  %v881_v47 = vadd.f32 %v865_v31, %v855_v35  ;;  %v937_v31 = vadd.f32 %v933_v58, %v929_v28  ;;  %v8972_v35 = vmov 32.0   ;;  %v8062_v58 = vld [vmem:[#allocation11 + $0x19c] sm:$0xf0] }
 0x109   :  { %8587 = vrcp.f32 %v8972_v35  ;;  %v8190_v28 = vld [vmem:[#allocation11 + $0x59c] sm:$0xf0] }
 0x10a   :  { %v882_v50 = vadd.f32 %v866_v40, %v856_v39  ;;  %v897_v54 = vmul.f32 0.2, %v881_v47  ;;  %vm889_vm1 = vcmp.gt.f32.partialorder %v881_v47, 0.0  ;;  %v8054_v35 = vld [vmem:[#allocation11 + $0x15c] sm:$0xf0] }
 0x10c   :  { %v898_v62 = vmul.f32 0.2, %v882_v50  ;;  %vm890_vm4 = vcmp.gt.f32.partialorder %v882_v50, 0.0  ;;  %v9138_v3 = vsel %vm889_vm1, %v881_v47, %v897_v54 }
 0x10d   :  { %v834_v56 = vpop.f32.mrf.mxu2  ;;  %v911_v10 = vadd.f32 %v9138_v3, %v9142_v6  ;;  %v935_v22 = vmul.f32 %v9138_v3, %v9138_v3 }
 0x10e   :  { %v9144_v7 = vsel %vm890_vm4, %v882_v50, %v898_v62 }
 0x10f   :  { %v847_v57 = vpop.f32.mrf.mxu3  ;;  %v819_v60 = vpop.f32.mrf.mxu1  ;;  %v912_v17 = vadd.f32 %v9144_v7, %v9152_v12  ;;  %v913_v20 = vadd.f32 %v911_v10, %v909_v15  ;;  %v936_v23 = vmul.f32 %v9144_v7, %v9144_v7  ;;  %v939_v29 = vadd.f32 %v935_v22, %v931_v25  ;;  %v8134_v15 = vld [vmem:[#allocation11 + $0x3dc] sm:$0xf0] }
 0x110   :  { %v854_v63 = vmax.f32 %v715_v21, %v819_v60  ;;  %v8588_v36 = vpop.eup %8587 }
 0x111   :  { %v940_v30 = vadd.f32 %v936_v23, %v932_v26  ;;  %v941_v33 = vadd.f32 %v939_v29, %v937_v31  ;;  %v957_v38 = vmul.f32 32.0, %v8588_v36  ;;  %vm961_vm10 = vweird.f32 %v8588_v36  ;;  %v5932_v23 = vld [vmem:[#allocation11 + $0x180] sm:$0xf] }
 0x112   :  { %v880_v4 = vadd.f32 %v864_v55, %v854_v63  ;;  %v5933_v25 = vor.u32 %v8062_v58, %v5932_v23  ;;  %v8126_v26 = vld [vmem:[#allocation11 + $0x39c] sm:$0xf0] }
 0x113   :  { %v958_v42 = vsub.f32 1.0, %v957_v38  ;;  %v6700_v31 = vld [vmem:[#allocation11 + $0x780] sm:$0xf] }
 0x114   :  { %vm888_vm8 = vcmp.gt.f32.partialorder %v880_v4, 0.0  ;;  %v896_v8 = vmul.f32 0.2, %v880_v4  ;;  %v8030_v23 = vld [vmem:[#allocation11 + $0x9c] sm:$0xf0] }
 0x115   :  { %v959_v46 = vmul.f32 %v8588_v36, %v958_v42 }
 0x116   :  { %v9154_v13 = vsel %vm888_vm8, %v880_v4, %v896_v8  ;;  %v5964_v4 = vld [vmem:[#allocation11 + $0x1c0] sm:$0xf] }
 0x117   :  { %v821_v14 = vpop.f32.mrf.mxu1  ;;  %v910_v16 = vadd.f32 %v9154_v13, %v9146_v9  ;;  %v934_v18 = vmul.f32 %v9154_v13, %v9154_v13  ;;  %v960_v52 = vadd.f32 %v8588_v36, %v959_v46  ;;  %v8070_v8 = vld [vmem:[#allocation11 + $0x1dc] sm:$0xf0] }
 0x118   :  { %v5965_v10 = vor.u32 %v8070_v8, %v5964_v4  ;;  %v6220_v14 = vld [vmem:[#allocation11 + $0x3c0] sm:$0xf] }
 0x119   :  { %v914_v21 = vadd.f32 %v912_v17, %v910_v16  ;;  %v938_v27 = vadd.f32 %v934_v18, %v930_v19  ;;  %v962_v56 = vsel %vm961_vm10, %v8588_v36, %v960_v52  ;;  %v6476_v16 = vld [vmem:[#allocation11 + $0x5c0] sm:$0xf]  ;;  %v6221_v17 = vor.u32 %v8134_v15, %v6220_v14 }
 0x11a   :  { %v8198_v18 = vld [vmem:[#allocation11 + $0x5dc] sm:$0xf0]  ;;  %4092 = vmatpush.bf16.msrb.mxu0 %v5965_v10 }
 0x11b   :  { %v915_v24 = vadd.f32 %v914_v21, %v913_v20  ;;  %v942_v32 = vadd.f32 %v940_v30, %v938_v27  ;;  %v6732_v19 = vld [vmem:[#allocation11 + $0x7c0] sm:$0xf]  ;;  %v6477_v21 = vor.u32 %v8198_v18, %v6476_v16  ;;  %4105 = vmatpush.bf16.msrb.mxu1 %v6221_v17  ;;  %v907_v17 = vld [vmem:[#allocation8] sm:$0x1] }
 0x11c   :  { %v8262_v20 = vld [vmem:[#allocation11 + $0x7dc] sm:$0xf0] }
 0x11d   :  { %917 = vrot.lane.b32.xlu0 %v915_v24, %s8955_s28  ;;  %v943_v34 = vadd.f32 %v942_v32, %v941_v33  ;;  %v6733_v22 = vor.u32 %v8262_v20, %v6732_v19  ;;  %v6444_v27 = vld [vmem:[#allocation11 + $0x580] sm:$0xf]  ;;  %4118 = vmatpush.bf16.msra.mxu2 %v6477_v21 }
 0x11e   :  { %v6445_v30 = vor.u32 %v8190_v28, %v6444_v27  ;;  %v8254_v32 = vld [vmem:[#allocation11 + $0x79c] sm:$0xf0]  ;;  %4093 = vmatpush.bf16.msrb.mxu0 %v5933_v25 }
 0x11f   :  { %4131 = vmatpush.bf16.msra.mxu3 %v6733_v22  ;;  %v5900_v33 = vld [vmem:[#allocation11 + $0x140] sm:$0xf] }
 0x120   :  { %v6156_v36 = vld [vmem:[#allocation11 + $0x340] sm:$0xf]  ;;  %v5901_v38 = vor.u32 %v8054_v35, %v5900_v33 }
 0x121   :  { %v8046_v46 = vld [vmem:[#allocation11 + $0x11c] sm:$0xf0]  ;;  %4119 = vmatpush.bf16.msra.mxu2 %v6445_v30 }
 0x122   :  { %v6380_v52 = vld [vmem:[#allocation11 + $0x500] sm:$0xf]  ;;  %4094 = vmatpush.bf16.msrb.mxu0 %v5901_v38 }
 0x123   :  { %v8102_v8 = vld [vmem:[#allocation11 + $0x2dc] sm:$0xf0] }
 0x124   :  { %v6348_v10 = vld [vmem:[#allocation11 + $0x4c0] sm:$0xf] }
 0x125   :  { %945 = vrot.lane.b32.xlu0 %v943_v34, %s8955_s28  ;;  %v8166_v14 = vld [vmem:[#allocation11 + $0x4dc] sm:$0xf0] }
 0x126   :  { %v6604_v15 = vld [vmem:[#allocation11 + $0x6c0] sm:$0xf] }
 0x127   :  { %v8230_v16 = vld [vmem:[#allocation11 + $0x6dc] sm:$0xf0] }
 0x128   :  { %v5804_v22 = vld [vmem:[#allocation11 + $0x80] sm:$0xf]  ;;  %v6605_v25 = vor.u32 %v8230_v16, %v6604_v15 }
 0x129   :  { %v8094_v27 = vld [vmem:[#allocation11 + $0x29c] sm:$0xf0] }
 0x12a   :  { %v6316_v28 = vld [vmem:[#allocation11 + $0x480] sm:$0xf] }
 0x12b   :  { %v8222_v30 = vld [vmem:[#allocation11 + $0x69c] sm:$0xf0] }
 0x12c   :  { %v5772_v35 = vld [vmem:[#allocation11 + $0x40] sm:$0xf] }
 0x12d   :  { %v7756_v15 = vld [vmem:[#allocation11 + $0xfc0] sm:$0xf] }
 0x12e   :  { %v8518_v16 = vld [vmem:[#allocation11 + $0xfdc] sm:$0xf0] }
 0x18f   :  { %v918_v37 = vpop.permute.xlu0 %917 }
 0x190   :  { %v920_v39 = vadd.f32 %v918_v37, %v915_v24  ;;  %v6188_v24 = vld [vmem:[#allocation11 + $0x380] sm:$0xf] }
 0x191   :  { %v6189_v29 = vor.u32 %v8126_v26, %v6188_v24  ;;  %v8118_v37 = vld [vmem:[#allocation11 + $0x35c] sm:$0xf0]  ;;  %v6349_v24 = vor.u32 %v8166_v14, %v6348_v10 }
 0x192   :  { %v922_v40 = vsel %vm921_vm9, %v920_v39, 0.0  ;;  %v6412_v39 = vld [vmem:[#allocation11 + $0x540] sm:$0xf] }
 0x193   :  { %v923_v41 = vrot.slane %v922_v40, 4  ;;  %4106 = vmatpush.bf16.msrb.mxu1 %v6189_v29  ;;  %v6060_v26 = vld [vmem:[#allocation11 + $0x280] sm:$0xf] }
 0x194   :  { %v6572_v29 = vld [vmem:[#allocation11 + $0x680] sm:$0xf] }
 0x195   :  { %v924_v43 = vadd.f32 %v923_v41, %v922_v40  ;;  %v8182_v40 = vld [vmem:[#allocation11 + $0x55c] sm:$0xf0] }
 0x196   :  { %v6668_v41 = vld [vmem:[#allocation11 + $0x740] sm:$0xf] }
 0x197   :  { %v925_v44 = vrot.slane %v924_v43, 2  ;;  %v946_v45 = vpop.permute.xlu0 %945  ;;  %v8454_v14 = vld [vmem:[#allocation11 + $0xddc] sm:$0xf0] }
 0x198   :  { %v948_v47 = vadd.f32 %v946_v45, %v943_v34  ;;  %v6701_v34 = vor.u32 %v8254_v32, %v6700_v31  ;;  %v5868_v45 = vld [vmem:[#allocation11 + $0x100] sm:$0xf]  ;;  %v5805_v32 = vor.u32 %v8030_v23, %v5804_v22 }
 0x199   :  { %v926_v48 = vadd.f32 %v925_v44, %v924_v43  ;;  %v6157_v43 = vor.u32 %v8118_v37, %v6156_v36  ;;  %v8246_v44 = vld [vmem:[#allocation11 + $0x75c] sm:$0xf0] }
 0x19a   :  { %v949_v49 = vsel %vm921_vm9, %v948_v47, 0.0  ;;  %4132 = vmatpush.bf16.msra.mxu3 %v6701_v34  ;;  %v6061_v34 = vor.u32 %v8094_v27, %v6060_v26  ;;  %v8022_v36 = vld [vmem:[#allocation11 + $0x5c] sm:$0xf0] }
 0x19b   :  { %v927_v50 = vrot.slane %v926_v48, 1  ;;  %v950_v51 = vrot.slane %v949_v49, 4  ;;  %4107 = vmatpush.bf16.msrb.mxu1 %v6157_v43  ;;  %v6028_v37 = vld [vmem:[#allocation11 + $0x240] sm:$0xf] }
 0x19c   :  { %v8150_v43 = vld [vmem:[#allocation11 + $0x45c] sm:$0xf0] }
 0x19d   :  { %v951_v53 = vadd.f32 %v950_v51, %v949_v49  ;;  %v928_v54 = vadd.f32 %v927_v50, %v926_v48  ;;  %v6413_v48 = vor.u32 %v8182_v40, %v6412_v39  ;;  %v6669_v49 = vor.u32 %v8246_v44, %v6668_v41  ;;  %v6124_v50 = vld [vmem:[#allocation11 + $0x300] sm:$0xf] }
 0x19e   :  { %v8110_v51 = vld [vmem:[#allocation11 + $0x31c] sm:$0xf0]  ;;  %v6573_v39 = vor.u32 %v8222_v30, %v6572_v29 }
 0x19f   :  { %v952_v55 = vrot.slane %v951_v53, 2  ;;  %v9180_v59 = vmul.f32 %v962_v56, %v928_v54  ;;  %v6636_v54 = vld [vmem:[#allocation11 + $0x700] sm:$0xf]  ;;  %4120 = vmatpush.bf16.msra.mxu2 %v6413_v48  ;;  %4133 = vmatpush.bf16.msra.mxu3 %v6669_v49  ;;  %v5773_v48 = vor.u32 %v8022_v36, %v5772_v35 }
 0x1a0   :  { %v8086_v40 = vld [vmem:[#allocation11 + $0x25c] sm:$0xf0] }
 0x1a1   :  { %v953_v57 = vadd.f32 %v952_v55, %v951_v53  ;;  %v965_v62 = vmul.f32 %v9180_v59, %v9180_v59  ;;  %v8174_v53 = vld [vmem:[#allocation11 + $0x51c] sm:$0xf0] }
 0x1a2   :  { %v6284_v41 = vld [vmem:[#allocation11 + $0x440] sm:$0xf] }
 0x1a3   :  { %v954_v60 = vrot.slane %v953_v57, 1  ;;  %v5740_v49 = vld [vmem:[#allocation11] sm:$0xf] }
 0x1a4   :  { %v6956_v22 = vld [vmem:[#allocation11 + $0x980] sm:$0xf] }
 0x1a5   :  { %v955_v61 = vadd.f32 %v954_v60, %v953_v57  ;;  %v8238_v57 = vld [vmem:[#allocation11 + $0x71c] sm:$0xf0]  ;;  %v6125_v60 = vor.u32 %v8110_v51, %v6124_v50  ;;  %v6029_v50 = vor.u32 %v8086_v40, %v6028_v37 }
 0x1a6   :  { %v6637_v4 = vor.u32 %v8238_v57, %v6636_v54  ;;  %v8014_v51 = vld [vmem:[#allocation11 + $0x1c] sm:$0xf0]  ;;  %v6285_v54 = vor.u32 %v8150_v43, %v6284_v41 }
 0x1a7   :  { %v964_v63 = vmul.f32 %v962_v56, %v955_v61  ;;  %v5869_v56 = vor.u32 %v8046_v46, %v5868_v45  ;;  %v5836_v61 = vld [vmem:[#allocation11 + $0xc0] sm:$0xf]  ;;  %4108 = vmatpush.bf16.msrb.mxu1 %v6125_v60 }
 0x1a8   :  { %4134 = vmatpush.bf16.msra.mxu3 %v6637_v4  ;;  %v6540_v45 = vld [vmem:[#allocation11 + $0x640] sm:$0xf] }
 0x1a9   :  { %v966_v0 = vsub.f32 %v964_v63, %v965_v62  ;;  %v8038_v62 = vld [vmem:[#allocation11 + $0xdc] sm:$0xf0]  ;;  %4095 = vmatpush.bf16.msrb.mxu0 %v5869_v56 }
 0x1aa   :  { %v6092_v63 = vld [vmem:[#allocation11 + $0x2c0] sm:$0xf]  ;;  %v5837_v19 = vor.u32 %v8038_v62, %v5836_v61 }
 0x1ab   :  { %v967_v1 = vmax.f32 %v966_v0, 0.0  ;;  %v6093_v21 = vor.u32 %v8102_v8, %v6092_v63  ;;  %v8214_v46 = vld [vmem:[#allocation11 + $0x65c] sm:$0xf0] }
 0x1ac   :  { %4135 = vmatpush.bf16.msra.mxu3 %v6605_v25  ;;  %v6252_v56 = vld [vmem:[#allocation11 + $0x400] sm:$0xf] }
 0x1ad   :  { %v9184_v2 = vadd.f32 1e-05, %v967_v1  ;;  %v6381_v1 = vor.u32 %v8174_v53, %v6380_v52  ;;  %4096 = vmatpush.bf16.msrb.mxu0 %v5837_v19  ;;  %4109 = vmatpush.bf16.msrb.mxu1 %v6093_v21  ;;  %v5996_v52 = vld [vmem:[#allocation11 + $0x200] sm:$0xf] }
 0x1ae   :  { %v8078_v53 = vld [vmem:[#allocation11 + $0x21c] sm:$0xf0] }
 0x1af   :  { %8589 = vrsqrt.f32 %v9184_v2  ;;  %vm975_vm12 = vweird.f32 %v9184_v2  ;;  %4121 = vmatpush.bf16.msra.mxu2 %v6381_v1  ;;  %v8142_v57 = vld [vmem:[#allocation11 + $0x41c] sm:$0xf0]  ;;  %v5997_v10 = vor.u32 %v8078_v53, %v5996_v52 }
 0x1b0   :  { %4136 = vmatpush.bf16.msra.mxu3 %v6573_v39  ;;  %v8206_v61 = vld [vmem:[#allocation11 + $0x61c] sm:$0xf0] }
 0x1b1   :  { %4097 = vmatpush.bf16.msrb.mxu0 %v5805_v32  ;;  %4110 = vmatpush.bf16.msrb.mxu1 %v6061_v34  ;;  %v6988_v62 = vld [vmem:[#allocation11 + $0x9c0] sm:$0xf] }
 0x1b2   :  { %v8326_v63 = vld [vmem:[#allocation11 + $0x9dc] sm:$0xf0] }
 0x1b3   :  { %4122 = vmatpush.bf16.msra.mxu2 %v6349_v24  ;;  %v7244_v1 = vld [vmem:[#allocation11 + $0xbc0] sm:$0xf]  ;;  %v6989_v20 = vor.u32 %v8326_v63, %v6988_v62  ;;  %v7757_v24 = vor.u32 %v8518_v16, %v7756_v15 }
 0x1b4   :  { %v8390_v4 = vld [vmem:[#allocation11 + $0xbdc] sm:$0xf0] }
 0x1b5   :  { %v8590_v42 = vpop.eup %8589  ;;  %4098 = vmatpush.bf16.msrb.mxu0 %v5773_v48  ;;  %v7500_v8 = vld [vmem:[#allocation11 + $0xdc0] sm:$0xf]  ;;  %4111 = vmatpush.bf16.msrb.mxu1 %v6029_v50  ;;  %v7245_v21 = vor.u32 %v8390_v4, %v7244_v1 }
 0x1b6   :  { %v970_v47 = vmul.f32 %v8590_v42, %v9184_v2  ;;  %vm976_vm11 = vweird.f32 %v8590_v42  ;;  %v8158_v2 = vld [vmem:[#allocation11 + $0x49c] sm:$0xf0] }
 0x1b7   :  { %vm9190_vm13 = vmor %vm975_vm12, %vm976_vm11  ;;  %v6317_v38 = vor.u32 %v8158_v2, %v6316_v28  ;;  %v8318_v23 = vld [vmem:[#allocation11 + $0x99c] sm:$0xf0]  ;;  %vm5452_vm11 = vcmask 1024  }
 0x1b8   :  { %v971_v55 = vmul.f32 %v8590_v42, %v970_v47  ;;  %v908_v47 = vld [vmem:[#allocation10] sm:$0x1]  ;;  %v7212_v25 = vld [vmem:[#allocation11 + $0xb80] sm:$0xf]  ;;  %v6957_v30 = vor.u32 %v8318_v23, %v6956_v22 }
 0x1b9   :  { %4123 = vmatpush.bf16.msra.mxu2 %v6317_v38  ;;  %v8382_v26 = vld [vmem:[#allocation11 + $0xb9c] sm:$0xf0]  ;;  %4112 = vmatpush.bf16.msrb.mxu1 %v5997_v10 }
 0x1ba   :  { %v972_v0 = vmul.f32 0.5, %v971_v55  ;;  %v6541_v55 = vor.u32 %v8214_v46, %v6540_v45  ;;  %v7468_v27 = vld [vmem:[#allocation11 + $0xd80] sm:$0xf] }
 0x1bb   :  { %v8446_v28 = vld [vmem:[#allocation11 + $0xd9c] sm:$0xf0] }
 0x1bc   :  { %v973_v18 = vsub.f32 1.5, %v972_v0  ;;  %v5741_v0 = vor.u32 %v8014_v51, %v5740_v49  ;;  %4137 = vmatpush.bf16.msra.mxu3 %v6541_v55  ;;  %v7724_v2 = vld [vmem:[#allocation11 + $0xf80] sm:$0xf]  ;;  %v7469_v35 = vor.u32 %v8446_v28, %v7468_v27 }
 0x1bd   :  { %4124 = vmatpush.bf16.msra.mxu2 %v6285_v54  ;;  %v8510_v29 = vld [vmem:[#allocation11 + $0xf9c] sm:$0xf0]  ;;  %4157 = vmatpush.bf16.msra.mxu1 %v7245_v21 }
 0x1be   :  { %v974_v58 = vmul.f32 %v8590_v42, %v973_v18  ;;  %4099 = vmatpush.bf16.msrb.mxu0 %v5741_v0  ;;  %v6924_v32 = vld [vmem:[#allocation11 + $0x940] sm:$0xf]  ;;  %v7725_v36 = vor.u32 %v8510_v29, %v7724_v2 }
 0x1bf   :  { %v8310_v34 = vld [vmem:[#allocation11 + $0x95c] sm:$0xf0] }
 0x1c0   :  { %v978_v31 = vsel %vm9190_vm13, %v8590_v42, %v974_v58  ;;  %v7501_v58 = vor.u32 %v8454_v14, %v7500_v8  ;;  %v7180_v37 = vld [vmem:[#allocation11 + $0xb40] sm:$0xf] }
 0x1c1   :  { %v9196_v33 = vmul.f32 %v978_v31, %v907_v17  ;;  %v6253_v17 = vor.u32 %v8142_v57, %v6252_v56  ;;  %v7213_v31 = vor.u32 %v8382_v26, %v7212_v25  ;;  %v8374_v38 = vld [vmem:[#allocation11 + $0xb5c] sm:$0xf0] }
 0x1c2   :  { %4144 = vmatpush.bf16.msra.mxu0 %v6989_v20  ;;  %v7436_v39 = vld [vmem:[#allocation11 + $0xd40] sm:$0xf] }
 0x1c3   :  { %v983_v44 = vperm.slane %v9196_v33, 0  ;;  %v980_v42 = vmul.f32 %v9196_v33, %v9180_v59  ;;  %v6508_v59 = vld [vmem:[#allocation11 + $0x600] sm:$0xf]  ;;  %4125 = vmatpush.bf16.msra.mxu2 %v6253_v17  ;;  %4158 = vmatpush.bf16.msra.mxu1 %v7213_v31 }
 0x1c4   :  { %v6509_v18 = vor.u32 %v8206_v61, %v6508_v59  ;;  %v8438_v40 = vld [vmem:[#allocation11 + $0xd5c] sm:$0xf0] }
 0x1c5   :  { %984 = vrot.lane.b32.xlu1 %v983_v44, %s8955_s28  ;;  %v9202_v60 = vsub.f32 %v908_v47, %v980_v42  ;;  %v7692_v41 = vld [vmem:[#allocation11 + $0xf40] sm:$0xf]  ;;  %v6925_v44 = vor.u32 %v8310_v34, %v6924_v32  ;;  %v7181_v42 = vor.u32 %v8374_v38, %v7180_v37  ;;  %v7437_v47 = vor.u32 %v8438_v40, %v7436_v39 }
 0x1c6   :  { %4138 = vmatpush.bf16.msra.mxu3 %v6509_v18  ;;  %v8502_v43 = vld [vmem:[#allocation11 + $0xf5c] sm:$0xf0]  ;;  %4145 = vmatpush.bf16.msra.mxu0 %v6957_v30 }
 0x1c7   :  { %v989_v19 = vperm.slane %v9202_v60, 0  ;;  %4170 = vmatpush.bf16.msrb.mxu2 %v7501_v58  ;;  %v6892_v45 = vld [vmem:[#allocation11 + $0x900] sm:$0xf]  ;;  %v7693_v48 = vor.u32 %v8502_v43, %v7692_v41  ;;  %4159 = vmatpush.bf16.msra.mxu1 %v7181_v42 }
 0x1c8   :  { %v8302_v46 = vld [vmem:[#allocation11 + $0x91c] sm:$0xf0] }
 0x1c9   :  { %v7148_v49 = vld [vmem:[#allocation11 + $0xb00] sm:$0xf]  ;;  %v6893_v55 = vor.u32 %v8302_v46, %v6892_v45 }
 0x1ca   :  { %4183 = vmatpush.bf16.msrb.mxu3 %v7757_v24  ;;  %v8366_v50 = vld [vmem:[#allocation11 + $0xb1c] sm:$0xf0]  ;;  %4146 = vmatpush.bf16.msra.mxu0 %v6925_v44 }
 0x1cb   :  { %4171 = vmatpush.bf16.msrb.mxu2 %v7469_v35  ;;  %v7404_v51 = vld [vmem:[#allocation11 + $0xd00] sm:$0xf]  ;;  %v7149_v56 = vor.u32 %v8366_v50, %v7148_v49 }
 0x1cc   :  { %v8430_v52 = vld [vmem:[#allocation11 + $0xd1c] sm:$0xf0] }
 0x1cd   :  { %990 = vrot.lane.b32.xlu1 %v989_v19, %s8955_s28  ;;  %v7660_v53 = vld [vmem:[#allocation11 + $0xf00] sm:$0xf]  ;;  %v7405_v57 = vor.u32 %v8430_v52, %v7404_v51  ;;  %4160 = vmatpush.bf16.msra.mxu1 %v7149_v56 }
 0x1ce   :  { %4184 = vmatpush.bf16.msrb.mxu3 %v7725_v36  ;;  %v8494_v54 = vld [vmem:[#allocation11 + $0xf1c] sm:$0xf0]  ;;  %4147 = vmatpush.bf16.msra.mxu0 %v6893_v55 }
 0x1cf   :  { %4172 = vmatpush.bf16.msrb.mxu2 %v7437_v47  ;;  %v7661_v59 = vor.u32 %v8494_v54, %v7660_v53  ;;  %v6860_v61 = vld [vmem:[#allocation11 + $0x8c0] sm:$0xf] }
 0x1d0   :  { %v8294_v62 = vld [vmem:[#allocation11 + $0x8dc] sm:$0xf0] }
 0x1d1   :  { %v7116_v63 = vld [vmem:[#allocation11 + $0xac0] sm:$0xf]  ;;  %v6861_v0 = vor.u32 %v8294_v62, %v6860_v61  ;;  %v8066_v61 = vld [vmem:[#allocation11 + $0x1c4] sm:$0xf] }
 0x1d2   :  { %4185 = vmatpush.bf16.msrb.mxu3 %v7693_v48  ;;  %v8358_v1 = vld [vmem:[#allocation11 + $0xadc] sm:$0xf0]  ;;  %v5966_v62 = vld [vmem:[#allocation11 + $0x1e0] sm:$0xf0] }
 0x1d3   :  { %4173 = vmatpush.bf16.msrb.mxu2 %v7405_v57  ;;  %v7372_v4 = vld [vmem:[#allocation11 + $0xcc0] sm:$0xf]  ;;  %v7117_v10 = vor.u32 %v8358_v1, %v7116_v63  ;;  %4148 = vmatpush.bf16.msra.mxu0 %v6861_v0 }
 0x1d4   :  { %v8422_v8 = vld [vmem:[#allocation11 + $0xcdc] sm:$0xf0] }
 0x1d5   :  { %v7373_v14 = vor.u32 %v8422_v8, %v7372_v4  ;;  %v7628_v15 = vld [vmem:[#allocation11 + $0xec0] sm:$0xf]  ;;  %4161 = vmatpush.bf16.msra.mxu1 %v7117_v10  ;;  %v8130_v4 = vld [vmem:[#allocation11 + $0x3c4] sm:$0xf] }
 0x1d6   :  { %4186 = vmatpush.bf16.msrb.mxu3 %v7661_v59  ;;  %v8486_v16 = vld [vmem:[#allocation11 + $0xedc] sm:$0xf0]  ;;  %v6222_v8 = vld [vmem:[#allocation11 + $0x3e0] sm:$0xf0] }
 0x1d7   :  { %v6828_v17 = vld [vmem:[#allocation11 + $0x880] sm:$0xf]  ;;  %v7629_v18 = vor.u32 %v8486_v16, %v7628_v15  ;;  %4174 = vmatpush.bf16.msrb.mxu2 %v7373_v14  ;;  %v8194_v10 = vld [vmem:[#allocation11 + $0x5c4] sm:$0xf] }
 0x1d8   :  { %v8286_v19 = vld [vmem:[#allocation11 + $0x89c] sm:$0xf0]  ;;  %v6478_v16 = vld [vmem:[#allocation11 + $0x5e0] sm:$0xf0] }
 0x1d9   :  { %v7084_v20 = vld [vmem:[#allocation11 + $0xa80] sm:$0xf]  ;;  %v6829_v22 = vor.u32 %v8286_v19, %v6828_v17  ;;  %v8258_v17 = vld [vmem:[#allocation11 + $0x7c4] sm:$0xf]  ;;  %v6225_v19 = vor.u32 %v8130_v4, %v6222_v8 }
 0x1da   :  { %v8350_v21 = vld [vmem:[#allocation11 + $0xa9c] sm:$0xf0]  ;;  %4187 = vmatpush.bf16.msrb.mxu3 %v7629_v18  ;;  %v5969_v18 = vor.u32 %v8066_v61, %v5966_v62 }
 0x1db   :  { %v7085_v23 = vor.u32 %v8350_v21, %v7084_v20  ;;  %v7340_v58 = vld [vmem:[#allocation11 + $0xc80] sm:$0xf]  ;;  %4149 = vmatpush.bf16.msra.mxu0 %v6829_v22  ;;  %v8058_v22 = vld [vmem:[#allocation11 + $0x184] sm:$0xf] }
 0x1dc   :  { %v8414_v24 = vld [vmem:[#allocation11 + $0xc9c] sm:$0xf0] }
 0x1dd   :  { %v7596_v25 = vld [vmem:[#allocation11 + $0xe80] sm:$0xf]  ;;  %v7341_v26 = vor.u32 %v8414_v24, %v7340_v58  ;;  %4162 = vmatpush.bf16.msra.mxu1 %v7085_v23  ;;  %v5934_v23 = vld [vmem:[#allocation11 + $0x1a0] sm:$0xf0]  ;;  %v6481_v58 = vor.u32 %v8194_v10, %v6478_v16 }
 0x1de   :  { %v8478_v27 = vld [vmem:[#allocation11 + $0xe9c] sm:$0xf0]  ;;  %v8098_v10 = vld [vmem:[#allocation11 + $0x2c4] sm:$0xf] }
 0x1df   :  { %v7597_v28 = vor.u32 %v8478_v27, %v7596_v25  ;;  %4175 = vmatpush.bf16.msrb.mxu2 %v7341_v26  ;;  %v6796_v2 = vld [vmem:[#allocation11 + $0x840] sm:$0xf]  ;;  %v8122_v25 = vld [vmem:[#allocation11 + $0x384] sm:$0xf] }
 0x1e0   :  { %v8278_v29 = vld [vmem:[#allocation11 + $0x85c] sm:$0xf0]  ;;  %v6190_v26 = vld [vmem:[#allocation11 + $0x3a0] sm:$0xf0] }
 0x1e1   :  { %v7052_v30 = vld [vmem:[#allocation11 + $0xa40] sm:$0xf]  ;;  %4188 = vmatpush.bf16.msrb.mxu3 %v7597_v28  ;;  %v6797_v31 = vor.u32 %v8278_v29, %v6796_v2  ;;  %v8186_v27 = vld [vmem:[#allocation11 + $0x584] sm:$0xf] }
 0x1e2   :  { %v8342_v32 = vld [vmem:[#allocation11 + $0xa5c] sm:$0xf0]  ;;  %v6446_v28 = vld [vmem:[#allocation11 + $0x5a0] sm:$0xf0] }
 0x1e3   :  { %v7308_v34 = vld [vmem:[#allocation11 + $0xc40] sm:$0xf]  ;;  %v7053_v36 = vor.u32 %v8342_v32, %v7052_v30  ;;  %4150 = vmatpush.bf16.msra.mxu0 %v6797_v31  ;;  %v8250_v2 = vld [vmem:[#allocation11 + $0x784] sm:$0xf]  ;;  %v5937_v30 = vor.u32 %v8058_v22, %v5934_v23  ;;  %v6193_v31 = vor.u32 %v8122_v25, %v6190_v26 }
 0x1e4   :  { %v8406_v35 = vld [vmem:[#allocation11 + $0xc5c] sm:$0xf0]  ;;  %v6702_v29 = vld [vmem:[#allocation11 + $0x7a0] sm:$0xf0] }
 0x1e5   :  { %v7309_v37 = vor.u32 %v8406_v35, %v7308_v34  ;;  %v7564_v38 = vld [vmem:[#allocation11 + $0xe40] sm:$0xf]  ;;  %4163 = vmatpush.bf16.msra.mxu1 %v7053_v36  ;;  %v8050_v32 = vld [vmem:[#allocation11 + $0x144] sm:$0xf]  ;;  %v6449_v35 = vor.u32 %v8186_v27, %v6446_v28  ;;  %v6705_v36 = vor.u32 %v8250_v2, %v6702_v29 }
 0x1e6   :  { %v8470_v39 = vld [vmem:[#allocation11 + $0xe5c] sm:$0xf0]  ;;  %v5902_v34 = vld [vmem:[#allocation11 + $0x160] sm:$0xf0] }
 0x1e7   :  { %v6764_v40 = vld [vmem:[#allocation11 + $0x800] sm:$0xf]  ;;  %v7565_v41 = vor.u32 %v8470_v39, %v7564_v38  ;;  %4176 = vmatpush.bf16.msrb.mxu2 %v7309_v37  ;;  %v8114_v37 = vld [vmem:[#allocation11 + $0x344] sm:$0xf] }
 0x1e8   :  { %v8270_v43 = vld [vmem:[#allocation11 + $0x81c] sm:$0xf0]  ;;  %v6158_v38 = vld [vmem:[#allocation11 + $0x360] sm:$0xf0] }
 0x1e9   :  { %v7020_v44 = vld [vmem:[#allocation11 + $0xa00] sm:$0xf]  ;;  %v6765_v45 = vor.u32 %v8270_v43, %v6764_v40  ;;  %4189 = vmatpush.bf16.msrb.mxu3 %v7565_v41  ;;  %v8178_v39 = vld [vmem:[#allocation11 + $0x544] sm:$0xf] }
 0x1ea   :  { %v8334_v42 = vld [vmem:[#allocation11 + $0xa1c] sm:$0xf0]  ;;  %v6414_v40 = vld [vmem:[#allocation11 + $0x560] sm:$0xf0] }
 0x1eb   :  { %v7021_v46 = vor.u32 %v8334_v42, %v7020_v44  ;;  %v7276_v47 = vld [vmem:[#allocation11 + $0xc00] sm:$0xf]  ;;  %4151 = vmatpush.bf16.msra.mxu0 %v6765_v45  ;;  %v8242_v41 = vld [vmem:[#allocation11 + $0x744] sm:$0xf]  ;;  %v5905_v42 = vor.u32 %v8050_v32, %v5902_v34  ;;  %v6161_v45 = vor.u32 %v8114_v37, %v6158_v38 }
 0x1ec   :  { %v8398_v48 = vld [vmem:[#allocation11 + $0xc1c] sm:$0xf0]  ;;  %v6670_v43 = vld [vmem:[#allocation11 + $0x760] sm:$0xf0] }
 0x1ed   :  { %v7532_v49 = vld [vmem:[#allocation11 + $0xe00] sm:$0xf]  ;;  %v7277_v50 = vor.u32 %v8398_v48, %v7276_v47  ;;  %4164 = vmatpush.bf16.msra.mxu1 %v7021_v46  ;;  %v8042_v44 = vld [vmem:[#allocation11 + $0x104] sm:$0xf] }
 0x1ee   :  { %v8462_v51 = vld [vmem:[#allocation11 + $0xe1c] sm:$0xf0]  ;;  %v5870_v46 = vld [vmem:[#allocation11 + $0x120] sm:$0xf0] }
 0x1ef   :  { %v7533_v52 = vor.u32 %v8462_v51, %v7532_v49  ;;  %4177 = vmatpush.bf16.msrb.mxu2 %v7277_v50  ;;  %v8106_v47 = vld [vmem:[#allocation11 + $0x304] sm:$0xf]  ;;  %v6417_v49 = vor.u32 %v8178_v39, %v6414_v40  ;;  %v6673_v50 = vor.u32 %v8242_v41, %v6670_v43 }
 0x1f0   :  { %v6126_v48 = vld [vmem:[#allocation11 + $0x320] sm:$0xf0] }
 0x1f1   :  { %4190 = vmatpush.bf16.msrb.mxu3 %v7533_v52  ;;  %v8170_v51 = vld [vmem:[#allocation11 + $0x504] sm:$0xf]  ;;  %v6129_v61 = vor.u32 %v8106_v47, %v6126_v48 }
 0x1f2   :  { %v6382_v52 = vld [vmem:[#allocation11 + $0x520] sm:$0xf0] }
 0x1f3   :  { %v8026_v22 = vld [vmem:[#allocation11 + $0x84] sm:$0xf] }
 0x1f4   :  { %v5806_v23 = vld [vmem:[#allocation11 + $0xa0] sm:$0xf0] }
 0x1f5   :  { %v8090_v25 = vld [vmem:[#allocation11 + $0x284] sm:$0xf] }
 0x1f6   :  { %v6062_v26 = vld [vmem:[#allocation11 + $0x2a0] sm:$0xf0] }
 0x1f7   :  { %v8154_v27 = vld [vmem:[#allocation11 + $0x484] sm:$0xf] }
 0x1f8   :  { %v6318_v28 = vld [vmem:[#allocation11 + $0x4a0] sm:$0xf0] }
 0x1f9   :  { %v8218_v2 = vld [vmem:[#allocation11 + $0x684] sm:$0xf] }
 0x1fa   :  { %v6574_v29 = vld [vmem:[#allocation11 + $0x6a0] sm:$0xf0] }
 0x1fb   :  { %v8018_v32 = vld [vmem:[#allocation11 + $0x44] sm:$0xf] }
 0x1fc   :  { %v5774_v34 = vld [vmem:[#allocation11 + $0x60] sm:$0xf0] }
 0x1fd   :  { %v8082_v37 = vld [vmem:[#allocation11 + $0x244] sm:$0xf] }
 0x1fe   :  { %v6030_v38 = vld [vmem:[#allocation11 + $0x260] sm:$0xf0] }
 0x1ff   :  { %v8146_v39 = vld [vmem:[#allocation11 + $0x444] sm:$0xf] }
 0x200   :  { %v6286_v40 = vld [vmem:[#allocation11 + $0x460] sm:$0xf0] }
 0x201   :  { %v8210_v41 = vld [vmem:[#allocation11 + $0x644] sm:$0xf] }
 0x202   :  { %v6542_v43 = vld [vmem:[#allocation11 + $0x660] sm:$0xf0] }
 0x203   :  { %v8074_v47 = vld [vmem:[#allocation11 + $0x204] sm:$0xf] }
 0x204   :  { %v5998_v48 = vld [vmem:[#allocation11 + $0x220] sm:$0xf0] }
 0x237   :  { %v985_v53 = vpop.permute.xlu1 %984 }
 0x238   :  { %v987_v54 = vsel %vm637_vm0, %v9196_v33, %v985_v53  ;;  %v8234_v53 = vld [vmem:[#allocation11 + $0x704] sm:$0xf] }
 0x239   :  { %v9208_v55 = vperm.slane %v987_v54, 0  ;;  %v6638_v54 = vld [vmem:[#allocation11 + $0x720] sm:$0xf0] }
 0x23b   :  { %v995_v59 = vmul.f32 %v9208_v55, %v9150_v11  ;;  %v996_v0 = vmul.f32 %v9208_v55, %v9146_v9  ;;  %v997_v1 = vmul.f32 %v9208_v55, %v9142_v6  ;;  %v998_v33 = vmul.f32 %v9208_v55, %v9152_v12  ;;  %v6734_v9 = vld [vmem:[#allocation11 + $0x7e0] sm:$0xf0] }
 0x23c   :  { %v6737_v24 = vor.u32 %v8258_v17, %v6734_v9  ;;  %v1001_v62 = vmul.f32 %v9208_v55, %v9138_v3 }
 0x23f   :  { %v991_v56 = vpop.permute.xlu1 %990 }
 0x240   :  { %v993_v57 = vsel %vm637_vm0, %v9202_v60, %v991_v56  ;;  %v999_v56 = vmul.f32 %v9208_v55, %v9140_v5  ;;  %v5838_v5 = vld [vmem:[#allocation11 + $0xe0] sm:$0xf0] }
 0x241   :  { %v9214_v63 = vperm.slane %v993_v57, 0  ;;  %v1000_v57 = vmul.f32 %v9208_v55, %v9154_v13  ;;  %v6641_v13 = vor.u32 %v8234_v53, %v6638_v54  ;;  %v8202_v53 = vld [vmem:[#allocation11 + $0x604] sm:$0xf] }
 0x242   :  { %v6510_v54 = vld [vmem:[#allocation11 + $0x620] sm:$0xf0] }
 0x243   :  { %v1004_v60 = vadd.f32 %v9214_v63, %v995_v59  ;;  %v1005_v11 = vadd.f32 %v9214_v63, %v996_v0  ;;  %v1006_v14 = vadd.f32 %v9214_v63, %v997_v1  ;;  %v1007_v15 = vadd.f32 %v9214_v63, %v998_v33  ;;  %v8034_v1 = vld [vmem:[#allocation11 + $0xc4] sm:$0xf] }
 0x244   :  { %v5873_v59 = vor.u32 %v8042_v44, %v5870_v46  ;;  %v1002_v0 = vmul.f32 %v9208_v55, %v9144_v7  ;;  %v6385_v33 = vor.u32 %v8170_v51, %v6382_v52  ;;  %v1008_v4 = vadd.f32 %v9214_v63, %v999_v56  ;;  %v6350_v7 = vld [vmem:[#allocation11 + $0x4e0] sm:$0xf0] }
 0x245   :  { %v9226_v6 = vpack.c.bf16 %v1004_v60, %v1004_v60  ;;  %v9228_v20 = vpack.c.bf16 %v1005_v11, %v1005_v11  ;;  %v9230_v12 = vpack.c.bf16 %v1006_v14, %v1006_v14  ;;  %v9232_v21 = vpack.c.bf16 %v1007_v15, %v1007_v15  ;;  %v6094_v60 = vld [vmem:[#allocation11 + $0x2e0] sm:$0xf0] }
 0x246   :  { %v1009_v8 = vadd.f32 %v9214_v63, %v1000_v57  ;;  %v1010_v11 = vadd.f32 %v9214_v63, %v1001_v62  ;;  %v1011_v3 = vadd.f32 %v9214_v63, %v1002_v0  ;;  %v8162_v14 = vld [vmem:[#allocation11 + $0x4c4] sm:$0xf]  ;;  %v5841_v16 = vor.u32 %v8034_v1, %v5838_v5 }
 0x247   :  { %4100 = vmatmul.bf16.vlgmr.msrb.gmra.mxu0 %v9226_v6  ;;  %4113 = vmatmul.bf16.vlgmr.msrb.gmra.mxu1 %v9228_v20  ;;  %v8226_v55 = vld [vmem:[#allocation11 + $0x6c4] sm:$0xf]  ;;  %v6097_v17 = vor.u32 %v8098_v10, %v6094_v60  ;;  %v9250_v9 = vpack.c.bf16 %v1008_v4, %v1008_v4  ;;  %v6001_v1 = vor.u32 %v8074_v47, %v5998_v48 }
 0x248   :  { %4126 = vmatmul.bf16.vlgmr.msra.gmra.mxu2 %v9230_v12  ;;  %4139 = vmatmul.bf16.vlgmr.msra.gmra.mxu3 %v9232_v21  ;;  %v6606_v15 = vld [vmem:[#allocation11 + $0x6e0] sm:$0xf0]  ;;  %v9256_v63 = vpack.c.bf16 %v1011_v3, %v1011_v3  ;;  %v6513_v10 = vor.u32 %v8202_v53, %v6510_v54 }
 0x249   :  { %4196 = vmatpush.bf16.msrb.mxu0 %v5969_v18  ;;  %4209 = vmatpush.bf16.msrb.mxu1 %v6225_v19  ;;  %v9252_v18 = vpack.c.bf16 %v1009_v8, %v1009_v8  ;;  %v6353_v19 = vor.u32 %v8162_v14, %v6350_v7  ;;  %v8010_v44 = vld [vmem:[#allocation11 + $0x4] sm:$0xf] }
 0x24a   :  { %4222 = vmatpush.bf16.msra.mxu2 %v6481_v58  ;;  %4235 = vmatpush.bf16.msra.mxu3 %v6737_v24  ;;  %v9254_v58 = vpack.c.bf16 %v1010_v11, %v1010_v11  ;;  %v6609_v24 = vor.u32 %v8226_v55, %v6606_v15  ;;  %v5742_v46 = vld [vmem:[#allocation11 + $0x20] sm:$0xf0] }
 0x24b   :  { %v8138_v51 = vld [vmem:[#allocation11 + $0x404] sm:$0xf]  ;;  %v5745_v0 = vor.u32 %v8010_v44, %v5742_v46 }
 0x24c   :  { %v6254_v52 = vld [vmem:[#allocation11 + $0x420] sm:$0xf0] }
 0x24d   :  { %4197 = vmatpush.bf16.msrb.mxu0 %v5937_v30  ;;  %4210 = vmatpush.bf16.msrb.mxu1 %v6193_v31  ;;  %v5809_v30 = vor.u32 %v8026_v22, %v5806_v23  ;;  %v6065_v31 = vor.u32 %v8090_v25, %v6062_v26  ;;  %v8322_v56 = vld [vmem:[#allocation11 + $0x9c4] sm:$0xf]  ;;  %v6257_v5 = vor.u32 %v8138_v51, %v6254_v52 }
 0x24e   :  { %4223 = vmatpush.bf16.msra.mxu2 %v6449_v35  ;;  %4236 = vmatpush.bf16.msra.mxu3 %v6705_v36  ;;  %v6321_v35 = vor.u32 %v8154_v27, %v6318_v28  ;;  %v6577_v36 = vor.u32 %v8218_v2, %v6574_v29  ;;  %v6990_v57 = vld [vmem:[#allocation11 + $0x9e0] sm:$0xf0] }
 0x24f   :  { %v8450_v62 = vld [vmem:[#allocation11 + $0xdc4] sm:$0xf]  ;;  %v6993_v60 = vor.u32 %v8322_v56, %v6990_v57 }
 0x250   :  { %v8514_v4 = vld [vmem:[#allocation11 + $0xfc4] sm:$0xf] }
 0x251   :  { %4198 = vmatpush.bf16.msrb.mxu0 %v5905_v42  ;;  %4211 = vmatpush.bf16.msrb.mxu1 %v6161_v45  ;;  %v5777_v42 = vor.u32 %v8018_v32, %v5774_v34  ;;  %v6033_v45 = vor.u32 %v8082_v37, %v6030_v38  ;;  %v7758_v8 = vld [vmem:[#allocation11 + $0xfe0] sm:$0xf0] }
 0x252   :  { %4224 = vmatpush.bf16.msra.mxu2 %v6417_v49  ;;  %4237 = vmatpush.bf16.msra.mxu3 %v6673_v50  ;;  %v6289_v49 = vor.u32 %v8146_v39, %v6286_v40  ;;  %v6545_v50 = vor.u32 %v8210_v41, %v6542_v43  ;;  %v8314_v11 = vld [vmem:[#allocation11 + $0x984] sm:$0xf]  ;;  %v7761_v7 = vor.u32 %v8514_v4, %v7758_v8 }
 0x253   :  { %v6958_v3 = vld [vmem:[#allocation11 + $0x9a0] sm:$0xf0] }
 0x254   :  { %v8378_v55 = vld [vmem:[#allocation11 + $0xb84] sm:$0xf]  ;;  %v6961_v23 = vor.u32 %v8314_v11, %v6958_v3 }
 0x255   :  { %4199 = vmatpush.bf16.msrb.mxu0 %v5873_v59  ;;  %4212 = vmatpush.bf16.msrb.mxu1 %v6129_v61  ;;  %v8386_v59 = vld [vmem:[#allocation11 + $0xbc4] sm:$0xf] }
 0x256   :  { %4225 = vmatpush.bf16.msra.mxu2 %v6385_v33  ;;  %4238 = vmatpush.bf16.msra.mxu3 %v6641_v13  ;;  %v7246_v61 = vld [vmem:[#allocation11 + $0xbe0] sm:$0xf0] }
 0x257   :  { %4152 = vmatmul.bf16.vlgmr.msra.gmra.mxu0 %v9250_v9  ;;  %4165 = vmatmul.bf16.vlgmr.msra.gmra.mxu1 %v9252_v18  ;;  %v7502_v33 = vld [vmem:[#allocation11 + $0xde0] sm:$0xf0]  ;;  %v7249_v13 = vor.u32 %v8386_v59, %v7246_v61 }
 0x258   :  { %4178 = vmatmul.bf16.vlgmr.msrb.gmra.mxu2 %v9254_v58  ;;  %4191 = vmatmul.bf16.vlgmr.msrb.gmra.mxu3 %v9256_v63  ;;  %v7505_v14 = vor.u32 %v8450_v62, %v7502_v33  ;;  %v7214_v15 = vld [vmem:[#allocation11 + $0xba0] sm:$0xf0] }
 0x259   :  { %4200 = vmatpush.bf16.msrb.mxu0 %v5841_v16  ;;  %4213 = vmatpush.bf16.msrb.mxu1 %v6097_v17  ;;  %v8442_v16 = vld [vmem:[#allocation11 + $0xd84] sm:$0xf] }
 0x25a   :  { %4226 = vmatpush.bf16.msra.mxu2 %v6353_v19  ;;  %4239 = vmatpush.bf16.msra.mxu3 %v6609_v24  ;;  %v7470_v17 = vld [vmem:[#allocation11 + $0xda0] sm:$0xf0]  ;;  %v7217_v24 = vor.u32 %v8378_v55, %v7214_v15 }
 0x25b   :  { %v8506_v19 = vld [vmem:[#allocation11 + $0xf84] sm:$0xf]  ;;  %v7473_v27 = vor.u32 %v8442_v16, %v7470_v17 }
 0x25c   :  { %v7726_v22 = vld [vmem:[#allocation11 + $0xfa0] sm:$0xf0] }
 0x25d   :  { %4201 = vmatpush.bf16.msrb.mxu0 %v5809_v30  ;;  %4214 = vmatpush.bf16.msrb.mxu1 %v6065_v31  ;;  %v8306_v25 = vld [vmem:[#allocation11 + $0x944] sm:$0xf]  ;;  %v7729_v28 = vor.u32 %v8506_v19, %v7726_v22 }
 0x25e   :  { %4227 = vmatpush.bf16.msra.mxu2 %v6321_v35  ;;  %4240 = vmatpush.bf16.msra.mxu3 %v6577_v36  ;;  %v6926_v26 = vld [vmem:[#allocation11 + $0x960] sm:$0xf0] }
 0x25f   :  { %v8370_v2 = vld [vmem:[#allocation11 + $0xb44] sm:$0xf]  ;;  %v6929_v35 = vor.u32 %v8306_v25, %v6926_v26 }
 0x260   :  { %v7182_v29 = vld [vmem:[#allocation11 + $0xb60] sm:$0xf0] }
 0x261   :  { %4202 = vmatpush.bf16.msrb.mxu0 %v5777_v42  ;;  %4215 = vmatpush.bf16.msrb.mxu1 %v6033_v45  ;;  %v8434_v30 = vld [vmem:[#allocation11 + $0xd44] sm:$0xf]  ;;  %v7185_v36 = vor.u32 %v8370_v2, %v7182_v29 }
 0x262   :  { %4228 = vmatpush.bf16.msra.mxu2 %v6289_v49  ;;  %4241 = vmatpush.bf16.msra.mxu3 %v6545_v50  ;;  %v7438_v31 = vld [vmem:[#allocation11 + $0xd60] sm:$0xf0] }
 0x263   :  { %v8498_v32 = vld [vmem:[#allocation11 + $0xf44] sm:$0xf]  ;;  %v7441_v39 = vor.u32 %v8434_v30, %v7438_v31 }
 0x264   :  { %v7694_v34 = vld [vmem:[#allocation11 + $0xf60] sm:$0xf0] }
 0x265   :  { %4203 = vmatpush.bf16.msrb.mxu0 %v5745_v0  ;;  %4216 = vmatpush.bf16.msrb.mxu1 %v6001_v1  ;;  %v8298_v37 = vld [vmem:[#allocation11 + $0x904] sm:$0xf]  ;;  %v7697_v40 = vor.u32 %v8498_v32, %v7694_v34 }
 0x266   :  { %4229 = vmatpush.bf16.msra.mxu2 %v6257_v5  ;;  %4242 = vmatpush.bf16.msra.mxu3 %v6513_v10  ;;  %v6894_v38 = vld [vmem:[#allocation11 + $0x920] sm:$0xf0] }
 0x267   :  { %v8362_v41 = vld [vmem:[#allocation11 + $0xb04] sm:$0xf]  ;;  %v6897_v47 = vor.u32 %v8298_v37, %v6894_v38 }
 0x268   :  { %4204 = vmatmul.bf16.vlgmr.msrb.gmra.mxu0 %v9226_v6  ;;  %4217 = vmatmul.bf16.vlgmr.msrb.gmra.mxu1 %v9228_v20  ;;  %v7150_v43 = vld [vmem:[#allocation11 + $0xb20] sm:$0xf0] }
 0x269   :  { %4248 = vmatpush.bf16.msra.mxu0 %v6993_v60  ;;  %4261 = vmatpush.bf16.msra.mxu1 %v7249_v13  ;;  %v8426_v44 = vld [vmem:[#allocation11 + $0xd04] sm:$0xf]  ;;  %v7153_v48 = vor.u32 %v8362_v41, %v7150_v43  ;;  %v6228_v41 = vld [vmem:[#allocation11 + $0x3c8] sm:$0xf] }
 0x26a   :  { %4274 = vmatpush.bf16.msrb.mxu2 %v7505_v14  ;;  %4287 = vmatpush.bf16.msrb.mxu3 %v7761_v7  ;;  %v7406_v42 = vld [vmem:[#allocation11 + $0xd20] sm:$0xf0]  ;;  %v8135_v43 = vld [vmem:[#allocation11 + $0x3e4] sm:$0xf0] }
 0x26b   :  { %4230 = vmatmul.bf16.vlgmr.msra.gmra.mxu2 %v9230_v12  ;;  %4243 = vmatmul.bf16.vlgmr.msra.gmra.mxu3 %v9232_v21  ;;  %v8490_v45 = vld [vmem:[#allocation11 + $0xf04] sm:$0xf]  ;;  %v7409_v51 = vor.u32 %v8426_v44, %v7406_v42  ;;  %v6484_v44 = vld [vmem:[#allocation11 + $0x5c8] sm:$0xf] }
 0x26c   :  { %v7662_v46 = vld [vmem:[#allocation11 + $0xf20] sm:$0xf0] }
 0x26d   :  { %4249 = vmatpush.bf16.msra.mxu0 %v6961_v23  ;;  %4262 = vmatpush.bf16.msra.mxu1 %v7217_v24  ;;  %v8290_v49 = vld [vmem:[#allocation11 + $0x8c4] sm:$0xf]  ;;  %v7665_v52 = vor.u32 %v8490_v45, %v7662_v46  ;;  %v8199_v46 = vld [vmem:[#allocation11 + $0x5e4] sm:$0xf0] }
 0x26e   :  { %4275 = vmatpush.bf16.msrb.mxu2 %v7473_v27  ;;  %4288 = vmatpush.bf16.msrb.mxu3 %v7729_v28  ;;  %v6862_v50 = vld [vmem:[#allocation11 + $0x8e0] sm:$0xf0] }
 0x26f   :  { %v8354_v53 = vld [vmem:[#allocation11 + $0xac4] sm:$0xf]  ;;  %v6865_v62 = vor.u32 %v8290_v49, %v6862_v50 }
 0x270   :  { %v7118_v54 = vld [vmem:[#allocation11 + $0xae0] sm:$0xf0] }
 0x271   :  { %4250 = vmatpush.bf16.msra.mxu0 %v6929_v35  ;;  %4263 = vmatpush.bf16.msra.mxu1 %v7185_v36  ;;  %v8418_v56 = vld [vmem:[#allocation11 + $0xcc4] sm:$0xf]  ;;  %v7121_v0 = vor.u32 %v8354_v53, %v7118_v54  ;;  %v5940_v53 = vld [vmem:[#allocation11 + $0x188] sm:$0xf] }
 0x272   :  { %4276 = vmatpush.bf16.msrb.mxu2 %v7441_v39  ;;  %4289 = vmatpush.bf16.msrb.mxu3 %v7697_v40  ;;  %v7374_v57 = vld [vmem:[#allocation11 + $0xce0] sm:$0xf0]  ;;  %v5972_v39 = vld [vmem:[#allocation11 + $0x1c8] sm:$0xf] }
 0x273   :  { %v8482_v59 = vld [vmem:[#allocation11 + $0xec4] sm:$0xf]  ;;  %v7377_v4 = vor.u32 %v8418_v56, %v7374_v57  ;;  %v8071_v40 = vld [vmem:[#allocation11 + $0x1e4] sm:$0xf0]  ;;  %v6485_v56 = vor.u32 %v8199_v46, %v6484_v44 }
 0x274   :  { %v7630_v61 = vld [vmem:[#allocation11 + $0xee0] sm:$0xf0]  ;;  %v8063_v54 = vld [vmem:[#allocation11 + $0x1a4] sm:$0xf0] }
 0x275   :  { %4251 = vmatpush.bf16.msra.mxu0 %v6897_v47  ;;  %4264 = vmatpush.bf16.msra.mxu1 %v7153_v48  ;;  %v8282_v1 = vld [vmem:[#allocation11 + $0x884] sm:$0xf]  ;;  %v7633_v8 = vor.u32 %v8482_v59, %v7630_v61  ;;  %v6740_v47 = vld [vmem:[#allocation11 + $0x7c8] sm:$0xf] }
 0x276   :  { %v6830_v33 = vld [vmem:[#allocation11 + $0x8a0] sm:$0xf0]  ;;  %4277 = vmatpush.bf16.msrb.mxu2 %v7409_v51  ;;  %4290 = vmatpush.bf16.msrb.mxu3 %v7665_v52  ;;  %v8263_v48 = vld [vmem:[#allocation11 + $0x7e4] sm:$0xf0]  ;;  %v5973_v51 = vor.u32 %v8071_v40, %v5972_v39  ;;  %v6229_v52 = vor.u32 %v8135_v43, %v6228_v41 }
 0x277   :  { %v8346_v5 = vld [vmem:[#allocation11 + $0xa84] sm:$0xf]  ;;  %v6833_v14 = vor.u32 %v8282_v1, %v6830_v33  ;;  %v6741_v57 = vor.u32 %v8263_v48, %v6740_v47  ;;  %v6196_v59 = vld [vmem:[#allocation11 + $0x388] sm:$0xf] }
 0x278   :  { %v7086_v10 = vld [vmem:[#allocation11 + $0xaa0] sm:$0xf0]  ;;  %v8127_v61 = vld [vmem:[#allocation11 + $0x3a4] sm:$0xf0] }
 0x279   :  { %v8410_v60 = vld [vmem:[#allocation11 + $0xc84] sm:$0xf]  ;;  %4252 = vmatpush.bf16.msra.mxu0 %v6865_v62  ;;  %4265 = vmatpush.bf16.msra.mxu1 %v7121_v0  ;;  %v7089_v7 = vor.u32 %v8346_v5, %v7086_v10  ;;  %v6452_v62 = vld [vmem:[#allocation11 + $0x588] sm:$0xf] }
 0x27a   :  { %v7342_v13 = vld [vmem:[#allocation11 + $0xca0] sm:$0xf0]  ;;  %4278 = vmatpush.bf16.msrb.mxu2 %v7377_v4  ;;  %4291 = vmatpush.bf16.msrb.mxu3 %v7633_v8  ;;  %v8191_v0 = vld [vmem:[#allocation11 + $0x5a4] sm:$0xf0]  ;;  %v5941_v4 = vor.u32 %v8063_v54, %v5940_v53  ;;  %v6197_v8 = vor.u32 %v8127_v61, %v6196_v59 }
 0x27b   :  { %v8474_v11 = vld [vmem:[#allocation11 + $0xe84] sm:$0xf]  ;;  %v7345_v16 = vor.u32 %v8410_v60, %v7342_v13  ;;  %v6708_v1 = vld [vmem:[#allocation11 + $0x788] sm:$0xf]  ;;  %v6453_v60 = vor.u32 %v8191_v0, %v6452_v62 }
 0x27c   :  { %v7598_v3 = vld [vmem:[#allocation11 + $0xea0] sm:$0xf0]  ;;  %v8255_v33 = vld [vmem:[#allocation11 + $0x7a4] sm:$0xf0] }
 0x27d   :  { %v8274_v55 = vld [vmem:[#allocation11 + $0x844] sm:$0xf]  ;;  %v7601_v17 = vor.u32 %v8474_v11, %v7598_v3  ;;  %4253 = vmatpush.bf16.msra.mxu0 %v6833_v14  ;;  %4266 = vmatpush.bf16.msra.mxu1 %v7089_v7  ;;  %v5908_v5 = vld [vmem:[#allocation11 + $0x148] sm:$0xf]  ;;  %v6709_v13 = vor.u32 %v8255_v33, %v6708_v1 }
 0x27e   :  { %v6798_v15 = vld [vmem:[#allocation11 + $0x860] sm:$0xf0]  ;;  %4279 = vmatpush.bf16.msrb.mxu2 %v7345_v16  ;;  %v8055_v10 = vld [vmem:[#allocation11 + $0x164] sm:$0xf0] }
 0x27f   :  { %v8338_v19 = vld [vmem:[#allocation11 + $0xa44] sm:$0xf]  ;;  %v6801_v28 = vor.u32 %v8274_v55, %v6798_v15  ;;  %4292 = vmatpush.bf16.msrb.mxu3 %v7601_v17  ;;  %v6164_v11 = vld [vmem:[#allocation11 + $0x348] sm:$0xf]  ;;  %v5909_v16 = vor.u32 %v8055_v10, %v5908_v5 }
 0x280   :  { %v7054_v22 = vld [vmem:[#allocation11 + $0xa60] sm:$0xf0]  ;;  %v8119_v3 = vld [vmem:[#allocation11 + $0x364] sm:$0xf0] }
 0x281   :  { %v8402_v23 = vld [vmem:[#allocation11 + $0xc44] sm:$0xf]  ;;  %v7057_v2 = vor.u32 %v8338_v19, %v7054_v22  ;;  %4254 = vmatpush.bf16.msra.mxu0 %v6801_v28  ;;  %v6420_v14 = vld [vmem:[#allocation11 + $0x548] sm:$0xf]  ;;  %v6165_v17 = vor.u32 %v8119_v3, %v6164_v11 }
 0x282   :  { %v7310_v24 = vld [vmem:[#allocation11 + $0xc60] sm:$0xf0]  ;;  %v8183_v7 = vld [vmem:[#allocation11 + $0x564] sm:$0xf0] }
 0x283   :  { %v8466_v25 = vld [vmem:[#allocation11 + $0xe44] sm:$0xf]  ;;  %v7313_v32 = vor.u32 %v8402_v23, %v7310_v24  ;;  %4267 = vmatpush.bf16.msra.mxu1 %v7057_v2  ;;  %v6676_v55 = vld [vmem:[#allocation11 + $0x748] sm:$0xf]  ;;  %v6421_v23 = vor.u32 %v8183_v7, %v6420_v14 }
 0x284   :  { %v7566_v26 = vld [vmem:[#allocation11 + $0xe60] sm:$0xf0]  ;;  %v8247_v15 = vld [vmem:[#allocation11 + $0x764] sm:$0xf0] }
 0x285   :  { %v8266_v27 = vld [vmem:[#allocation11 + $0x804] sm:$0xf]  ;;  %v7569_v34 = vor.u32 %v8466_v25, %v7566_v26  ;;  %4280 = vmatpush.bf16.msrb.mxu2 %v7313_v32  ;;  %v5876_v19 = vld [vmem:[#allocation11 + $0x108] sm:$0xf]  ;;  %v6677_v24 = vor.u32 %v8247_v15, %v6676_v55 }
 0x286   :  { %v6766_v29 = vld [vmem:[#allocation11 + $0x820] sm:$0xf0]  ;;  %v8047_v22 = vld [vmem:[#allocation11 + $0x124] sm:$0xf0] }
 0x287   :  { %v8330_v30 = vld [vmem:[#allocation11 + $0xa04] sm:$0xf]  ;;  %v6769_v42 = vor.u32 %v8266_v27, %v6766_v29  ;;  %4293 = vmatpush.bf16.msrb.mxu3 %v7569_v34  ;;  %v6132_v25 = vld [vmem:[#allocation11 + $0x308] sm:$0xf] }
 0x288   :  { %v7022_v31 = vld [vmem:[#allocation11 + $0xa20] sm:$0xf0]  ;;  %v8111_v26 = vld [vmem:[#allocation11 + $0x324] sm:$0xf0] }
 0x289   :  { %v8394_v35 = vld [vmem:[#allocation11 + $0xc04] sm:$0xf]  ;;  %v7025_v45 = vor.u32 %v8330_v30, %v7022_v31  ;;  %4255 = vmatpush.bf16.msra.mxu0 %v6769_v42  ;;  %v6388_v27 = vld [vmem:[#allocation11 + $0x508] sm:$0xf]  ;;  %v5877_v30 = vor.u32 %v8047_v22, %v5876_v19  ;;  %v6133_v31 = vor.u32 %v8111_v26, %v6132_v25 }
 0x28a   :  { %v7278_v36 = vld [vmem:[#allocation11 + $0xc20] sm:$0xf0]  ;;  %v8175_v28 = vld [vmem:[#allocation11 + $0x524] sm:$0xf0] }
 0x28b   :  { %v8458_v37 = vld [vmem:[#allocation11 + $0xe04] sm:$0xf]  ;;  %v7281_v49 = vor.u32 %v8394_v35, %v7278_v36  ;;  %4268 = vmatpush.bf16.msra.mxu1 %v7025_v45  ;;  %v6644_v2 = vld [vmem:[#allocation11 + $0x708] sm:$0xf]  ;;  %v6389_v35 = vor.u32 %v8175_v28, %v6388_v27 }
 0x28c   :  { %v7534_v38 = vld [vmem:[#allocation11 + $0xe20] sm:$0xf0]  ;;  %4256 = vmatmul.bf16.vlgmr.msra.gmra.mxu0 %v9250_v9  ;;  %v8239_v29 = vld [vmem:[#allocation11 + $0x724] sm:$0xf0] }
 0x28d   :  { %v7537_v50 = vor.u32 %v8458_v37, %v7534_v38  ;;  %4281 = vmatpush.bf16.msrb.mxu2 %v7281_v49  ;;  %4300 = vmatpush.bf16.msrb.mxu0 %v5973_v51  ;;  %v5844_v32 = vld [vmem:[#allocation11 + $0xc8] sm:$0xf]  ;;  %v6645_v36 = vor.u32 %v8239_v29, %v6644_v2 }
 0x28e   :  { %4269 = vmatmul.bf16.vlgmr.msra.gmra.mxu1 %v9252_v18  ;;  %v8039_v34 = vld [vmem:[#allocation11 + $0xe4] sm:$0xf0] }
 0x28f   :  { %4294 = vmatpush.bf16.msrb.mxu3 %v7537_v50  ;;  %4313 = vmatpush.bf16.msrb.mxu1 %v6229_v52  ;;  %v6100_v37 = vld [vmem:[#allocation11 + $0x2c8] sm:$0xf]  ;;  %v5845_v44 = vor.u32 %v8039_v34, %v5844_v32 }
 0x290   :  { %4282 = vmatmul.bf16.vlgmr.msrb.gmra.mxu2 %v9254_v58  ;;  %v8103_v38 = vld [vmem:[#allocation11 + $0x2e4] sm:$0xf0] }
 0x291   :  { %4326 = vmatpush.bf16.msra.mxu2 %v6485_v56  ;;  %4301 = vmatpush.bf16.msrb.mxu0 %v5941_v4  ;;  %v6356_v39 = vld [vmem:[#allocation11 + $0x4c8] sm:$0xf]  ;;  %v6101_v42 = vor.u32 %v8103_v38, %v6100_v37 }
 0x292   :  { %4295 = vmatmul.bf16.vlgmr.msrb.gmra.mxu3 %v9256_v63  ;;  %v8167_v40 = vld [vmem:[#allocation11 + $0x4e4] sm:$0xf0] }
 0x293   :  { %4339 = vmatpush.bf16.msra.mxu3 %v6741_v57  ;;  %4314 = vmatpush.bf16.msrb.mxu1 %v6197_v8  ;;  %v6612_v41 = vld [vmem:[#allocation11 + $0x6c8] sm:$0xf]  ;;  %v6357_v47 = vor.u32 %v8167_v40, %v6356_v39 }
 0x294   :  { %v8231_v43 = vld [vmem:[#allocation11 + $0x6e4] sm:$0xf0] }
 0x295   :  { %4327 = vmatpush.bf16.msra.mxu2 %v6453_v60  ;;  %4302 = vmatpush.bf16.msrb.mxu0 %v5909_v16  ;;  %v5812_v45 = vld [vmem:[#allocation11 + $0x88] sm:$0xf]  ;;  %v6613_v48 = vor.u32 %v8231_v43, %v6612_v41 }
 0x296   :  { %v8031_v46 = vld [vmem:[#allocation11 + $0xa4] sm:$0xf0] }
 0x297   :  { %4340 = vmatpush.bf16.msra.mxu3 %v6709_v13  ;;  %4315 = vmatpush.bf16.msrb.mxu1 %v6165_v17  ;;  %v6068_v49 = vld [vmem:[#allocation11 + $0x288] sm:$0xf]  ;;  %v5813_v56 = vor.u32 %v8031_v46, %v5812_v45 }
 0x298   :  { %v8095_v50 = vld [vmem:[#allocation11 + $0x2a4] sm:$0xf0] }
 0x299   :  { %4328 = vmatpush.bf16.msra.mxu2 %v6421_v23  ;;  %4303 = vmatpush.bf16.msrb.mxu0 %v5877_v30  ;;  %v6324_v51 = vld [vmem:[#allocation11 + $0x488] sm:$0xf]  ;;  %v6069_v57 = vor.u32 %v8095_v50, %v6068_v49 }
 0x29a   :  { %v8159_v52 = vld [vmem:[#allocation11 + $0x4a4] sm:$0xf0] }
 0x29b   :  { %4341 = vmatpush.bf16.msra.mxu3 %v6677_v24  ;;  %4316 = vmatpush.bf16.msrb.mxu1 %v6133_v31  ;;  %v6580_v53 = vld [vmem:[#allocation11 + $0x688] sm:$0xf]  ;;  %v6325_v62 = vor.u32 %v8159_v52, %v6324_v51 }
 0x29c   :  { %v8223_v54 = vld [vmem:[#allocation11 + $0x6a4] sm:$0xf0] }
 0x29d   :  { %4329 = vmatpush.bf16.msra.mxu2 %v6389_v35  ;;  %4304 = vmatpush.bf16.msrb.mxu0 %v5845_v44  ;;  %v5780_v59 = vld [vmem:[#allocation11 + $0x48] sm:$0xf]  ;;  %v6581_v0 = vor.u32 %v8223_v54, %v6580_v53 }
 0x29e   :  { %v8023_v61 = vld [vmem:[#allocation11 + $0x64] sm:$0xf0] }
 0x29f   :  { %4342 = vmatpush.bf16.msra.mxu3 %v6645_v36  ;;  %4317 = vmatpush.bf16.msrb.mxu1 %v6101_v42  ;;  %v6036_v1 = vld [vmem:[#allocation11 + $0x248] sm:$0xf]  ;;  %v5781_v13 = vor.u32 %v8023_v61, %v5780_v59 }
 0x2a0   :  { %v8087_v33 = vld [vmem:[#allocation11 + $0x264] sm:$0xf0] }
 0x2a1   :  { %4330 = vmatpush.bf16.msra.mxu2 %v6357_v47  ;;  %v6292_v4 = vld [vmem:[#allocation11 + $0x448] sm:$0xf]  ;;  %4305 = vmatpush.bf16.msrb.mxu0 %v5813_v56  ;;  %v6037_v11 = vor.u32 %v8087_v33, %v6036_v1 }
 0x2a2   :  { %v8151_v8 = vld [vmem:[#allocation11 + $0x464] sm:$0xf0] }
 0x2a3   :  { %4343 = vmatpush.bf16.msra.mxu3 %v6613_v48  ;;  %v6548_v5 = vld [vmem:[#allocation11 + $0x648] sm:$0xf]  ;;  %4318 = vmatpush.bf16.msrb.mxu1 %v6069_v57  ;;  %v6293_v55 = vor.u32 %v8151_v8, %v6292_v4 }
 0x2a4   :  { %v8215_v10 = vld [vmem:[#allocation11 + $0x664] sm:$0xf0] }
 0x2a5   :  { %v5748_v60 = vld [vmem:[#allocation11 + $0x8] sm:$0xf]  ;;  %4331 = vmatpush.bf16.msra.mxu2 %v6325_v62  ;;  %v6549_v15 = vor.u32 %v8215_v10, %v6548_v5  ;;  %4306 = vmatpush.bf16.msrb.mxu0 %v5781_v13 }
 0x2a6   :  { %v8015_v3 = vld [vmem:[#allocation11 + $0x24] sm:$0xf0] }
 0x2a7   :  { %v6004_v14 = vld [vmem:[#allocation11 + $0x208] sm:$0xf]  ;;  %4344 = vmatpush.bf16.msra.mxu3 %v6581_v0  ;;  %4319 = vmatpush.bf16.msrb.mxu1 %v6037_v11  ;;  %v5749_v28 = vor.u32 %v8015_v3, %v5748_v60 }
 0x2a8   :  { %v8079_v7 = vld [vmem:[#allocation11 + $0x224] sm:$0xf0] }
 0x2a9   :  { %v6260_v16 = vld [vmem:[#allocation11 + $0x408] sm:$0xf]  ;;  %v6005_v2 = vor.u32 %v8079_v7, %v6004_v14  ;;  %4332 = vmatpush.bf16.msra.mxu2 %v6293_v55  ;;  %4307 = vmatpush.bf16.msrb.mxu0 %v5749_v28 }
 0x2aa   :  { %v8143_v17 = vld [vmem:[#allocation11 + $0x424] sm:$0xf0] }
 0x2ab   :  { %v6516_v19 = vld [vmem:[#allocation11 + $0x608] sm:$0xf]  ;;  %4345 = vmatpush.bf16.msra.mxu3 %v6549_v15  ;;  %v6261_v32 = vor.u32 %v8143_v17, %v6260_v16  ;;  %4320 = vmatpush.bf16.msrb.mxu1 %v6005_v2 }
 0x2ac   :  { %v8207_v22 = vld [vmem:[#allocation11 + $0x624] sm:$0xf0]  ;;  %4308 = vmatmul.bf16.vlgmr.msrb.gmra.mxu0 %v9226_v6 }
 0x2ad   :  { %v6996_v23 = vld [vmem:[#allocation11 + $0x9c8] sm:$0xf]  ;;  %v6517_v34 = vor.u32 %v8207_v22, %v6516_v19  ;;  %4333 = vmatpush.bf16.msra.mxu2 %v6261_v32 }
 0x2ae   :  { %v8327_v24 = vld [vmem:[#allocation11 + $0x9e4] sm:$0xf0]  ;;  %4321 = vmatmul.bf16.vlgmr.msrb.gmra.mxu1 %v9228_v20 }
 0x2af   :  { %v7252_v25 = vld [vmem:[#allocation11 + $0xbc8] sm:$0xf]  ;;  %v6997_v35 = vor.u32 %v8327_v24, %v6996_v23  ;;  %4346 = vmatpush.bf16.msra.mxu3 %v6517_v34 }
 0x2b0   :  { %v8391_v26 = vld [vmem:[#allocation11 + $0xbe4] sm:$0xf0]  ;;  %4334 = vmatmul.bf16.vlgmr.msra.gmra.mxu2 %v9230_v12 }
 0x2b1   :  { %v7508_v27 = vld [vmem:[#allocation11 + $0xdc8] sm:$0xf]  ;;  %v7253_v36 = vor.u32 %v8391_v26, %v7252_v25  ;;  %4352 = vmatpush.bf16.msra.mxu0 %v6997_v35 }
 0x2b2   :  { %v8455_v29 = vld [vmem:[#allocation11 + $0xde4] sm:$0xf0]  ;;  %4347 = vmatmul.bf16.vlgmr.msra.gmra.mxu3 %v9232_v21 }
 0x2b3   :  { %v7764_v30 = vld [vmem:[#allocation11 + $0xfc8] sm:$0xf]  ;;  %v7509_v39 = vor.u32 %v8455_v29, %v7508_v27  ;;  %4365 = vmatpush.bf16.msra.mxu1 %v7253_v36 }
 0x2b4   :  { %v8519_v31 = vld [vmem:[#allocation11 + $0xfe4] sm:$0xf0] }
 0x2b5   :  { %v6964_v37 = vld [vmem:[#allocation11 + $0x988] sm:$0xf]  ;;  %v7765_v40 = vor.u32 %v8519_v31, %v7764_v30  ;;  %4378 = vmatpush.bf16.msrb.mxu2 %v7509_v39 }
 0x2b6   :  { %v8319_v38 = vld [vmem:[#allocation11 + $0x9a4] sm:$0xf0] }
 0x2b7   :  { %v7220_v41 = vld [vmem:[#allocation11 + $0xb88] sm:$0xf]  ;;  %v6965_v47 = vor.u32 %v8319_v38, %v6964_v37  ;;  %4391 = vmatpush.bf16.msrb.mxu3 %v7765_v40 }
 0x2b8   :  { %v8383_v43 = vld [vmem:[#allocation11 + $0xba4] sm:$0xf0] }
 0x2b9   :  { %v7476_v44 = vld [vmem:[#allocation11 + $0xd88] sm:$0xf]  ;;  %v7221_v48 = vor.u32 %v8383_v43, %v7220_v41  ;;  %4353 = vmatpush.bf16.msra.mxu0 %v6965_v47 }
 0x2ba   :  { %v8447_v42 = vld [vmem:[#allocation11 + $0xda4] sm:$0xf0] }
 0x2bb   :  { %v7732_v45 = vld [vmem:[#allocation11 + $0xf88] sm:$0xf]  ;;  %v7477_v51 = vor.u32 %v8447_v42, %v7476_v44  ;;  %4366 = vmatpush.bf16.msra.mxu1 %v7221_v48 }
 0x2bc   :  { %v8511_v46 = vld [vmem:[#allocation11 + $0xfa4] sm:$0xf0] }
 0x2bd   :  { %v6932_v49 = vld [vmem:[#allocation11 + $0x948] sm:$0xf]  ;;  %v7733_v52 = vor.u32 %v8511_v46, %v7732_v45  ;;  %4379 = vmatpush.bf16.msrb.mxu2 %v7477_v51 }
 0x2be   :  { %v8311_v50 = vld [vmem:[#allocation11 + $0x964] sm:$0xf0] }
 0x2bf   :  { %v7188_v53 = vld [vmem:[#allocation11 + $0xb48] sm:$0xf]  ;;  %v6933_v62 = vor.u32 %v8311_v50, %v6932_v49  ;;  %4392 = vmatpush.bf16.msrb.mxu3 %v7733_v52 }
 0x2c0   :  { %v8375_v54 = vld [vmem:[#allocation11 + $0xb64] sm:$0xf0] }
 0x2c1   :  { %v7444_v56 = vld [vmem:[#allocation11 + $0xd48] sm:$0xf]  ;;  %v7189_v0 = vor.u32 %v8375_v54, %v7188_v53  ;;  %4354 = vmatpush.bf16.msra.mxu0 %v6933_v62 }
 0x2c2   :  { %v8439_v57 = vld [vmem:[#allocation11 + $0xd64] sm:$0xf0] }
 0x2c3   :  { %v7700_v59 = vld [vmem:[#allocation11 + $0xf48] sm:$0xf]  ;;  %v7445_v4 = vor.u32 %v8439_v57, %v7444_v56  ;;  %4367 = vmatpush.bf16.msra.mxu1 %v7189_v0 }
 0x2c4   :  { %v8503_v61 = vld [vmem:[#allocation11 + $0xf64] sm:$0xf0] }
 0x2c5   :  { %v6900_v1 = vld [vmem:[#allocation11 + $0x908] sm:$0xf]  ;;  %v7701_v8 = vor.u32 %v8503_v61, %v7700_v59  ;;  %4380 = vmatpush.bf16.msrb.mxu2 %v7445_v4  ;;  %v8067_v4 = vld [vmem:[#allocation11 + $0x1cc] sm:$0xf] }
 0x2c6   :  { %v8303_v33 = vld [vmem:[#allocation11 + $0x924] sm:$0xf0] }
 0x2c7   :  { %v7156_v5 = vld [vmem:[#allocation11 + $0xb08] sm:$0xf]  ;;  %v6901_v14 = vor.u32 %v8303_v33, %v6900_v1  ;;  %4393 = vmatpush.bf16.msrb.mxu3 %v7701_v8  ;;  %v5974_v8 = vld [vmem:[#allocation11 + $0x1e8] sm:$0xf0] }
 0x2c8   :  { %v8367_v10 = vld [vmem:[#allocation11 + $0xb24] sm:$0xf0] }
 0x2c9   :  { %v7412_v60 = vld [vmem:[#allocation11 + $0xd08] sm:$0xf]  ;;  %v7157_v7 = vor.u32 %v8367_v10, %v7156_v5  ;;  %4355 = vmatpush.bf16.msra.mxu0 %v6901_v14  ;;  %v8131_v5 = vld [vmem:[#allocation11 + $0x3cc] sm:$0xf] }
 0x2ca   :  { %v8431_v13 = vld [vmem:[#allocation11 + $0xd24] sm:$0xf0]  ;;  %v6230_v10 = vld [vmem:[#allocation11 + $0x3e8] sm:$0xf0] }
 0x2cb   :  { %v7668_v11 = vld [vmem:[#allocation11 + $0xf08] sm:$0xf]  ;;  %v7413_v16 = vor.u32 %v8431_v13, %v7412_v60  ;;  %4368 = vmatpush.bf16.msra.mxu1 %v7157_v7  ;;  %v8195_v60 = vld [vmem:[#allocation11 + $0x5cc] sm:$0xf] }
 0x2cc   :  { %v8495_v3 = vld [vmem:[#allocation11 + $0xf24] sm:$0xf0]  ;;  %v8259_v14 = vld [vmem:[#allocation11 + $0x7cc] sm:$0xf] }
 0x2cd   :  { %v6868_v55 = vld [vmem:[#allocation11 + $0x8c8] sm:$0xf]  ;;  %v7669_v17 = vor.u32 %v8495_v3, %v7668_v11  ;;  %4381 = vmatpush.bf16.msrb.mxu2 %v7413_v16  ;;  %v6486_v3 = vld [vmem:[#allocation11 + $0x5e8] sm:$0xf0]  ;;  %v5977_v16 = vor.u32 %v8067_v4, %v5974_v8 }
 0x2ce   :  { %v8295_v15 = vld [vmem:[#allocation11 + $0x8e4] sm:$0xf0]  ;;  %v6742_v7 = vld [vmem:[#allocation11 + $0x7e8] sm:$0xf0] }
 0x2cf   :  { %v7124_v19 = vld [vmem:[#allocation11 + $0xac8] sm:$0xf]  ;;  %v6869_v27 = vor.u32 %v8295_v15, %v6868_v55  ;;  %4394 = vmatpush.bf16.msrb.mxu3 %v7669_v17  ;;  %v6233_v17 = vor.u32 %v8131_v5, %v6230_v10  ;;  %v8099_v8 = vld [vmem:[#allocation11 + $0x2cc] sm:$0xf] }
 0x2d0   :  { %v8359_v22 = vld [vmem:[#allocation11 + $0xae4] sm:$0xf0]  ;;  %v6102_v5 = vld [vmem:[#allocation11 + $0x2e8] sm:$0xf0] }
 0x2d1   :  { %v7380_v23 = vld [vmem:[#allocation11 + $0xcc8] sm:$0xf]  ;;  %v7125_v28 = vor.u32 %v8359_v22, %v7124_v19  ;;  %4356 = vmatpush.bf16.msra.mxu0 %v6869_v27  ;;  %v8059_v19 = vld [vmem:[#allocation11 + $0x18c] sm:$0xf] }
 0x2d2   :  { %v8423_v24 = vld [vmem:[#allocation11 + $0xce4] sm:$0xf0]  ;;  %v5942_v22 = vld [vmem:[#allocation11 + $0x1a8] sm:$0xf0] }
 0x2d3   :  { %v7636_v25 = vld [vmem:[#allocation11 + $0xec8] sm:$0xf]  ;;  %v7381_v30 = vor.u32 %v8423_v24, %v7380_v23  ;;  %4369 = vmatpush.bf16.msra.mxu1 %v7125_v28  ;;  %v6489_v23 = vor.u32 %v8195_v60, %v6486_v3  ;;  %v6745_v24 = vor.u32 %v8259_v14, %v6742_v7  ;;  %v8187_v27 = vld [vmem:[#allocation11 + $0x58c] sm:$0xf]  ;;  %v4127_v60 = vpop.f32.mrf.mxu2 }
 0x2d4   :  { %v8487_v26 = vld [vmem:[#allocation11 + $0xee4] sm:$0xf0]  ;;  %v6454_v28 = vld [vmem:[#allocation11 + $0x5a8] sm:$0xf0] }
 0x2d5   :  { %v6836_v2 = vld [vmem:[#allocation11 + $0x888] sm:$0xf]  ;;  %v7637_v31 = vor.u32 %v8487_v26, %v7636_v25  ;;  %4382 = vmatpush.bf16.msrb.mxu2 %v7381_v30  ;;  %v8123_v25 = vld [vmem:[#allocation11 + $0x38c] sm:$0xf]  ;;  %v5945_v30 = vor.u32 %v8059_v19, %v5942_v22 }
 0x2d6   :  { %v8287_v29 = vld [vmem:[#allocation11 + $0x8a4] sm:$0xf0]  ;;  %v6198_v26 = vld [vmem:[#allocation11 + $0x3a8] sm:$0xf0] }
 0x2d7   :  { %v7092_v32 = vld [vmem:[#allocation11 + $0xa88] sm:$0xf]  ;;  %v6837_v39 = vor.u32 %v8287_v29, %v6836_v2  ;;  %4395 = vmatpush.bf16.msrb.mxu3 %v7637_v31  ;;  %v8251_v2 = vld [vmem:[#allocation11 + $0x78c] sm:$0xf]  ;;  %v6201_v31 = vor.u32 %v8123_v25, %v6198_v26 }
 0x2d8   :  { %v8351_v34 = vld [vmem:[#allocation11 + $0xaa4] sm:$0xf0]  ;;  %v6710_v29 = vld [vmem:[#allocation11 + $0x7a8] sm:$0xf0] }
 0x2d9   :  { %v7348_v35 = vld [vmem:[#allocation11 + $0xc88] sm:$0xf]  ;;  %v7093_v40 = vor.u32 %v8351_v34, %v7092_v32  ;;  %4357 = vmatpush.bf16.msra.mxu0 %v6837_v39  ;;  %v8051_v32 = vld [vmem:[#allocation11 + $0x14c] sm:$0xf] }
 0x2da   :  { %v8415_v36 = vld [vmem:[#allocation11 + $0xca4] sm:$0xf0]  ;;  %v5910_v34 = vld [vmem:[#allocation11 + $0x168] sm:$0xf0] }
 0x2db   :  { %v7604_v37 = vld [vmem:[#allocation11 + $0xe88] sm:$0xf]  ;;  %v7349_v44 = vor.u32 %v8415_v36, %v7348_v35  ;;  %4370 = vmatpush.bf16.msra.mxu1 %v7093_v40  ;;  %v6457_v35 = vor.u32 %v8187_v27, %v6454_v28  ;;  %v6713_v36 = vor.u32 %v8251_v2, %v6710_v29  ;;  %v8179_v39 = vld [vmem:[#allocation11 + $0x54c] sm:$0xf] }
 0x2dc   :  { %v8479_v38 = vld [vmem:[#allocation11 + $0xea4] sm:$0xf0]  ;;  %v6422_v40 = vld [vmem:[#allocation11 + $0x568] sm:$0xf0] }
 0x2dd   :  { %v6804_v41 = vld [vmem:[#allocation11 + $0x848] sm:$0xf]  ;;  %v7605_v42 = vor.u32 %v8479_v38, %v7604_v37  ;;  %4383 = vmatpush.bf16.msrb.mxu2 %v7349_v44  ;;  %v8115_v37 = vld [vmem:[#allocation11 + $0x34c] sm:$0xf]  ;;  %v4101_v44 = vpop.f32.mrf.mxu0 }
 0x2de   :  { %v8279_v43 = vld [vmem:[#allocation11 + $0x864] sm:$0xf0]  ;;  %v6166_v38 = vld [vmem:[#allocation11 + $0x368] sm:$0xf0] }
 0x2df   :  { %v7060_v45 = vld [vmem:[#allocation11 + $0xa48] sm:$0xf]  ;;  %v6805_v52 = vor.u32 %v8279_v43, %v6804_v41  ;;  %4396 = vmatpush.bf16.msrb.mxu3 %v7605_v42  ;;  %v8243_v41 = vld [vmem:[#allocation11 + $0x74c] sm:$0xf]  ;;  %v4114_v42 = vpop.f32.mrf.mxu1 }
 0x2e0   :  { %v8343_v46 = vld [vmem:[#allocation11 + $0xa64] sm:$0xf0]  ;;  %v6678_v43 = vld [vmem:[#allocation11 + $0x768] sm:$0xf0] }
 0x2e1   :  { %v7316_v47 = vld [vmem:[#allocation11 + $0xc48] sm:$0xf]  ;;  %v7061_v53 = vor.u32 %v8343_v46, %v7060_v45  ;;  %4358 = vmatpush.bf16.msra.mxu0 %v6805_v52  ;;  %v5913_v45 = vor.u32 %v8051_v32, %v5910_v34  ;;  %v6169_v46 = vor.u32 %v8115_v37, %v6166_v38  ;;  %v8107_v52 = vld [vmem:[#allocation11 + $0x30c] sm:$0xf] }
 0x2e2   :  { %v8407_v48 = vld [vmem:[#allocation11 + $0xc64] sm:$0xf0]  ;;  %v8163_v10 = vld [vmem:[#allocation11 + $0x4cc] sm:$0xf] }
 0x2e3   :  { %v7572_v49 = vld [vmem:[#allocation11 + $0xe48] sm:$0xf]  ;;  %v7317_v59 = vor.u32 %v8407_v48, %v7316_v47  ;;  %4371 = vmatpush.bf16.msra.mxu1 %v7061_v53  ;;  %v4115_v47 = vadd.f32 %v4114_v42, %v4101_v44  ;;  %v8043_v48 = vld [vmem:[#allocation11 + $0x10c] sm:$0xf] }
 0x2e4   :  { %v8471_v50 = vld [vmem:[#allocation11 + $0xe64] sm:$0xf0]  ;;  %v6134_v53 = vld [vmem:[#allocation11 + $0x328] sm:$0xf0] }
 0x2e5   :  { %v6772_v51 = vld [vmem:[#allocation11 + $0x808] sm:$0xf]  ;;  %v7573_v61 = vor.u32 %v8471_v50, %v7572_v49  ;;  %4384 = vmatpush.bf16.msrb.mxu2 %v7317_v59  ;;  %v5878_v49 = vld [vmem:[#allocation11 + $0x128] sm:$0xf0]  ;;  %v6425_v50 = vor.u32 %v8179_v39, %v6422_v40  ;;  %v4128_v7 = vadd.f32 %v4127_v60, %v4115_v47 }
 0x2e6   :  { %v8271_v54 = vld [vmem:[#allocation11 + $0x824] sm:$0xf0]  ;;  %v6646_v59 = vld [vmem:[#allocation11 + $0x728] sm:$0xf0] }
 0x2e7   :  { %v7028_v56 = vld [vmem:[#allocation11 + $0xa08] sm:$0xf]  ;;  %v6773_v13 = vor.u32 %v8271_v54, %v6772_v51  ;;  %4397 = vmatpush.bf16.msrb.mxu3 %v7573_v61  ;;  %v6681_v51 = vor.u32 %v8243_v41, %v6678_v43  ;;  %v8171_v54 = vld [vmem:[#allocation11 + $0x50c] sm:$0xf]  ;;  %v5881_v61 = vor.u32 %v8043_v48, %v5878_v49  ;;  %v4129_v41 = vpop.f32.mrf.mxu2 }
 0x2e8   :  { %v8335_v57 = vld [vmem:[#allocation11 + $0xa24] sm:$0xf0]  ;;  %v8227_v3 = vld [vmem:[#allocation11 + $0x6cc] sm:$0xf] }
 0x2e9   :  { %v7284_v62 = vld [vmem:[#allocation11 + $0xc08] sm:$0xf]  ;;  %v7029_v11 = vor.u32 %v8335_v57, %v7028_v56  ;;  %4359 = vmatpush.bf16.msra.mxu0 %v6773_v13  ;;  %v6390_v56 = vld [vmem:[#allocation11 + $0x528] sm:$0xf0]  ;;  %v4140_v13 = vpop.f32.mrf.mxu3 }
 0x2ea   :  { %v8399_v0 = vld [vmem:[#allocation11 + $0xc24] sm:$0xf0]  ;;  %v8235_v57 = vld [vmem:[#allocation11 + $0x70c] sm:$0xf] }
 0x2eb   :  { %v7540_v1 = vld [vmem:[#allocation11 + $0xe08] sm:$0xf]  ;;  %v7285_v55 = vor.u32 %v8399_v0, %v7284_v62  ;;  %4372 = vmatpush.bf16.msra.mxu1 %v7029_v11  ;;  %v6137_v62 = vor.u32 %v8107_v52, %v6134_v53  ;;  %v8035_v0 = vld [vmem:[#allocation11 + $0xcc] sm:$0xf]  ;;  %v6649_v4 = vor.u32 %v8235_v57, %v6646_v59 }
 0x2ec   :  { %v8463_v33 = vld [vmem:[#allocation11 + $0xe24] sm:$0xf0]  ;;  %4360 = vmatmul.bf16.vlgmr.msra.gmra.mxu0 %v9250_v9  ;;  %v6358_v11 = vld [vmem:[#allocation11 + $0x4e8] sm:$0xf0] }
 0x2ed   :  { %v7541_v15 = vor.u32 %v8463_v33, %v7540_v1  ;;  %4385 = vmatpush.bf16.msrb.mxu2 %v7285_v55  ;;  %4404 = vmatpush.bf16.msrb.mxu0 %v5977_v16  ;;  %v5846_v1 = vld [vmem:[#allocation11 + $0xe8] sm:$0xf0]  ;;  %v6393_v33 = vor.u32 %v8171_v54, %v6390_v56  ;;  %v4103_v55 = vpop.f32.mrf.mxu0 }
 0x2ee   :  { %4373 = vmatmul.bf16.vlgmr.msra.gmra.mxu1 %v9252_v18  ;;  %v6614_v14 = vld [vmem:[#allocation11 + $0x6e8] sm:$0xf0]  ;;  %v5849_v16 = vor.u32 %v8035_v0, %v5846_v1 }
 0x2ef   :  { %4398 = vmatpush.bf16.msrb.mxu3 %v7541_v15  ;;  %4417 = vmatpush.bf16.msrb.mxu1 %v6233_v17  ;;  %v4116_v15 = vpop.f32.mrf.mxu1  ;;  %v6105_v17 = vor.u32 %v8099_v8, %v6102_v5  ;;  %v8027_v19 = vld [vmem:[#allocation11 + $0x8c] sm:$0xf]  ;;  %v6617_v25 = vor.u32 %v8227_v3, %v6614_v14 }
 0x2f0   :  { %4386 = vmatmul.bf16.vlgmr.msrb.gmra.mxu2 %v9254_v58  ;;  %v5814_v22 = vld [vmem:[#allocation11 + $0xa8] sm:$0xf0] }
 0x2f1   :  { %4430 = vmatpush.bf16.msra.mxu2 %v6489_v23  ;;  %4405 = vmatpush.bf16.msrb.mxu0 %v5945_v30  ;;  %v4141_v23 = vadd.f32 %v4140_v13, %v4128_v7  ;;  %v8091_v26 = vld [vmem:[#allocation11 + $0x28c] sm:$0xf]  ;;  %v4142_v43 = vpop.f32.mrf.mxu3 }
 0x2f2   :  { %4399 = vmatmul.bf16.vlgmr.msrb.gmra.mxu3 %v9256_v63  ;;  %v6070_v27 = vld [vmem:[#allocation11 + $0x2a8] sm:$0xf0] }
 0x2f3   :  { %4443 = vmatpush.bf16.msra.mxu3 %v6745_v24  ;;  %4418 = vmatpush.bf16.msrb.mxu1 %v6201_v31  ;;  %v6361_v24 = vor.u32 %v8163_v10, %v6358_v11  ;;  %v8155_v28 = vld [vmem:[#allocation11 + $0x48c] sm:$0xf]  ;;  %v5817_v31 = vor.u32 %v8027_v19, %v5814_v22  ;;  %v6073_v32 = vor.u32 %v8091_v26, %v6070_v27 }
 0x2f4   :  { %v6326_v2 = vld [vmem:[#allocation11 + $0x4a8] sm:$0xf0] }
 0x2f5   :  { %4431 = vmatpush.bf16.msra.mxu2 %v6457_v35  ;;  %4406 = vmatpush.bf16.msrb.mxu0 %v5913_v45  ;;  %v8219_v29 = vld [vmem:[#allocation11 + $0x68c] sm:$0xf] }
 0x2f6   :  { %v6582_v30 = vld [vmem:[#allocation11 + $0x6a8] sm:$0xf0] }
 0x2f7   :  { %4444 = vmatpush.bf16.msra.mxu3 %v6713_v36  ;;  %4419 = vmatpush.bf16.msrb.mxu1 %v6169_v46  ;;  %v8019_v34 = vld [vmem:[#allocation11 + $0x4c] sm:$0xf]  ;;  %v6329_v36 = vor.u32 %v8155_v28, %v6326_v2  ;;  %v6585_v37 = vor.u32 %v8219_v29, %v6582_v30  ;;  %v4153_v46 = vpop.f32.mrf.mxu0  ;;  %v4166_v47 = vpop.f32.mrf.mxu1 }
 0x2f8   :  { %v5782_v35 = vld [vmem:[#allocation11 + $0x68] sm:$0xf0] }
 0x2f9   :  { %4432 = vmatpush.bf16.msra.mxu2 %v6425_v50  ;;  %4407 = vmatpush.bf16.msrb.mxu0 %v5881_v61  ;;  %v8083_v38 = vld [vmem:[#allocation11 + $0x24c] sm:$0xf]  ;;  %v5785_v49 = vor.u32 %v8019_v34, %v5782_v35  ;;  %v4192_v19 = vpop.f32.mrf.mxu3 }
 0x2fa   :  { %v6038_v39 = vld [vmem:[#allocation11 + $0x268] sm:$0xf0] }
 0x2fb   :  { %4445 = vmatpush.bf16.msra.mxu3 %v6681_v51  ;;  %4420 = vmatpush.bf16.msrb.mxu1 %v6137_v62  ;;  %v8147_v40 = vld [vmem:[#allocation11 + $0x44c] sm:$0xf]  ;;  %v6041_v50 = vor.u32 %v8083_v38, %v6038_v39  ;;  %v4154_v51 = vadd.f32 %v4153_v46, %v4141_v23 }
 0x2fc   :  { %v6294_v44 = vld [vmem:[#allocation11 + $0x468] sm:$0xf0] }
 0x2fd   :  { %4433 = vmatpush.bf16.msra.mxu2 %v6393_v33  ;;  %4408 = vmatpush.bf16.msrb.mxu0 %v5849_v16  ;;  %v8211_v42 = vld [vmem:[#allocation11 + $0x64c] sm:$0xf]  ;;  %v6297_v56 = vor.u32 %v8147_v40, %v6294_v44  ;;  %v4167_v0 = vadd.f32 %v4166_v47, %v4154_v51 }
 0x2fe   :  { %v6550_v45 = vld [vmem:[#allocation11 + $0x668] sm:$0xf0] }
 0x2ff   :  { %4446 = vmatpush.bf16.msra.mxu3 %v6649_v4  ;;  %4421 = vmatpush.bf16.msrb.mxu1 %v6105_v17  ;;  %v8011_v48 = vld [vmem:[#allocation11 + $0xc] sm:$0xf]  ;;  %v6553_v57 = vor.u32 %v8211_v42, %v6550_v45  ;;  %v4179_v17 = vpop.f32.mrf.mxu2  ;;  %v4155_v27 = vpop.f32.mrf.mxu0 }
 0x300   :  { %v5750_v52 = vld [vmem:[#allocation11 + $0x28] sm:$0xf0]  ;;  %v4180_v26 = vadd.f32 %v4179_v17, %v4167_v0  ;;  %v4168_v28 = vpop.f32.mrf.mxu1 }
 0x301   :  { %4434 = vmatpush.bf16.msra.mxu2 %v6361_v24  ;;  %4409 = vmatpush.bf16.msrb.mxu0 %v5817_v31  ;;  %v8075_v53 = vld [vmem:[#allocation11 + $0x20c] sm:$0xf]  ;;  %v5753_v60 = vor.u32 %v8011_v48, %v5750_v52  ;;  %v4194_v51 = vpop.f32.mrf.mxu3 }
 0x302   :  { %v6006_v54 = vld [vmem:[#allocation11 + $0x228] sm:$0xf0]  ;;  %v9278_v35 = vadd.f32 %v4192_v19, %v4180_v26 }
 0x303   :  { %4447 = vmatpush.bf16.msra.mxu3 %v6617_v25  ;;  %4422 = vmatpush.bf16.msrb.mxu1 %v6073_v32  ;;  %v8139_v59 = vld [vmem:[#allocation11 + $0x40c] sm:$0xf]  ;;  %v6009_v13 = vor.u32 %v8075_v53, %v6006_v54 }
 0x304   :  { %v6262_v61 = vld [vmem:[#allocation11 + $0x428] sm:$0xf0] }
 0x305   :  { %4435 = vmatpush.bf16.msra.mxu2 %v6329_v36  ;;  %v8203_v62 = vld [vmem:[#allocation11 + $0x60c] sm:$0xf]  ;;  %4410 = vmatpush.bf16.msrb.mxu0 %v5785_v49  ;;  %v6265_v7 = vor.u32 %v8139_v59, %v6262_v61 }
 0x306   :  { %v6518_v1 = vld [vmem:[#allocation11 + $0x628] sm:$0xf0] }
 0x307   :  { %4448 = vmatpush.bf16.msra.mxu3 %v6585_v37  ;;  %v8323_v33 = vld [vmem:[#allocation11 + $0x9cc] sm:$0xf]  ;;  %4423 = vmatpush.bf16.msrb.mxu1 %v6041_v50  ;;  %v6521_v55 = vor.u32 %v8203_v62, %v6518_v1  ;;  %v4181_v50 = vpop.f32.mrf.mxu2 }
 0x308   :  { %v6998_v4 = vld [vmem:[#allocation11 + $0x9e8] sm:$0xf0] }
 0x309   :  { %v8387_v8 = vld [vmem:[#allocation11 + $0xbcc] sm:$0xf]  ;;  %4436 = vmatpush.bf16.msra.mxu2 %v6297_v56  ;;  %v7001_v15 = vor.u32 %v8323_v33, %v6998_v4  ;;  %4411 = vmatpush.bf16.msrb.mxu0 %v5753_v60  ;;  %v4205_v33 = vpop.f32.mrf.mxu0  ;;  %v4218_v4 = vpop.f32.mrf.mxu1 }
 0x30a   :  { %v7254_v5 = vld [vmem:[#allocation11 + $0xbe8] sm:$0xf0] }
 0x30b   :  { %v8451_v10 = vld [vmem:[#allocation11 + $0xdcc] sm:$0xf]  ;;  %4449 = vmatpush.bf16.msra.mxu3 %v6553_v57  ;;  %v7257_v16 = vor.u32 %v8387_v8, %v7254_v5  ;;  %4424 = vmatpush.bf16.msrb.mxu1 %v6009_v13  ;;  %v4219_v8 = vadd.f32 %v4218_v4, %v4205_v33 }
 0x30c   :  { %v7510_v11 = vld [vmem:[#allocation11 + $0xde8] sm:$0xf0]  ;;  %4412 = vmatmul.bf16.vlgmr.msrb.gmra.mxu0 %v9226_v6 }
 0x30d   :  { %v8515_v3 = vld [vmem:[#allocation11 + $0xfcc] sm:$0xf]  ;;  %v7513_v24 = vor.u32 %v8451_v10, %v7510_v11  ;;  %4437 = vmatpush.bf16.msra.mxu2 %v6265_v7  ;;  %4456 = vmatpush.bf16.msra.mxu0 %v7001_v15 }
 0x30e   :  { %v7766_v14 = vld [vmem:[#allocation11 + $0xfe8] sm:$0xf0]  ;;  %4425 = vmatmul.bf16.vlgmr.msrb.gmra.mxu1 %v9228_v20 }
 0x30f   :  { %v8315_v22 = vld [vmem:[#allocation11 + $0x98c] sm:$0xf]  ;;  %v7769_v25 = vor.u32 %v8515_v3, %v7766_v14  ;;  %4450 = vmatpush.bf16.msra.mxu3 %v6521_v55  ;;  %4469 = vmatpush.bf16.msra.mxu1 %v7257_v16 }
 0x310   :  { %v6966_v23 = vld [vmem:[#allocation11 + $0x9a8] sm:$0xf0]  ;;  %4438 = vmatmul.bf16.vlgmr.msra.gmra.mxu2 %v9230_v12 }
 0x311   :  { %v8379_v2 = vld [vmem:[#allocation11 + $0xb8c] sm:$0xf]  ;;  %v6969_v36 = vor.u32 %v8315_v22, %v6966_v23  ;;  %4482 = vmatpush.bf16.msrb.mxu2 %v7513_v24 }
 0x312   :  { %v7222_v29 = vld [vmem:[#allocation11 + $0xba8] sm:$0xf0]  ;;  %4451 = vmatmul.bf16.vlgmr.msra.gmra.mxu3 %v9232_v21 }
 0x313   :  { %v8443_v30 = vld [vmem:[#allocation11 + $0xd8c] sm:$0xf]  ;;  %v7225_v37 = vor.u32 %v8379_v2, %v7222_v29  ;;  %4495 = vmatpush.bf16.msrb.mxu3 %v7769_v25  ;;  %4457 = vmatpush.bf16.msra.mxu0 %v6969_v36  ;;  %v4231_v29 = vpop.f32.mrf.mxu2 }
 0x314   :  { %v7478_v31 = vld [vmem:[#allocation11 + $0xda8] sm:$0xf0]  ;;  %v4232_v36 = vadd.f32 %v4231_v29, %v4219_v8  ;;  %v6460_v29 = vld [vmem:[#allocation11 + $0x590] sm:$0xf] }
 0x315   :  { %v8507_v32 = vld [vmem:[#allocation11 + $0xf8c] sm:$0xf]  ;;  %v7481_v40 = vor.u32 %v8443_v30, %v7478_v31  ;;  %4470 = vmatpush.bf16.msra.mxu1 %v7225_v37  ;;  %v4244_v30 = vpop.f32.mrf.mxu3  ;;  %v4207_v37 = vpop.f32.mrf.mxu0 }
 0x316   :  { %v7734_v34 = vld [vmem:[#allocation11 + $0xfa8] sm:$0xf0]  ;;  %v5916_v37 = vld [vmem:[#allocation11 + $0x150] sm:$0xf] }
 0x317   :  { %v8307_v38 = vld [vmem:[#allocation11 + $0x94c] sm:$0xf]  ;;  %v7737_v41 = vor.u32 %v8507_v32, %v7734_v34  ;;  %4483 = vmatpush.bf16.msrb.mxu2 %v7481_v40 }
 0x318   :  { %v6934_v39 = vld [vmem:[#allocation11 + $0x968] sm:$0xf0] }
 0x319   :  { %v8371_v43 = vld [vmem:[#allocation11 + $0xb4c] sm:$0xf]  ;;  %v6937_v48 = vor.u32 %v8307_v38, %v6934_v39  ;;  %4496 = vmatpush.bf16.msrb.mxu3 %v7737_v41  ;;  %v4220_v38 = vpop.f32.mrf.mxu1 }
 0x31a   :  { %v7190_v44 = vld [vmem:[#allocation11 + $0xb68] sm:$0xf0]  ;;  %v8056_v38 = vld [vmem:[#allocation11 + $0x16c] sm:$0xf0] }
 0x31b   :  { %v8435_v42 = vld [vmem:[#allocation11 + $0xd4c] sm:$0xf]  ;;  %v7193_v49 = vor.u32 %v8371_v43, %v7190_v44  ;;  %4458 = vmatpush.bf16.msra.mxu0 %v6937_v48  ;;  %v9284_v44 = vadd.f32 %v4244_v30, %v4232_v36  ;;  %v4233_v4 = vpop.f32.mrf.mxu2  ;;  %v8192_v30 = vld [vmem:[#allocation11 + $0x5ac] sm:$0xf0] }
 0x31c   :  { %v7446_v45 = vld [vmem:[#allocation11 + $0xd68] sm:$0xf0] }
 0x31d   :  { %v8499_v46 = vld [vmem:[#allocation11 + $0xf4c] sm:$0xf]  ;;  %v7449_v54 = vor.u32 %v8435_v42, %v7446_v45  ;;  %4471 = vmatpush.bf16.msra.mxu1 %v7193_v49  ;;  %v4246_v8 = vpop.f32.mrf.mxu3 }
 0x31e   :  { %v7702_v47 = vld [vmem:[#allocation11 + $0xf68] sm:$0xf0] }
 0x31f   :  { %v8299_v52 = vld [vmem:[#allocation11 + $0x90c] sm:$0xf]  ;;  %v7705_v56 = vor.u32 %v8499_v46, %v7702_v47  ;;  %4484 = vmatpush.bf16.msrb.mxu2 %v7449_v54 }
 0x320   :  { %v6902_v53 = vld [vmem:[#allocation11 + $0x928] sm:$0xf0] }
 0x321   :  { %v8363_v57 = vld [vmem:[#allocation11 + $0xb0c] sm:$0xf]  ;;  %v6905_v5 = vor.u32 %v8299_v52, %v6902_v53  ;;  %4497 = vmatpush.bf16.msrb.mxu3 %v7705_v56 }
 0x322   :  { %v7158_v59 = vld [vmem:[#allocation11 + $0xb28] sm:$0xf0] }
 0x323   :  { %v8427_v61 = vld [vmem:[#allocation11 + $0xd0c] sm:$0xf]  ;;  %v7161_v10 = vor.u32 %v8363_v57, %v7158_v59  ;;  %4459 = vmatpush.bf16.msra.mxu0 %v6905_v5 }
 0x324   :  { %v7414_v62 = vld [vmem:[#allocation11 + $0xd28] sm:$0xf0] }
 0x325   :  { %v8491_v0 = vld [vmem:[#allocation11 + $0xf0c] sm:$0xf]  ;;  %v7417_v11 = vor.u32 %v8427_v61, %v7414_v62  ;;  %4472 = vmatpush.bf16.msra.mxu1 %v7161_v10  ;;  %v5980_v10 = vld [vmem:[#allocation11 + $0x1d0] sm:$0xf] }
 0x326   :  { %v7670_v1 = vld [vmem:[#allocation11 + $0xf28] sm:$0xf0] }
 0x327   :  { %v8291_v60 = vld [vmem:[#allocation11 + $0x8cc] sm:$0xf]  ;;  %v7673_v3 = vor.u32 %v8491_v0, %v7670_v1  ;;  %4485 = vmatpush.bf16.msrb.mxu2 %v7417_v11  ;;  %v8136_v11 = vld [vmem:[#allocation11 + $0x3ec] sm:$0xf0] }
 0x328   :  { %v6870_v13 = vld [vmem:[#allocation11 + $0x8e8] sm:$0xf0] }
 0x329   :  { %v8355_v14 = vld [vmem:[#allocation11 + $0xacc] sm:$0xf]  ;;  %v6873_v19 = vor.u32 %v8291_v60, %v6870_v13  ;;  %4498 = vmatpush.bf16.msrb.mxu3 %v7673_v3  ;;  %v8072_v60 = vld [vmem:[#allocation11 + $0x1ec] sm:$0xf0] }
 0x32a   :  { %v7126_v7 = vld [vmem:[#allocation11 + $0xae8] sm:$0xf0]  ;;  %v6236_v13 = vld [vmem:[#allocation11 + $0x3d0] sm:$0xf] }
 0x32b   :  { %v8419_v55 = vld [vmem:[#allocation11 + $0xccc] sm:$0xf]  ;;  %v7129_v22 = vor.u32 %v8355_v14, %v7126_v7  ;;  %4460 = vmatpush.bf16.msra.mxu0 %v6873_v19  ;;  %v6492_v3 = vld [vmem:[#allocation11 + $0x5d0] sm:$0xf] }
 0x32c   :  { %v7382_v15 = vld [vmem:[#allocation11 + $0xce8] sm:$0xf0] }
 0x32d   :  { %v8483_v16 = vld [vmem:[#allocation11 + $0xecc] sm:$0xf]  ;;  %v7385_v25 = vor.u32 %v8419_v55, %v7382_v15  ;;  %4473 = vmatpush.bf16.msra.mxu1 %v7129_v22  ;;  %v8200_v55 = vld [vmem:[#allocation11 + $0x5ec] sm:$0xf0]  ;;  %v5981_v22 = vor.u32 %v8072_v60, %v5980_v10 }
 0x32e   :  { %v7638_v17 = vld [vmem:[#allocation11 + $0xee8] sm:$0xf0]  ;;  %v6748_v15 = vld [vmem:[#allocation11 + $0x7d0] sm:$0xf] }
 0x32f   :  { %v8283_v23 = vld [vmem:[#allocation11 + $0x88c] sm:$0xf]  ;;  %v7641_v26 = vor.u32 %v8483_v16, %v7638_v17  ;;  %4486 = vmatpush.bf16.msrb.mxu2 %v7385_v25  ;;  %v8264_v16 = vld [vmem:[#allocation11 + $0x7ec] sm:$0xf0] }
 0x330   :  { %v6838_v24 = vld [vmem:[#allocation11 + $0x8a8] sm:$0xf0]  ;;  %v8064_v25 = vld [vmem:[#allocation11 + $0x1ac] sm:$0xf0] }
 0x331   :  { %v8347_v27 = vld [vmem:[#allocation11 + $0xa8c] sm:$0xf]  ;;  %v6841_v39 = vor.u32 %v8283_v23, %v6838_v24  ;;  %4499 = vmatpush.bf16.msrb.mxu3 %v7641_v26  ;;  %v6237_v23 = vor.u32 %v8136_v11, %v6236_v13  ;;  %v5948_v24 = vld [vmem:[#allocation11 + $0x190] sm:$0xf]  ;;  %v6493_v26 = vor.u32 %v8200_v55, %v6492_v3 }
 0x332   :  { %v7094_v28 = vld [vmem:[#allocation11 + $0xaa8] sm:$0xf0]  ;;  %v8040_v10 = vld [vmem:[#allocation11 + $0xec] sm:$0xf0] }
 0x333   :  { %v8411_v2 = vld [vmem:[#allocation11 + $0xc8c] sm:$0xf]  ;;  %v7097_v40 = vor.u32 %v8347_v27, %v7094_v28  ;;  %4461 = vmatpush.bf16.msra.mxu0 %v6841_v39  ;;  %v6749_v27 = vor.u32 %v8264_v16, %v6748_v15  ;;  %v6204_v28 = vld [vmem:[#allocation11 + $0x390] sm:$0xf]  ;;  %v6461_v39 = vor.u32 %v8192_v30, %v6460_v29 }
 0x334   :  { %v7350_v31 = vld [vmem:[#allocation11 + $0xca8] sm:$0xf0]  ;;  %v6108_v11 = vld [vmem:[#allocation11 + $0x2d0] sm:$0xf] }
 0x335   :  { %v8475_v32 = vld [vmem:[#allocation11 + $0xe8c] sm:$0xf]  ;;  %v7353_v42 = vor.u32 %v8411_v2, %v7350_v31  ;;  %4474 = vmatpush.bf16.msra.mxu1 %v7097_v40  ;;  %v8128_v2 = vld [vmem:[#allocation11 + $0x3ac] sm:$0xf0] }
 0x336   :  { %v7606_v34 = vld [vmem:[#allocation11 + $0xea8] sm:$0xf0]  ;;  %v6716_v31 = vld [vmem:[#allocation11 + $0x790] sm:$0xf]  ;;  %v6205_v36 = vor.u32 %v8128_v2, %v6204_v28  ;;  %v4283_v28 = vpop.f32.mrf.mxu2  ;;  %v4296_v2 = vpop.f32.mrf.mxu3 }
 0x337   :  { %v8275_v41 = vld [vmem:[#allocation11 + $0x84c] sm:$0xf]  ;;  %v7609_v45 = vor.u32 %v8475_v32, %v7606_v34  ;;  %4487 = vmatpush.bf16.msrb.mxu2 %v7353_v42  ;;  %v8256_v32 = vld [vmem:[#allocation11 + $0x7ac] sm:$0xf0]  ;;  %v5949_v34 = vor.u32 %v8064_v25, %v5948_v24 }
 0x338   :  { %v6806_v43 = vld [vmem:[#allocation11 + $0x868] sm:$0xf0]  ;;  %v6717_v40 = vor.u32 %v8256_v32, %v6716_v31  ;;  %v6428_v42 = vld [vmem:[#allocation11 + $0x550] sm:$0xf] }
 0x339   :  { %v8339_v46 = vld [vmem:[#allocation11 + $0xa4c] sm:$0xf]  ;;  %v6809_v53 = vor.u32 %v8275_v41, %v6806_v43  ;;  %4500 = vmatpush.bf16.msrb.mxu3 %v7609_v45  ;;  %v6172_v41 = vld [vmem:[#allocation11 + $0x350] sm:$0xf] }
 0x33a   :  { %v7062_v47 = vld [vmem:[#allocation11 + $0xa68] sm:$0xf0]  ;;  %v8120_v43 = vld [vmem:[#allocation11 + $0x36c] sm:$0xf0] }
 0x33b   :  { %v8403_v48 = vld [vmem:[#allocation11 + $0xc4c] sm:$0xf]  ;;  %v7065_v54 = vor.u32 %v8339_v46, %v7062_v47  ;;  %4462 = vmatpush.bf16.msra.mxu0 %v6809_v53  ;;  %v8184_v45 = vld [vmem:[#allocation11 + $0x56c] sm:$0xf0] }
 0x33c   :  { %v7318_v49 = vld [vmem:[#allocation11 + $0xc68] sm:$0xf0]  ;;  %v6684_v46 = vld [vmem:[#allocation11 + $0x750] sm:$0xf] }
 0x33d   :  { %v8467_v50 = vld [vmem:[#allocation11 + $0xe4c] sm:$0xf]  ;;  %v7321_v61 = vor.u32 %v8403_v48, %v7318_v49  ;;  %4475 = vmatpush.bf16.msra.mxu1 %v7065_v54  ;;  %v8248_v47 = vld [vmem:[#allocation11 + $0x76c] sm:$0xf0]  ;;  %v5917_v48 = vor.u32 %v8056_v38, %v5916_v37  ;;  %v6173_v49 = vor.u32 %v8120_v43, %v6172_v41 }
 0x33e   :  { %v7574_v51 = vld [vmem:[#allocation11 + $0xe68] sm:$0xf0]  ;;  %v6685_v53 = vor.u32 %v8248_v47, %v6684_v46  ;;  %v6140_v54 = vld [vmem:[#allocation11 + $0x310] sm:$0xf] }
 0x33f   :  { %v8267_v52 = vld [vmem:[#allocation11 + $0x80c] sm:$0xf]  ;;  %v7577_v62 = vor.u32 %v8467_v50, %v7574_v51  ;;  %4488 = vmatpush.bf16.msrb.mxu2 %v7321_v61  ;;  %v5884_v50 = vld [vmem:[#allocation11 + $0x110] sm:$0xf] }
 0x340   :  { %v6774_v56 = vld [vmem:[#allocation11 + $0x828] sm:$0xf0]  ;;  %v8048_v51 = vld [vmem:[#allocation11 + $0x12c] sm:$0xf0] }
 0x341   :  { %v8331_v57 = vld [vmem:[#allocation11 + $0xa0c] sm:$0xf]  ;;  %v6777_v14 = vor.u32 %v8267_v52, %v6774_v56  ;;  %4501 = vmatpush.bf16.msrb.mxu3 %v7577_v62  ;;  %v6429_v52 = vor.u32 %v8184_v45, %v6428_v42  ;;  %v8112_v56 = vld [vmem:[#allocation11 + $0x32c] sm:$0xf0]  ;;  %v5885_v4 = vor.u32 %v8048_v51, %v5884_v50 }
 0x342   :  { %v7030_v59 = vld [vmem:[#allocation11 + $0xa28] sm:$0xf0]  ;;  %v6652_v61 = vld [vmem:[#allocation11 + $0x710] sm:$0xf]  ;;  %v6141_v8 = vor.u32 %v8112_v56, %v6140_v54 }
 0x343   :  { %v8395_v0 = vld [vmem:[#allocation11 + $0xc0c] sm:$0xf]  ;;  %v7033_v7 = vor.u32 %v8331_v57, %v7030_v59  ;;  %4463 = vmatpush.bf16.msra.mxu0 %v6777_v14  ;;  %v6396_v57 = vld [vmem:[#allocation11 + $0x510] sm:$0xf] }
 0x344   :  { %v7286_v1 = vld [vmem:[#allocation11 + $0xc28] sm:$0xf0]  ;;  %v8176_v59 = vld [vmem:[#allocation11 + $0x52c] sm:$0xf0] }
 0x345   :  { %v8459_v33 = vld [vmem:[#allocation11 + $0xe0c] sm:$0xf]  ;;  %v7289_v17 = vor.u32 %v8395_v0, %v7286_v1  ;;  %4476 = vmatpush.bf16.msra.mxu1 %v7033_v7  ;;  %v8240_v62 = vld [vmem:[#allocation11 + $0x72c] sm:$0xf0]  ;;  %v4257_v0 = vpop.f32.mrf.mxu0  ;;  %v4270_v1 = vpop.f32.mrf.mxu1  ;;  %v6397_v60 = vor.u32 %v8176_v59, %v6396_v57 }
 0x346   :  { %v7542_v5 = vld [vmem:[#allocation11 + $0xe28] sm:$0xf0]  ;;  %4464 = vmatmul.bf16.vlgmr.msra.gmra.mxu0 %v9250_v9  ;;  %v6653_v13 = vor.u32 %v8240_v62, %v6652_v61  ;;  %v8104_v3 = vld [vmem:[#allocation11 + $0x2ec] sm:$0xf0] }
 0x347   :  { %v7545_v19 = vor.u32 %v8459_v33, %v7542_v5  ;;  %4489 = vmatpush.bf16.msrb.mxu2 %v7289_v17  ;;  %4508 = vmatpush.bf16.msrb.mxu0 %v5981_v22  ;;  %v4258_v33 = vadd.f32 %v4257_v0, %v9284_v44  ;;  %v5852_v5 = vld [vmem:[#allocation11 + $0xd0] sm:$0xf] }
 0x348   :  { %4477 = vmatmul.bf16.vlgmr.msra.gmra.mxu1 %v9252_v18  ;;  %v6364_v14 = vld [vmem:[#allocation11 + $0x4d0] sm:$0xf]  ;;  %v5853_v17 = vor.u32 %v8040_v10, %v5852_v5 }
 0x349   :  { %4502 = vmatpush.bf16.msrb.mxu3 %v7545_v19  ;;  %4521 = vmatpush.bf16.msrb.mxu1 %v6237_v23  ;;  %v4271_v7 = vadd.f32 %v4270_v1, %v4258_v33  ;;  %v8168_v55 = vld [vmem:[#allocation11 + $0x4ec] sm:$0xf0]  ;;  %v6109_v19 = vor.u32 %v8104_v3, %v6108_v11  ;;  %v4285_v33 = vpop.f32.mrf.mxu2 }
 0x34a   :  { %4490 = vmatmul.bf16.vlgmr.msrb.gmra.mxu2 %v9254_v58  ;;  %v6620_v15 = vld [vmem:[#allocation11 + $0x6d0] sm:$0xf]  ;;  %v6365_v23 = vor.u32 %v8168_v55, %v6364_v14 }
 0x34b   :  { %4534 = vmatpush.bf16.msra.mxu2 %v6493_v26  ;;  %4509 = vmatpush.bf16.msrb.mxu0 %v5949_v34  ;;  %v8232_v16 = vld [vmem:[#allocation11 + $0x6ec] sm:$0xf0]  ;;  %v4284_v32 = vadd.f32 %v4283_v28, %v4271_v7 }
 0x34c   :  { %4503 = vmatmul.bf16.vlgmr.msrb.gmra.mxu3 %v9256_v63  ;;  %v5820_v44 = vld [vmem:[#allocation11 + $0x90] sm:$0xf]  ;;  %v6621_v24 = vor.u32 %v8232_v16, %v6620_v15 }
 0x34d   :  { %4547 = vmatpush.bf16.msra.mxu3 %v6749_v27  ;;  %4522 = vmatpush.bf16.msrb.mxu1 %v6205_v36  ;;  %v8032_v22 = vld [vmem:[#allocation11 + $0xac] sm:$0xf0]  ;;  %v4259_v34 = vpop.f32.mrf.mxu0  ;;  %v4272_v36 = vpop.f32.mrf.mxu1  ;;  %v9291_v41 = vadd.f32 %v4296_v2, %v4284_v32 }
 0x34e   :  { %v6076_v25 = vld [vmem:[#allocation11 + $0x290] sm:$0xf]  ;;  %v5821_v37 = vor.u32 %v8032_v22, %v5820_v44 }
 0x34f   :  { %4535 = vmatpush.bf16.msra.mxu2 %v6461_v39  ;;  %4510 = vmatpush.bf16.msrb.mxu0 %v5917_v48  ;;  %v8096_v26 = vld [vmem:[#allocation11 + $0x2ac] sm:$0xf0] }
 0x350   :  { %v6332_v27 = vld [vmem:[#allocation11 + $0x490] sm:$0xf]  ;;  %v6077_v38 = vor.u32 %v8096_v26, %v6076_v25 }
 0x351   :  { %4548 = vmatpush.bf16.msra.mxu3 %v6717_v40  ;;  %4523 = vmatpush.bf16.msrb.mxu1 %v6173_v49  ;;  %v8160_v29 = vld [vmem:[#allocation11 + $0x4ac] sm:$0xf0] }
 0x352   :  { %v6588_v30 = vld [vmem:[#allocation11 + $0x690] sm:$0xf]  ;;  %v6333_v43 = vor.u32 %v8160_v29, %v6332_v27 }
 0x353   :  { %4536 = vmatpush.bf16.msra.mxu2 %v6429_v52  ;;  %4511 = vmatpush.bf16.msrb.mxu0 %v5885_v4  ;;  %v8224_v31 = vld [vmem:[#allocation11 + $0x6ac] sm:$0xf0]  ;;  %v4298_v4 = vpop.f32.mrf.mxu3 }
 0x354   :  { %v5788_v39 = vld [vmem:[#allocation11 + $0x50] sm:$0xf]  ;;  %v6589_v42 = vor.u32 %v8224_v31, %v6588_v30 }
 0x355   :  { %4549 = vmatpush.bf16.msra.mxu3 %v6685_v53  ;;  %4524 = vmatpush.bf16.msrb.mxu1 %v6141_v8  ;;  %v8024_v40 = vld [vmem:[#allocation11 + $0x6c] sm:$0xf0] }
 0x356   :  { %v6044_v45 = vld [vmem:[#allocation11 + $0x250] sm:$0xf]  ;;  %v5789_v52 = vor.u32 %v8024_v40, %v5788_v39 }
 0x357   :  { %4537 = vmatpush.bf16.msra.mxu2 %v6397_v60  ;;  %4512 = vmatpush.bf16.msrb.mxu0 %v5853_v17  ;;  %v8088_v46 = vld [vmem:[#allocation11 + $0x26c] sm:$0xf0] }
 0x358   :  { %v6300_v47 = vld [vmem:[#allocation11 + $0x450] sm:$0xf]  ;;  %v6045_v53 = vor.u32 %v8088_v46, %v6044_v45 }
 0x359   :  { %4550 = vmatpush.bf16.msra.mxu3 %v6653_v13  ;;  %4525 = vmatpush.bf16.msrb.mxu1 %v6109_v19  ;;  %v8152_v48 = vld [vmem:[#allocation11 + $0x46c] sm:$0xf0] }
 0x35a   :  { %v6556_v49 = vld [vmem:[#allocation11 + $0x650] sm:$0xf]  ;;  %v6301_v59 = vor.u32 %v8152_v48, %v6300_v47 }
 0x35b   :  { %4538 = vmatpush.bf16.msra.mxu2 %v6365_v23  ;;  %v8216_v50 = vld [vmem:[#allocation11 + $0x66c] sm:$0xf0]  ;;  %4513 = vmatpush.bf16.msrb.mxu0 %v5821_v37 }
 0x35c   :  { %v5756_v51 = vld [vmem:[#allocation11 + $0x10] sm:$0xf]  ;;  %v6557_v61 = vor.u32 %v8216_v50, %v6556_v49 }
 0x35d   :  { %4551 = vmatpush.bf16.msra.mxu3 %v6621_v24  ;;  %4526 = vmatpush.bf16.msrb.mxu1 %v6077_v38  ;;  %v8016_v54 = vld [vmem:[#allocation11 + $0x2c] sm:$0xf0] }
 0x35e   :  { %v6012_v56 = vld [vmem:[#allocation11 + $0x210] sm:$0xf]  ;;  %v5757_v3 = vor.u32 %v8016_v54, %v5756_v51 }
 0x35f   :  { %v8080_v57 = vld [vmem:[#allocation11 + $0x22c] sm:$0xf0]  ;;  %4539 = vmatpush.bf16.msra.mxu2 %v6333_v43  ;;  %4514 = vmatpush.bf16.msrb.mxu0 %v5789_v52 }
 0x360   :  { %v6268_v62 = vld [vmem:[#allocation11 + $0x410] sm:$0xf]  ;;  %v6013_v14 = vor.u32 %v8080_v57, %v6012_v56 }
 0x361   :  { %4552 = vmatpush.bf16.msra.mxu3 %v6589_v42  ;;  %v8144_v0 = vld [vmem:[#allocation11 + $0x42c] sm:$0xf0]  ;;  %4527 = vmatpush.bf16.msrb.mxu1 %v6045_v53 }
 0x362   :  { %v6524_v1 = vld [vmem:[#allocation11 + $0x610] sm:$0xf]  ;;  %v6269_v16 = vor.u32 %v8144_v0, %v6268_v62  ;;  %v4309_v62 = vpop.f32.mrf.mxu0  ;;  %v4322_v0 = vpop.f32.mrf.mxu1 }
 0x363   :  { %v8208_v8 = vld [vmem:[#allocation11 + $0x62c] sm:$0xf0]  ;;  %4540 = vmatpush.bf16.msra.mxu2 %v6301_v59  ;;  %4515 = vmatpush.bf16.msrb.mxu0 %v5757_v3 }
 0x364   :  { %v7004_v5 = vld [vmem:[#allocation11 + $0x9d0] sm:$0xf]  ;;  %v6525_v17 = vor.u32 %v8208_v8, %v6524_v1  ;;  %v4323_v1 = vadd.f32 %v4322_v0, %v4309_v62 }
 0x365   :  { %v8328_v10 = vld [vmem:[#allocation11 + $0x9ec] sm:$0xf0]  ;;  %4553 = vmatpush.bf16.msra.mxu3 %v6557_v61  ;;  %4528 = vmatpush.bf16.msrb.mxu1 %v6013_v14 }
 0x366   :  { %v7260_v60 = vld [vmem:[#allocation11 + $0xbd0] sm:$0xf]  ;;  %v7005_v19 = vor.u32 %v8328_v10, %v7004_v5  ;;  %4516 = vmatmul.bf16.vlgmr.msrb.gmra.mxu0 %v9226_v6 }
 0x367   :  { %v8392_v13 = vld [vmem:[#allocation11 + $0xbec] sm:$0xf0]  ;;  %4541 = vmatpush.bf16.msra.mxu2 %v6269_v16 }
 0x368   :  { %v7516_v11 = vld [vmem:[#allocation11 + $0xdd0] sm:$0xf]  ;;  %v7261_v44 = vor.u32 %v8392_v13, %v7260_v60  ;;  %4560 = vmatpush.bf16.msra.mxu0 %v7005_v19  ;;  %4529 = vmatmul.bf16.vlgmr.msrb.gmra.mxu1 %v9228_v20 }
 0x369   :  { %v8456_v7 = vld [vmem:[#allocation11 + $0xdec] sm:$0xf0]  ;;  %4554 = vmatpush.bf16.msra.mxu3 %v6525_v17 }
 0x36a   :  { %v7772_v55 = vld [vmem:[#allocation11 + $0xfd0] sm:$0xf]  ;;  %v7517_v24 = vor.u32 %v8456_v7, %v7516_v11  ;;  %4573 = vmatpush.bf16.msra.mxu1 %v7261_v44  ;;  %4542 = vmatmul.bf16.vlgmr.msra.gmra.mxu2 %v9230_v12 }
 0x36b   :  { %v8520_v15 = vld [vmem:[#allocation11 + $0xfec] sm:$0xf0] }
 0x36c   :  { %v6972_v22 = vld [vmem:[#allocation11 + $0x990] sm:$0xf]  ;;  %v7773_v25 = vor.u32 %v8520_v15, %v7772_v55  ;;  %4586 = vmatpush.bf16.msrb.mxu2 %v7517_v24  ;;  %4555 = vmatmul.bf16.vlgmr.msra.gmra.mxu3 %v9232_v21 }
 0x36d   :  { %v8320_v23 = vld [vmem:[#allocation11 + $0x9ac] sm:$0xf0] }
 0x36e   :  { %v7228_v26 = vld [vmem:[#allocation11 + $0xb90] sm:$0xf]  ;;  %v6973_v31 = vor.u32 %v8320_v23, %v6972_v22  ;;  %4599 = vmatpush.bf16.msrb.mxu3 %v7773_v25 }
 0x36f   :  { %v8384_v27 = vld [vmem:[#allocation11 + $0xbac] sm:$0xf0] }
 0x370   :  { %v7484_v28 = vld [vmem:[#allocation11 + $0xd90] sm:$0xf]  ;;  %v7229_v32 = vor.u32 %v8384_v27, %v7228_v26  ;;  %4561 = vmatpush.bf16.msra.mxu0 %v6973_v31  ;;  %v4335_v26 = vpop.f32.mrf.mxu2  ;;  %v4348_v27 = vpop.f32.mrf.mxu3 }
 0x371   :  { %v8448_v2 = vld [vmem:[#allocation11 + $0xdac] sm:$0xf0]  ;;  %v4311_v31 = vpop.f32.mrf.mxu0 }
 0x372   :  { %v7740_v29 = vld [vmem:[#allocation11 + $0xf90] sm:$0xf]  ;;  %v7485_v37 = vor.u32 %v8448_v2, %v7484_v28  ;;  %4574 = vmatpush.bf16.msra.mxu1 %v7229_v32  ;;  %v4324_v32 = vpop.f32.mrf.mxu1 }
 0x373   :  { %v8512_v30 = vld [vmem:[#allocation11 + $0xfac] sm:$0xf0]  ;;  %v8052_v32 = vld [vmem:[#allocation11 + $0x154] sm:$0xf] }
 0x374   :  { %v6940_v34 = vld [vmem:[#allocation11 + $0x950] sm:$0xf]  ;;  %v7741_v38 = vor.u32 %v8512_v30, %v7740_v29  ;;  %4587 = vmatpush.bf16.msrb.mxu2 %v7485_v37  ;;  %v4336_v30 = vadd.f32 %v4335_v26, %v4323_v1  ;;  %v6206_v26 = vld [vmem:[#allocation11 + $0x3b0] sm:$0xf0] }
 0x375   :  { %v8312_v36 = vld [vmem:[#allocation11 + $0x96c] sm:$0xf0] }
 0x376   :  { %v7196_v39 = vld [vmem:[#allocation11 + $0xb50] sm:$0xf]  ;;  %v6941_v47 = vor.u32 %v8312_v36, %v6940_v34  ;;  %4600 = vmatpush.bf16.msrb.mxu3 %v7741_v38 }
 0x377   :  { %v8376_v40 = vld [vmem:[#allocation11 + $0xb6c] sm:$0xf0] }
 0x378   :  { %v7452_v43 = vld [vmem:[#allocation11 + $0xd50] sm:$0xf]  ;;  %v7197_v48 = vor.u32 %v8376_v40, %v7196_v39  ;;  %4562 = vmatpush.bf16.msra.mxu0 %v6941_v47  ;;  %v9297_v39 = vadd.f32 %v4348_v27, %v4336_v30  ;;  %v4337_v1 = vpop.f32.mrf.mxu2  ;;  %v8188_v27 = vld [vmem:[#allocation11 + $0x594] sm:$0xf] }
 0x379   :  { %v8440_v42 = vld [vmem:[#allocation11 + $0xd6c] sm:$0xf0] }
 0x37a   :  { %v7708_v45 = vld [vmem:[#allocation11 + $0xf50] sm:$0xf]  ;;  %v7453_v51 = vor.u32 %v8440_v42, %v7452_v43  ;;  %4575 = vmatpush.bf16.msra.mxu1 %v7197_v48 }
 0x37b   :  { %v8504_v46 = vld [vmem:[#allocation11 + $0xf6c] sm:$0xf0] }
 0x37c   :  { %v6908_v49 = vld [vmem:[#allocation11 + $0x910] sm:$0xf]  ;;  %v7709_v52 = vor.u32 %v8504_v46, %v7708_v45  ;;  %4588 = vmatpush.bf16.msrb.mxu2 %v7453_v51 }
 0x37d   :  { %v8304_v50 = vld [vmem:[#allocation11 + $0x92c] sm:$0xf0] }
 0x37e   :  { %v7164_v53 = vld [vmem:[#allocation11 + $0xb10] sm:$0xf]  ;;  %v6909_v33 = vor.u32 %v8304_v50, %v6908_v49  ;;  %4601 = vmatpush.bf16.msrb.mxu3 %v7709_v52 }
 0x37f   :  { %v8368_v54 = vld [vmem:[#allocation11 + $0xb2c] sm:$0xf0] }
 0x380   :  { %v7420_v56 = vld [vmem:[#allocation11 + $0xd10] sm:$0xf]  ;;  %v7165_v4 = vor.u32 %v8368_v54, %v7164_v53  ;;  %4563 = vmatpush.bf16.msra.mxu0 %v6909_v33  ;;  %v4350_v33 = vpop.f32.mrf.mxu3 }
 0x381   :  { %v8432_v57 = vld [vmem:[#allocation11 + $0xd2c] sm:$0xf0] }
 0x382   :  { %v7676_v59 = vld [vmem:[#allocation11 + $0xf10] sm:$0xf]  ;;  %v7421_v10 = vor.u32 %v8432_v57, %v7420_v56  ;;  %4576 = vmatpush.bf16.msra.mxu1 %v7165_v4 }
 0x383   :  { %v8496_v61 = vld [vmem:[#allocation11 + $0xf2c] sm:$0xf0] }
 0x384   :  { %v6876_v8 = vld [vmem:[#allocation11 + $0x8d0] sm:$0xf]  ;;  %v7677_v60 = vor.u32 %v8496_v61, %v7676_v59  ;;  %4589 = vmatpush.bf16.msrb.mxu2 %v7421_v10  ;;  %v8132_v10 = vld [vmem:[#allocation11 + $0x3d4] sm:$0xf] }
 0x385   :  { %v8296_v5 = vld [vmem:[#allocation11 + $0x8ec] sm:$0xf0] }
 0x386   :  { %v7132_v13 = vld [vmem:[#allocation11 + $0xad0] sm:$0xf]  ;;  %v6877_v15 = vor.u32 %v8296_v5, %v6876_v8  ;;  %4602 = vmatpush.bf16.msrb.mxu3 %v7677_v60  ;;  %v8068_v8 = vld [vmem:[#allocation11 + $0x1d4] sm:$0xf] }
 0x387   :  { %v8360_v11 = vld [vmem:[#allocation11 + $0xaec] sm:$0xf0]  ;;  %v5982_v5 = vld [vmem:[#allocation11 + $0x1f0] sm:$0xf0] }
 0x388   :  { %v7388_v3 = vld [vmem:[#allocation11 + $0xcd0] sm:$0xf]  ;;  %v7133_v16 = vor.u32 %v8360_v11, %v7132_v13  ;;  %4564 = vmatpush.bf16.msra.mxu0 %v6877_v15  ;;  %v6238_v60 = vld [vmem:[#allocation11 + $0x3f0] sm:$0xf0] }
 0x389   :  { %v8424_v14 = vld [vmem:[#allocation11 + $0xcec] sm:$0xf0]  ;;  %v8196_v13 = vld [vmem:[#allocation11 + $0x5d4] sm:$0xf] }
 0x38a   :  { %v7644_v7 = vld [vmem:[#allocation11 + $0xed0] sm:$0xf]  ;;  %v7389_v44 = vor.u32 %v8424_v14, %v7388_v3  ;;  %4577 = vmatpush.bf16.msra.mxu1 %v7133_v16  ;;  %v6494_v14 = vld [vmem:[#allocation11 + $0x5f0] sm:$0xf0] }
 0x38b   :  { %v8488_v55 = vld [vmem:[#allocation11 + $0xeec] sm:$0xf0] }
 0x38c   :  { %v6844_v17 = vld [vmem:[#allocation11 + $0x890] sm:$0xf]  ;;  %v7645_v22 = vor.u32 %v8488_v55, %v7644_v7  ;;  %4590 = vmatpush.bf16.msrb.mxu2 %v7389_v44  ;;  %v8260_v7 = vld [vmem:[#allocation11 + $0x7d4] sm:$0xf] }
 0x38d   :  { %v8288_v19 = vld [vmem:[#allocation11 + $0x8ac] sm:$0xf0]  ;;  %v6750_v55 = vld [vmem:[#allocation11 + $0x7f0] sm:$0xf0] }
 0x38e   :  { %v7100_v23 = vld [vmem:[#allocation11 + $0xa90] sm:$0xf]  ;;  %v6845_v34 = vor.u32 %v8288_v19, %v6844_v17  ;;  %4603 = vmatpush.bf16.msrb.mxu3 %v7645_v22  ;;  %v5985_v17 = vor.u32 %v8068_v8, %v5982_v5  ;;  %v6241_v19 = vor.u32 %v8132_v10, %v6238_v60  ;;  %v8060_v44 = vld [vmem:[#allocation11 + $0x194] sm:$0xf] }
 0x38f   :  { %v8352_v24 = vld [vmem:[#allocation11 + $0xaac] sm:$0xf0]  ;;  %v5950_v22 = vld [vmem:[#allocation11 + $0x1b0] sm:$0xf0] }
 0x390   :  { %v7356_v25 = vld [vmem:[#allocation11 + $0xc90] sm:$0xf]  ;;  %v7101_v36 = vor.u32 %v8352_v24, %v7100_v23  ;;  %4565 = vmatpush.bf16.msra.mxu0 %v6845_v34  ;;  %v6497_v23 = vor.u32 %v8196_v13, %v6494_v14  ;;  %v6753_v24 = vor.u32 %v8260_v7, %v6750_v55  ;;  %v5953_v30 = vor.u32 %v8060_v44, %v5950_v22  ;;  %v5918_v34 = vld [vmem:[#allocation11 + $0x170] sm:$0xf0] }
 0x391   :  { %v8416_v28 = vld [vmem:[#allocation11 + $0xcac] sm:$0xf0]  ;;  %v8036_v8 = vld [vmem:[#allocation11 + $0xd4] sm:$0xf] }
 0x392   :  { %v7612_v2 = vld [vmem:[#allocation11 + $0xe90] sm:$0xf]  ;;  %v7357_v40 = vor.u32 %v8416_v28, %v7356_v25  ;;  %4578 = vmatpush.bf16.msra.mxu1 %v7101_v36  ;;  %v8124_v25 = vld [vmem:[#allocation11 + $0x394] sm:$0xf] }
 0x393   :  { %v8480_v29 = vld [vmem:[#allocation11 + $0xeac] sm:$0xf0]  ;;  %v6462_v28 = vld [vmem:[#allocation11 + $0x5b0] sm:$0xf0]  ;;  %v6209_v31 = vor.u32 %v8124_v25, %v6206_v26  ;;  %v4387_v26 = vpop.f32.mrf.mxu2 }
 0x394   :  { %v6812_v37 = vld [vmem:[#allocation11 + $0x850] sm:$0xf]  ;;  %v7613_v43 = vor.u32 %v8480_v29, %v7612_v2  ;;  %4591 = vmatpush.bf16.msrb.mxu2 %v7357_v40  ;;  %v8252_v2 = vld [vmem:[#allocation11 + $0x794] sm:$0xf]  ;;  %v6465_v36 = vor.u32 %v8188_v27, %v6462_v28  ;;  %v4400_v27 = vpop.f32.mrf.mxu3 }
 0x395   :  { %v8280_v38 = vld [vmem:[#allocation11 + $0x86c] sm:$0xf0]  ;;  %v6718_v29 = vld [vmem:[#allocation11 + $0x7b0] sm:$0xf0] }
 0x396   :  { %v7068_v42 = vld [vmem:[#allocation11 + $0xa50] sm:$0xf]  ;;  %v6813_v51 = vor.u32 %v8280_v38, %v6812_v37  ;;  %4604 = vmatpush.bf16.msrb.mxu3 %v7613_v43  ;;  %v6721_v37 = vor.u32 %v8252_v2, %v6718_v29  ;;  %v8116_v38 = vld [vmem:[#allocation11 + $0x354] sm:$0xf] }
 0x397   :  { %v8344_v45 = vld [vmem:[#allocation11 + $0xa6c] sm:$0xf0]  ;;  %v6174_v40 = vld [vmem:[#allocation11 + $0x370] sm:$0xf0] }
 0x398   :  { %v7324_v46 = vld [vmem:[#allocation11 + $0xc50] sm:$0xf]  ;;  %v7069_v52 = vor.u32 %v8344_v45, %v7068_v42  ;;  %4566 = vmatpush.bf16.msra.mxu0 %v6813_v51  ;;  %v8180_v43 = vld [vmem:[#allocation11 + $0x554] sm:$0xf] }
 0x399   :  { %v8408_v47 = vld [vmem:[#allocation11 + $0xc6c] sm:$0xf0]  ;;  %v6430_v42 = vld [vmem:[#allocation11 + $0x570] sm:$0xf0] }
 0x39a   :  { %v7580_v48 = vld [vmem:[#allocation11 + $0xe50] sm:$0xf]  ;;  %v7325_v57 = vor.u32 %v8408_v47, %v7324_v46  ;;  %4579 = vmatpush.bf16.msra.mxu1 %v7069_v52  ;;  %v8244_v45 = vld [vmem:[#allocation11 + $0x754] sm:$0xf]  ;;  %v5921_v47 = vor.u32 %v8052_v32, %v5918_v34  ;;  %v6433_v51 = vor.u32 %v8180_v43, %v6430_v42 }
 0x39b   :  { %v8472_v49 = vld [vmem:[#allocation11 + $0xe6c] sm:$0xf0]  ;;  %v6686_v46 = vld [vmem:[#allocation11 + $0x770] sm:$0xf0] }
 0x39c   :  { %v6780_v50 = vld [vmem:[#allocation11 + $0x810] sm:$0xf]  ;;  %v7581_v59 = vor.u32 %v8472_v49, %v7580_v48  ;;  %4592 = vmatpush.bf16.msrb.mxu2 %v7325_v57  ;;  %v6177_v48 = vor.u32 %v8116_v38, %v6174_v40  ;;  %v8044_v49 = vld [vmem:[#allocation11 + $0x114] sm:$0xf]  ;;  %v6689_v52 = vor.u32 %v8244_v45, %v6686_v46 }
 0x39d   :  { %v8272_v53 = vld [vmem:[#allocation11 + $0x82c] sm:$0xf0]  ;;  %v6398_v57 = vld [vmem:[#allocation11 + $0x530] sm:$0xf0] }
 0x39e   :  { %v7036_v54 = vld [vmem:[#allocation11 + $0xa10] sm:$0xf]  ;;  %v6781_v11 = vor.u32 %v8272_v53, %v6780_v50  ;;  %4605 = vmatpush.bf16.msrb.mxu3 %v7581_v59  ;;  %v5886_v50 = vld [vmem:[#allocation11 + $0x130] sm:$0xf0] }
 0x39f   :  { %v8336_v56 = vld [vmem:[#allocation11 + $0xa2c] sm:$0xf0]  ;;  %v8108_v53 = vld [vmem:[#allocation11 + $0x314] sm:$0xf]  ;;  %v5889_v33 = vor.u32 %v8044_v49, %v5886_v50 }
 0x3a0   :  { %v7292_v61 = vld [vmem:[#allocation11 + $0xc10] sm:$0xf]  ;;  %v7037_v3 = vor.u32 %v8336_v56, %v7036_v54  ;;  %4567 = vmatpush.bf16.msra.mxu0 %v6781_v11  ;;  %v6142_v54 = vld [vmem:[#allocation11 + $0x330] sm:$0xf0] }
 0x3a1   :  { %v8400_v62 = vld [vmem:[#allocation11 + $0xc2c] sm:$0xf0]  ;;  %v8172_v56 = vld [vmem:[#allocation11 + $0x514] sm:$0xf] }
 0x3a2   :  { %v7548_v0 = vld [vmem:[#allocation11 + $0xe10] sm:$0xf]  ;;  %v7293_v15 = vor.u32 %v8400_v62, %v7292_v61  ;;  %4580 = vmatpush.bf16.msra.mxu1 %v7037_v3  ;;  %v8236_v59 = vld [vmem:[#allocation11 + $0x714] sm:$0xf]  ;;  %v4361_v62 = vpop.f32.mrf.mxu0  ;;  %v6401_v10 = vor.u32 %v8172_v56, %v6398_v57 }
 0x3a3   :  { %v8464_v4 = vld [vmem:[#allocation11 + $0xe2c] sm:$0xf0]  ;;  %4568 = vmatmul.bf16.vlgmr.msra.gmra.mxu0 %v9250_v9  ;;  %v6654_v61 = vld [vmem:[#allocation11 + $0x730] sm:$0xf0]  ;;  %v4362_v1 = vadd.f32 %v4361_v62, %v9297_v39 }
 0x3a4   :  { %v7549_v16 = vor.u32 %v8464_v4, %v7548_v0  ;;  %4593 = vmatpush.bf16.msrb.mxu2 %v7293_v15  ;;  %4612 = vmatpush.bf16.msrb.mxu0 %v5985_v17  ;;  %v4374_v0 = vpop.f32.mrf.mxu1  ;;  %v6145_v4 = vor.u32 %v8108_v53, %v6142_v54  ;;  %v5854_v5 = vld [vmem:[#allocation11 + $0xf0] sm:$0xf0]  ;;  %v6657_v60 = vor.u32 %v8236_v59, %v6654_v61 }
 0x3a5   :  { %4581 = vmatmul.bf16.vlgmr.msra.gmra.mxu1 %v9252_v18  ;;  %v8100_v13 = vld [vmem:[#allocation11 + $0x2d4] sm:$0xf]  ;;  %v4375_v14 = vadd.f32 %v4374_v0, %v4362_v1 }
 0x3a6   :  { %4606 = vmatpush.bf16.msrb.mxu3 %v7549_v16  ;;  %4625 = vmatpush.bf16.msrb.mxu1 %v6241_v19  ;;  %v6110_v11 = vld [vmem:[#allocation11 + $0x2f0] sm:$0xf0]  ;;  %v5857_v16 = vor.u32 %v8036_v8, %v5854_v5 }
 0x3a7   :  { %4594 = vmatmul.bf16.vlgmr.msrb.gmra.mxu2 %v9254_v58  ;;  %v8164_v3 = vld [vmem:[#allocation11 + $0x4d4] sm:$0xf]  ;;  %v6113_v17 = vor.u32 %v8100_v13, %v6110_v11 }
 0x3a8   :  { %4638 = vmatpush.bf16.msra.mxu2 %v6497_v23  ;;  %4613 = vmatpush.bf16.msrb.mxu0 %v5953_v30  ;;  %v6366_v7 = vld [vmem:[#allocation11 + $0x4f0] sm:$0xf0]  ;;  %v4388_v30 = vadd.f32 %v4387_v26, %v4375_v14 }
 0x3a9   :  { %4607 = vmatmul.bf16.vlgmr.msrb.gmra.mxu3 %v9256_v63  ;;  %v8228_v55 = vld [vmem:[#allocation11 + $0x6d4] sm:$0xf]  ;;  %v6369_v44 = vor.u32 %v8164_v3, %v6366_v7 }
 0x3aa   :  { %4651 = vmatpush.bf16.msra.mxu3 %v6753_v24  ;;  %4626 = vmatpush.bf16.msrb.mxu1 %v6209_v31  ;;  %v6622_v15 = vld [vmem:[#allocation11 + $0x6f0] sm:$0xf0]  ;;  %v4363_v31 = vpop.f32.mrf.mxu0  ;;  %v9304_v40 = vadd.f32 %v4400_v27, %v4388_v30 }
 0x3ab   :  { %v8028_v39 = vld [vmem:[#allocation11 + $0x94] sm:$0xf]  ;;  %v6625_v22 = vor.u32 %v8228_v55, %v6622_v15 }
 0x3ac   :  { %4639 = vmatpush.bf16.msra.mxu2 %v6465_v36  ;;  %4614 = vmatpush.bf16.msrb.mxu0 %v5921_v47  ;;  %v5822_v19 = vld [vmem:[#allocation11 + $0xb0] sm:$0xf0]  ;;  %v4376_v32 = vpop.f32.mrf.mxu1 }
 0x3ad   :  { %v8092_v23 = vld [vmem:[#allocation11 + $0x294] sm:$0xf]  ;;  %v5825_v34 = vor.u32 %v8028_v39, %v5822_v19 }
 0x3ae   :  { %4652 = vmatpush.bf16.msra.mxu3 %v6721_v37  ;;  %4627 = vmatpush.bf16.msrb.mxu1 %v6177_v48  ;;  %v6078_v24 = vld [vmem:[#allocation11 + $0x2b0] sm:$0xf0] }
 0x3af   :  { %v8156_v25 = vld [vmem:[#allocation11 + $0x494] sm:$0xf]  ;;  %v6081_v36 = vor.u32 %v8092_v23, %v6078_v24 }
 0x3b0   :  { %4640 = vmatpush.bf16.msra.mxu2 %v6433_v51  ;;  %4615 = vmatpush.bf16.msrb.mxu0 %v5889_v33  ;;  %v6334_v28 = vld [vmem:[#allocation11 + $0x4b0] sm:$0xf0]  ;;  %v4389_v33 = vpop.f32.mrf.mxu2 }
 0x3b1   :  { %v8220_v2 = vld [vmem:[#allocation11 + $0x694] sm:$0xf]  ;;  %v6337_v43 = vor.u32 %v8156_v25, %v6334_v28 }
 0x3b2   :  { %4653 = vmatpush.bf16.msra.mxu3 %v6689_v52  ;;  %4628 = vmatpush.bf16.msrb.mxu1 %v6145_v4  ;;  %v6590_v29 = vld [vmem:[#allocation11 + $0x6b0] sm:$0xf0]  ;;  %v4402_v4 = vpop.f32.mrf.mxu3 }
 0x3b3   :  { %v8020_v37 = vld [vmem:[#allocation11 + $0x54] sm:$0xf]  ;;  %v6593_v42 = vor.u32 %v8220_v2, %v6590_v29 }
 0x3b4   :  { %4641 = vmatpush.bf16.msra.mxu2 %v6401_v10  ;;  %4616 = vmatpush.bf16.msrb.mxu0 %v5857_v16  ;;  %v5790_v38 = vld [vmem:[#allocation11 + $0x70] sm:$0xf0] }
 0x3b5   :  { %v8084_v45 = vld [vmem:[#allocation11 + $0x254] sm:$0xf]  ;;  %v5793_v52 = vor.u32 %v8020_v37, %v5790_v38 }
 0x3b6   :  { %4654 = vmatpush.bf16.msra.mxu3 %v6657_v60  ;;  %4629 = vmatpush.bf16.msrb.mxu1 %v6113_v17  ;;  %v6046_v46 = vld [vmem:[#allocation11 + $0x270] sm:$0xf0] }
 0x3b7   :  { %v8148_v47 = vld [vmem:[#allocation11 + $0x454] sm:$0xf]  ;;  %v6049_v53 = vor.u32 %v8084_v45, %v6046_v46 }
 0x3b8   :  { %4642 = vmatpush.bf16.msra.mxu2 %v6369_v44  ;;  %v6302_v48 = vld [vmem:[#allocation11 + $0x470] sm:$0xf0]  ;;  %4617 = vmatpush.bf16.msrb.mxu0 %v5825_v34 }
 0x3b9   :  { %v8212_v49 = vld [vmem:[#allocation11 + $0x654] sm:$0xf]  ;;  %v6305_v59 = vor.u32 %v8148_v47, %v6302_v48 }
 0x3ba   :  { %4655 = vmatpush.bf16.msra.mxu3 %v6625_v22  ;;  %v6558_v50 = vld [vmem:[#allocation11 + $0x670] sm:$0xf0]  ;;  %4630 = vmatpush.bf16.msrb.mxu1 %v6081_v36 }
 0x3bb   :  { %v8012_v51 = vld [vmem:[#allocation11 + $0x14] sm:$0xf]  ;;  %v6561_v61 = vor.u32 %v8212_v49, %v6558_v50 }
 0x3bc   :  { %v5758_v54 = vld [vmem:[#allocation11 + $0x30] sm:$0xf0]  ;;  %4643 = vmatpush.bf16.msra.mxu2 %v6337_v43  ;;  %4618 = vmatpush.bf16.msrb.mxu0 %v5793_v52 }
 0x3bd   :  { %v8076_v56 = vld [vmem:[#allocation11 + $0x214] sm:$0xf]  ;;  %v5761_v3 = vor.u32 %v8012_v51, %v5758_v54 }
 0x3be   :  { %v6014_v57 = vld [vmem:[#allocation11 + $0x230] sm:$0xf0]  ;;  %4656 = vmatpush.bf16.msra.mxu3 %v6593_v42  ;;  %4631 = vmatpush.bf16.msrb.mxu1 %v6049_v53 }
 0x3bf   :  { %v8140_v62 = vld [vmem:[#allocation11 + $0x414] sm:$0xf]  ;;  %v6017_v14 = vor.u32 %v8076_v56, %v6014_v57 }
 0x3c0   :  { %v6270_v0 = vld [vmem:[#allocation11 + $0x430] sm:$0xf0]  ;;  %4644 = vmatpush.bf16.msra.mxu2 %v6305_v59  ;;  %4619 = vmatpush.bf16.msrb.mxu0 %v5761_v3 }
 0x3c1   :  { %v8204_v1 = vld [vmem:[#allocation11 + $0x614] sm:$0xf]  ;;  %v6273_v16 = vor.u32 %v8140_v62, %v6270_v0  ;;  %v4413_v0 = vpop.f32.mrf.mxu0 }
 0x3c2   :  { %v6526_v8 = vld [vmem:[#allocation11 + $0x630] sm:$0xf0]  ;;  %4657 = vmatpush.bf16.msra.mxu3 %v6561_v61  ;;  %4632 = vmatpush.bf16.msrb.mxu1 %v6017_v14 }
 0x3c3   :  { %v8324_v5 = vld [vmem:[#allocation11 + $0x9d4] sm:$0xf]  ;;  %v6529_v17 = vor.u32 %v8204_v1, %v6526_v8  ;;  %4620 = vmatmul.bf16.vlgmr.msrb.gmra.mxu0 %v9226_v6  ;;  %v4426_v1 = vpop.f32.mrf.mxu1 }
 0x3c4   :  { %v7006_v10 = vld [vmem:[#allocation11 + $0x9f0] sm:$0xf0]  ;;  %4645 = vmatpush.bf16.msra.mxu2 %v6273_v16  ;;  %v4427_v33 = vadd.f32 %v4426_v1, %v4413_v0 }
 0x3c5   :  { %v8388_v60 = vld [vmem:[#allocation11 + $0xbd4] sm:$0xf]  ;;  %v7009_v39 = vor.u32 %v8324_v5, %v7006_v10  ;;  %4633 = vmatmul.bf16.vlgmr.msrb.gmra.mxu1 %v9228_v20 }
 0x3c6   :  { %v7262_v13 = vld [vmem:[#allocation11 + $0xbf0] sm:$0xf0]  ;;  %4658 = vmatpush.bf16.msra.mxu3 %v6529_v17 }
 0x3c7   :  { %v8452_v11 = vld [vmem:[#allocation11 + $0xdd4] sm:$0xf]  ;;  %v7265_v19 = vor.u32 %v8388_v60, %v7262_v13  ;;  %4664 = vmatpush.bf16.msra.mxu0 %v7009_v39  ;;  %4646 = vmatmul.bf16.vlgmr.msra.gmra.mxu2 %v9230_v12 }
 0x3c8   :  { %v7518_v7 = vld [vmem:[#allocation11 + $0xdf0] sm:$0xf0] }
 0x3c9   :  { %v8516_v55 = vld [vmem:[#allocation11 + $0xfd4] sm:$0xf]  ;;  %v7521_v23 = vor.u32 %v8452_v11, %v7518_v7  ;;  %4677 = vmatpush.bf16.msra.mxu1 %v7265_v19  ;;  %4659 = vmatmul.bf16.vlgmr.msra.gmra.mxu3 %v9232_v21 }
 0x3ca   :  { %v7774_v15 = vld [vmem:[#allocation11 + $0xff0] sm:$0xf0] }
 0x3cb   :  { %v8316_v44 = vld [vmem:[#allocation11 + $0x994] sm:$0xf]  ;;  %v7777_v24 = vor.u32 %v8516_v55, %v7774_v15  ;;  %4690 = vmatpush.bf16.msrb.mxu2 %v7521_v23 }
 0x3cc   :  { %v6974_v22 = vld [vmem:[#allocation11 + $0x9b0] sm:$0xf0] }
 0x3cd   :  { %v8380_v25 = vld [vmem:[#allocation11 + $0xb94] sm:$0xf]  ;;  %v6977_v30 = vor.u32 %v8316_v44, %v6974_v22  ;;  %4703 = vmatpush.bf16.msrb.mxu3 %v7777_v24 }
 0x3ce   :  { %v7230_v26 = vld [vmem:[#allocation11 + $0xbb0] sm:$0xf0] }
 0x3cf   :  { %v8444_v27 = vld [vmem:[#allocation11 + $0xd94] sm:$0xf]  ;;  %v7233_v31 = vor.u32 %v8380_v25, %v7230_v26  ;;  %4665 = vmatpush.bf16.msra.mxu0 %v6977_v30  ;;  %v4439_v26 = vpop.f32.mrf.mxu2 }
 0x3d0   :  { %v7486_v28 = vld [vmem:[#allocation11 + $0xdb0] sm:$0xf0]  ;;  %v4440_v30 = vadd.f32 %v4439_v26, %v4427_v33  ;;  %v6212_v26 = vld [vmem:[#allocation11 + $0x398] sm:$0xf] }
 0x3d1   :  { %v8508_v2 = vld [vmem:[#allocation11 + $0xf94] sm:$0xf]  ;;  %v7489_v36 = vor.u32 %v8444_v27, %v7486_v28  ;;  %4678 = vmatpush.bf16.msra.mxu1 %v7233_v31  ;;  %v4452_v27 = vpop.f32.mrf.mxu3  ;;  %v4415_v31 = vpop.f32.mrf.mxu0 }
 0x3d2   :  { %v7742_v29 = vld [vmem:[#allocation11 + $0xfb0] sm:$0xf0] }
 0x3d3   :  { %v8308_v32 = vld [vmem:[#allocation11 + $0x954] sm:$0xf]  ;;  %v7745_v37 = vor.u32 %v8508_v2, %v7742_v29  ;;  %4691 = vmatpush.bf16.msrb.mxu2 %v7489_v36 }
 0x3d4   :  { %v6942_v34 = vld [vmem:[#allocation11 + $0x970] sm:$0xf0] }
 0x3d5   :  { %v8372_v38 = vld [vmem:[#allocation11 + $0xb54] sm:$0xf]  ;;  %v6945_v48 = vor.u32 %v8308_v32, %v6942_v34  ;;  %4704 = vmatpush.bf16.msrb.mxu3 %v7745_v37  ;;  %v4428_v32 = vpop.f32.mrf.mxu1 }
 0x3d6   :  { %v7198_v43 = vld [vmem:[#allocation11 + $0xb70] sm:$0xf0] }
 0x3d7   :  { %v8436_v42 = vld [vmem:[#allocation11 + $0xd54] sm:$0xf]  ;;  %v7201_v49 = vor.u32 %v8372_v38, %v7198_v43  ;;  %4666 = vmatpush.bf16.msra.mxu0 %v6945_v48  ;;  %v9310_v43 = vadd.f32 %v4452_v27, %v4440_v30  ;;  %v8129_v27 = vld [vmem:[#allocation11 + $0x3b4] sm:$0xf0] }
 0x3d8   :  { %v7454_v45 = vld [vmem:[#allocation11 + $0xd70] sm:$0xf0]  ;;  %v8257_v30 = vld [vmem:[#allocation11 + $0x7b4] sm:$0xf0]  ;;  %v6213_v32 = vor.u32 %v8129_v27, %v6212_v26 }
 0x3d9   :  { %v8500_v46 = vld [vmem:[#allocation11 + $0xf54] sm:$0xf]  ;;  %v7457_v52 = vor.u32 %v8436_v42, %v7454_v45  ;;  %4679 = vmatpush.bf16.msra.mxu1 %v7201_v49  ;;  %v8097_v26 = vld [vmem:[#allocation11 + $0x2b4] sm:$0xf0] }
 0x3da   :  { %v7710_v47 = vld [vmem:[#allocation11 + $0xf70] sm:$0xf0]  ;;  %v6340_v27 = vld [vmem:[#allocation11 + $0x498] sm:$0xf] }
 0x3db   :  { %v8300_v50 = vld [vmem:[#allocation11 + $0x914] sm:$0xf]  ;;  %v7713_v53 = vor.u32 %v8500_v46, %v7710_v47  ;;  %4692 = vmatpush.bf16.msrb.mxu2 %v7457_v52 }
 0x3dc   :  { %v6910_v51 = vld [vmem:[#allocation11 + $0x930] sm:$0xf0] }
 0x3dd   :  { %v8364_v54 = vld [vmem:[#allocation11 + $0xb14] sm:$0xf]  ;;  %v6913_v4 = vor.u32 %v8300_v50, %v6910_v51  ;;  %4705 = vmatpush.bf16.msrb.mxu3 %v7713_v53 }
 0x3de   :  { %v7166_v56 = vld [vmem:[#allocation11 + $0xb30] sm:$0xf0] }
 0x3df   :  { %v8428_v57 = vld [vmem:[#allocation11 + $0xd14] sm:$0xf]  ;;  %v7169_v8 = vor.u32 %v8364_v54, %v7166_v56  ;;  %4667 = vmatpush.bf16.msra.mxu0 %v6913_v4  ;;  %v4441_v4 = vpop.f32.mrf.mxu2 }
 0x3e0   :  { %v7422_v59 = vld [vmem:[#allocation11 + $0xd30] sm:$0xf0]  ;;  %v4478_v4 = vpop.f32.mrf.mxu1 }
 0x3e1   :  { %v8492_v61 = vld [vmem:[#allocation11 + $0xf14] sm:$0xf]  ;;  %v7425_v60 = vor.u32 %v8428_v57, %v7422_v59  ;;  %4680 = vmatpush.bf16.msra.mxu1 %v7169_v8  ;;  %v4454_v8 = vpop.f32.mrf.mxu3 }
 0x3e2   :  { %v7678_v62 = vld [vmem:[#allocation11 + $0xf30] sm:$0xf0] }
 0x3e3   :  { %v8292_v5 = vld [vmem:[#allocation11 + $0x8d4] sm:$0xf]  ;;  %v7681_v13 = vor.u32 %v8492_v61, %v7678_v62  ;;  %4693 = vmatpush.bf16.msrb.mxu2 %v7425_v60  ;;  %v8073_v60 = vld [vmem:[#allocation11 + $0x1f4] sm:$0xf0] }
 0x3e4   :  { %v6878_v10 = vld [vmem:[#allocation11 + $0x8f0] sm:$0xf0] }
 0x3e5   :  { %v8356_v11 = vld [vmem:[#allocation11 + $0xad4] sm:$0xf]  ;;  %v6881_v16 = vor.u32 %v8292_v5, %v6878_v10  ;;  %4706 = vmatpush.bf16.msrb.mxu3 %v7681_v13  ;;  %v5988_v10 = vld [vmem:[#allocation11 + $0x1d8] sm:$0xf] }
 0x3e6   :  { %v7134_v3 = vld [vmem:[#allocation11 + $0xaf0] sm:$0xf0]  ;;  %v6244_v13 = vld [vmem:[#allocation11 + $0x3d8] sm:$0xf] }
 0x3e7   :  { %v8420_v14 = vld [vmem:[#allocation11 + $0xcd4] sm:$0xf]  ;;  %v7137_v17 = vor.u32 %v8356_v11, %v7134_v3  ;;  %4668 = vmatpush.bf16.msra.mxu0 %v6881_v16  ;;  %v8137_v11 = vld [vmem:[#allocation11 + $0x3f4] sm:$0xf0] }
 0x3e8   :  { %v7390_v7 = vld [vmem:[#allocation11 + $0xcf0] sm:$0xf0]  ;;  %v6500_v3 = vld [vmem:[#allocation11 + $0x5d8] sm:$0xf] }
 0x3e9   :  { %v8484_v55 = vld [vmem:[#allocation11 + $0xed4] sm:$0xf]  ;;  %v7393_v44 = vor.u32 %v8420_v14, %v7390_v7  ;;  %4681 = vmatpush.bf16.msra.mxu1 %v7137_v17  ;;  %v8265_v16 = vld [vmem:[#allocation11 + $0x7f4] sm:$0xf0] }
 0x3ea   :  { %v7646_v15 = vld [vmem:[#allocation11 + $0xef0] sm:$0xf0] }
 0x3eb   :  { %v8284_v39 = vld [vmem:[#allocation11 + $0x894] sm:$0xf]  ;;  %v7649_v22 = vor.u32 %v8484_v55, %v7646_v15  ;;  %4694 = vmatpush.bf16.msrb.mxu2 %v7393_v44  ;;  %v8201_v55 = vld [vmem:[#allocation11 + $0x5f4] sm:$0xf0]  ;;  %v6245_v44 = vor.u32 %v8137_v11, %v6244_v13 }
 0x3ec   :  { %v6846_v19 = vld [vmem:[#allocation11 + $0x8b0] sm:$0xf0]  ;;  %v6756_v15 = vld [vmem:[#allocation11 + $0x7d8] sm:$0xf] }
 0x3ed   :  { %v8348_v23 = vld [vmem:[#allocation11 + $0xa94] sm:$0xf]  ;;  %v6849_v34 = vor.u32 %v8284_v39, %v6846_v19  ;;  %4707 = vmatpush.bf16.msrb.mxu3 %v7649_v22  ;;  %v5989_v19 = vor.u32 %v8073_v60, %v5988_v10  ;;  %v5956_v22 = vld [vmem:[#allocation11 + $0x198] sm:$0xf] }
 0x3ee   :  { %v7102_v24 = vld [vmem:[#allocation11 + $0xab0] sm:$0xf0]  ;;  %v5860_v60 = vld [vmem:[#allocation11 + $0xd8] sm:$0xf] }
 0x3ef   :  { %v8412_v25 = vld [vmem:[#allocation11 + $0xc94] sm:$0xf]  ;;  %v7105_v36 = vor.u32 %v8348_v23, %v7102_v24  ;;  %4669 = vmatpush.bf16.msra.mxu0 %v6849_v34  ;;  %v8065_v23 = vld [vmem:[#allocation11 + $0x1b4] sm:$0xf0]  ;;  %v6501_v24 = vor.u32 %v8201_v55, %v6500_v3 }
 0x3f0   :  { %v7358_v28 = vld [vmem:[#allocation11 + $0xcb0] sm:$0xf0]  ;;  %v5957_v31 = vor.u32 %v8065_v23, %v5956_v22  ;;  %v5924_v34 = vld [vmem:[#allocation11 + $0x158] sm:$0xf] }
 0x3f1   :  { %v8476_v2 = vld [vmem:[#allocation11 + $0xe94] sm:$0xf]  ;;  %v7361_v42 = vor.u32 %v8412_v25, %v7358_v28  ;;  %4682 = vmatpush.bf16.msra.mxu1 %v7105_v36  ;;  %v6757_v25 = vor.u32 %v8265_v16, %v6756_v15  ;;  %v6468_v28 = vld [vmem:[#allocation11 + $0x598] sm:$0xf] }
 0x3f2   :  { %v7614_v29 = vld [vmem:[#allocation11 + $0xeb0] sm:$0xf0]  ;;  %v8057_v36 = vld [vmem:[#allocation11 + $0x174] sm:$0xf0] }
 0x3f3   :  { %v8276_v37 = vld [vmem:[#allocation11 + $0x854] sm:$0xf]  ;;  %v7617_v45 = vor.u32 %v8476_v2, %v7614_v29  ;;  %4695 = vmatpush.bf16.msrb.mxu2 %v7361_v42  ;;  %v8193_v2 = vld [vmem:[#allocation11 + $0x5b4] sm:$0xf0] }
 0x3f4   :  { %v6814_v38 = vld [vmem:[#allocation11 + $0x870] sm:$0xf0]  ;;  %v6724_v29 = vld [vmem:[#allocation11 + $0x798] sm:$0xf] }
 0x3f5   :  { %v8340_v46 = vld [vmem:[#allocation11 + $0xa54] sm:$0xf]  ;;  %v6817_v53 = vor.u32 %v8276_v37, %v6814_v38  ;;  %4708 = vmatpush.bf16.msrb.mxu3 %v7617_v45  ;;  %v6469_v37 = vor.u32 %v8193_v2, %v6468_v28  ;;  %v6725_v38 = vor.u32 %v8257_v30, %v6724_v29  ;;  %v6180_v42 = vld [vmem:[#allocation11 + $0x358] sm:$0xf]  ;;  %v4491_v28 = vpop.f32.mrf.mxu2  ;;  %v4504_v2 = vpop.f32.mrf.mxu3 }
 0x3f6   :  { %v7070_v47 = vld [vmem:[#allocation11 + $0xa70] sm:$0xf0]  ;;  %v8121_v45 = vld [vmem:[#allocation11 + $0x374] sm:$0xf0] }
 0x3f7   :  { %v8404_v48 = vld [vmem:[#allocation11 + $0xc54] sm:$0xf]  ;;  %v7073_v54 = vor.u32 %v8340_v46, %v7070_v47  ;;  %4670 = vmatpush.bf16.msra.mxu0 %v6817_v53  ;;  %v6436_v46 = vld [vmem:[#allocation11 + $0x558] sm:$0xf] }
 0x3f8   :  { %v7326_v49 = vld [vmem:[#allocation11 + $0xc70] sm:$0xf0]  ;;  %v8185_v47 = vld [vmem:[#allocation11 + $0x574] sm:$0xf0] }
 0x3f9   :  { %v8468_v50 = vld [vmem:[#allocation11 + $0xe54] sm:$0xf]  ;;  %v7329_v61 = vor.u32 %v8404_v48, %v7326_v49  ;;  %4683 = vmatpush.bf16.msra.mxu1 %v7073_v54  ;;  %v6692_v48 = vld [vmem:[#allocation11 + $0x758] sm:$0xf]  ;;  %v6437_v54 = vor.u32 %v8185_v47, %v6436_v46 }
 0x3fa   :  { %v7582_v51 = vld [vmem:[#allocation11 + $0xe70] sm:$0xf0]  ;;  %v8249_v49 = vld [vmem:[#allocation11 + $0x774] sm:$0xf0] }
 0x3fb   :  { %v8268_v52 = vld [vmem:[#allocation11 + $0x814] sm:$0xf]  ;;  %v7585_v62 = vor.u32 %v8468_v50, %v7582_v51  ;;  %4696 = vmatpush.bf16.msrb.mxu2 %v7329_v61  ;;  %v5925_v50 = vor.u32 %v8057_v36, %v5924_v34  ;;  %v6181_v51 = vor.u32 %v8121_v45, %v6180_v42  ;;  %v8049_v53 = vld [vmem:[#allocation11 + $0x134] sm:$0xf0]  ;;  %v4480_v36 = vpop.f32.mrf.mxu1 }
 0x3fc   :  { %v6782_v56 = vld [vmem:[#allocation11 + $0x830] sm:$0xf0]  ;;  %v6404_v61 = vld [vmem:[#allocation11 + $0x518] sm:$0xf] }
 0x3fd   :  { %v8332_v57 = vld [vmem:[#allocation11 + $0xa14] sm:$0xf]  ;;  %v6785_v14 = vor.u32 %v8268_v52, %v6782_v56  ;;  %4709 = vmatpush.bf16.msrb.mxu3 %v7585_v62  ;;  %v5892_v52 = vld [vmem:[#allocation11 + $0x118] sm:$0xf]  ;;  %v6693_v56 = vor.u32 %v8249_v49, %v6692_v48 }
 0x3fe   :  { %v7038_v59 = vld [vmem:[#allocation11 + $0xa30] sm:$0xf0]  ;;  %v8177_v62 = vld [vmem:[#allocation11 + $0x534] sm:$0xf0] }
 0x3ff   :  { %v8396_v0 = vld [vmem:[#allocation11 + $0xc14] sm:$0xf]  ;;  %v7041_v7 = vor.u32 %v8332_v57, %v7038_v59  ;;  %4671 = vmatpush.bf16.msra.mxu0 %v6785_v14  ;;  %v6148_v57 = vld [vmem:[#allocation11 + $0x318] sm:$0xf]  ;;  %v6405_v11 = vor.u32 %v8177_v62, %v6404_v61 }
 0x400   :  { %v7294_v1 = vld [vmem:[#allocation11 + $0xc30] sm:$0xf0]  ;;  %v8113_v59 = vld [vmem:[#allocation11 + $0x334] sm:$0xf0] }
 0x401   :  { %v8460_v33 = vld [vmem:[#allocation11 + $0xe14] sm:$0xf]  ;;  %v7297_v17 = vor.u32 %v8396_v0, %v7294_v1  ;;  %4684 = vmatpush.bf16.msra.mxu1 %v7041_v7  ;;  %v6660_v0 = vld [vmem:[#allocation11 + $0x718] sm:$0xf]  ;;  %v6149_v10 = vor.u32 %v8113_v59, %v6148_v57 }
 0x402   :  { %v7550_v5 = vld [vmem:[#allocation11 + $0xe30] sm:$0xf0]  ;;  %4672 = vmatmul.bf16.vlgmr.msra.gmra.mxu0 %v9250_v9  ;;  %v8241_v1 = vld [vmem:[#allocation11 + $0x734] sm:$0xf0] }
 0x403   :  { %v7553_v39 = vor.u32 %v8460_v33, %v7550_v5  ;;  %4697 = vmatpush.bf16.msrb.mxu2 %v7297_v17  ;;  %4716 = vmatpush.bf16.msrb.mxu0 %v5989_v19  ;;  %v4465_v33 = vpop.f32.mrf.mxu0  ;;  %v5893_v5 = vor.u32 %v8049_v53, %v5892_v52  ;;  %v8041_v13 = vld [vmem:[#allocation11 + $0xf4] sm:$0xf0]  ;;  %v6661_v3 = vor.u32 %v8241_v1, %v6660_v0 }
 0x404   :  { %4685 = vmatmul.bf16.vlgmr.msra.gmra.mxu1 %v9252_v18  ;;  %v4466_v8 = vadd.f32 %v4465_v33, %v9310_v43  ;;  %v6116_v14 = vld [vmem:[#allocation11 + $0x2d8] sm:$0xf]  ;;  %v5861_v19 = vor.u32 %v8041_v13, %v5860_v60  ;;  %v4506_v60 = vpop.f32.mrf.mxu3 }
 0x405   :  { %4710 = vmatpush.bf16.msrb.mxu3 %v7553_v39  ;;  %4729 = vmatpush.bf16.msrb.mxu1 %v6245_v44  ;;  %v8105_v7 = vld [vmem:[#allocation11 + $0x2f4] sm:$0xf0] }
 0x406   :  { %4698 = vmatmul.bf16.vlgmr.msrb.gmra.mxu2 %v9254_v58  ;;  %v6372_v55 = vld [vmem:[#allocation11 + $0x4d8] sm:$0xf]  ;;  %v4479_v15 = vadd.f32 %v4478_v4, %v4466_v8  ;;  %v6117_v44 = vor.u32 %v8105_v7, %v6116_v14 }
 0x407   :  { %4742 = vmatpush.bf16.msra.mxu2 %v6501_v24  ;;  %4717 = vmatpush.bf16.msrb.mxu0 %v5957_v31  ;;  %v8169_v16 = vld [vmem:[#allocation11 + $0x4f4] sm:$0xf0] }
 0x408   :  { %4711 = vmatmul.bf16.vlgmr.msrb.gmra.mxu3 %v9256_v63  ;;  %v6628_v17 = vld [vmem:[#allocation11 + $0x6d8] sm:$0xf]  ;;  %v6373_v23 = vor.u32 %v8169_v16, %v6372_v55 }
 0x409   :  { %4755 = vmatpush.bf16.msra.mxu3 %v6757_v25  ;;  %4730 = vmatpush.bf16.msrb.mxu1 %v6213_v32  ;;  %v8233_v39 = vld [vmem:[#allocation11 + $0x6f4] sm:$0xf0]  ;;  %v4492_v32 = vadd.f32 %v4491_v28, %v4479_v15 }
 0x40a   :  { %v5828_v43 = vld [vmem:[#allocation11 + $0x98] sm:$0xf]  ;;  %v6629_v24 = vor.u32 %v8233_v39, %v6628_v17 }
 0x40b   :  { %4743 = vmatpush.bf16.msra.mxu2 %v6469_v37  ;;  %4718 = vmatpush.bf16.msrb.mxu0 %v5925_v50  ;;  %v8033_v22 = vld [vmem:[#allocation11 + $0xb4] sm:$0xf0]  ;;  %v4467_v34 = vpop.f32.mrf.mxu0  ;;  %v9317_v46 = vadd.f32 %v4504_v2, %v4492_v32 }
 0x40c   :  { %v6084_v25 = vld [vmem:[#allocation11 + $0x298] sm:$0xf]  ;;  %v5829_v37 = vor.u32 %v8033_v22, %v5828_v43 }
 0x40d   :  { %4756 = vmatpush.bf16.msra.mxu3 %v6725_v38  ;;  %4731 = vmatpush.bf16.msrb.mxu1 %v6181_v51  ;;  %v8161_v29 = vld [vmem:[#allocation11 + $0x4b4] sm:$0xf0]  ;;  %v6085_v38 = vor.u32 %v8097_v26, %v6084_v25 }
 0x40e   :  { %v6596_v30 = vld [vmem:[#allocation11 + $0x698] sm:$0xf]  ;;  %v6341_v47 = vor.u32 %v8161_v29, %v6340_v27 }
 0x40f   :  { %4744 = vmatpush.bf16.msra.mxu2 %v6437_v54  ;;  %4719 = vmatpush.bf16.msrb.mxu0 %v5893_v5  ;;  %v8225_v31 = vld [vmem:[#allocation11 + $0x6b4] sm:$0xf0] }
 0x410   :  { %v5796_v42 = vld [vmem:[#allocation11 + $0x58] sm:$0xf]  ;;  %v6597_v48 = vor.u32 %v8225_v31, %v6596_v30 }
 0x411   :  { %4757 = vmatpush.bf16.msra.mxu3 %v6693_v56  ;;  %4732 = vmatpush.bf16.msrb.mxu1 %v6149_v10  ;;  %v8025_v45 = vld [vmem:[#allocation11 + $0x74] sm:$0xf0]  ;;  %v4493_v10 = vpop.f32.mrf.mxu2 }
 0x412   :  { %v6052_v49 = vld [vmem:[#allocation11 + $0x258] sm:$0xf]  ;;  %v5797_v57 = vor.u32 %v8025_v45, %v5796_v42  ;;  %v4530_v10 = vpop.f32.mrf.mxu1 }
 0x413   :  { %4745 = vmatpush.bf16.msra.mxu2 %v6405_v11  ;;  %4720 = vmatpush.bf16.msrb.mxu0 %v5861_v19  ;;  %v8089_v50 = vld [vmem:[#allocation11 + $0x274] sm:$0xf0] }
 0x414   :  { %v6308_v51 = vld [vmem:[#allocation11 + $0x458] sm:$0xf]  ;;  %v6053_v59 = vor.u32 %v8089_v50, %v6052_v49 }
 0x415   :  { %4758 = vmatpush.bf16.msra.mxu3 %v6661_v3  ;;  %4733 = vmatpush.bf16.msrb.mxu1 %v6117_v44  ;;  %v8153_v52 = vld [vmem:[#allocation11 + $0x474] sm:$0xf0] }
 0x416   :  { %v6564_v53 = vld [vmem:[#allocation11 + $0x658] sm:$0xf]  ;;  %v6309_v1 = vor.u32 %v8153_v52, %v6308_v51 }
 0x417   :  { %4746 = vmatpush.bf16.msra.mxu2 %v6373_v23  ;;  %v8217_v54 = vld [vmem:[#allocation11 + $0x674] sm:$0xf0]  ;;  %4721 = vmatpush.bf16.msrb.mxu0 %v5829_v37 }
 0x418   :  { %v5764_v56 = vld [vmem:[#allocation11 + $0x18] sm:$0xf]  ;;  %v6565_v33 = vor.u32 %v8217_v54, %v6564_v53 }
 0x419   :  { %4759 = vmatpush.bf16.msra.mxu3 %v6629_v24  ;;  %4734 = vmatpush.bf16.msrb.mxu1 %v6085_v38  ;;  %v8017_v61 = vld [vmem:[#allocation11 + $0x34] sm:$0xf0] }
 0x41a   :  { %v6020_v62 = vld [vmem:[#allocation11 + $0x218] sm:$0xf]  ;;  %v5765_v15 = vor.u32 %v8017_v61, %v5764_v56 }
 0x41b   :  { %v8081_v0 = vld [vmem:[#allocation11 + $0x234] sm:$0xf0]  ;;  %4747 = vmatpush.bf16.msra.mxu2 %v6341_v47  ;;  %4722 = vmatpush.bf16.msrb.mxu0 %v5797_v57 }
 0x41c   :  { %v6276_v4 = vld [vmem:[#allocation11 + $0x418] sm:$0xf]  ;;  %v6021_v16 = vor.u32 %v8081_v0, %v6020_v62 }
 0x41d   :  { %4760 = vmatpush.bf16.msra.mxu3 %v6597_v48  ;;  %v8145_v8 = vld [vmem:[#allocation11 + $0x434] sm:$0xf0]  ;;  %4735 = vmatpush.bf16.msrb.mxu1 %v6053_v59 }
 0x41e   :  { %v6532_v5 = vld [vmem:[#allocation11 + $0x618] sm:$0xf]  ;;  %v6277_v44 = vor.u32 %v8145_v8, %v6276_v4 }
 0x41f   :  { %v8209_v13 = vld [vmem:[#allocation11 + $0x634] sm:$0xf0]  ;;  %4748 = vmatpush.bf16.msra.mxu2 %v6309_v1  ;;  %4723 = vmatpush.bf16.msrb.mxu0 %v5765_v15 }
 0x420   :  { %v7012_v11 = vld [vmem:[#allocation11 + $0x9d8] sm:$0xf]  ;;  %v6533_v43 = vor.u32 %v8209_v13, %v6532_v5  ;;  %v4517_v5 = vpop.f32.mrf.mxu0 }
 0x421   :  { %v8329_v3 = vld [vmem:[#allocation11 + $0x9f4] sm:$0xf0]  ;;  %4761 = vmatpush.bf16.msra.mxu3 %v6565_v33  ;;  %4736 = vmatpush.bf16.msrb.mxu1 %v6021_v16  ;;  %v4531_v60 = vadd.f32 %v4530_v10, %v4517_v5 }
 0x422   :  { %v7268_v14 = vld [vmem:[#allocation11 + $0xbd8] sm:$0xf]  ;;  %v7013_v22 = vor.u32 %v8329_v3, %v7012_v11  ;;  %4724 = vmatmul.bf16.vlgmr.msrb.gmra.mxu0 %v9226_v6 }
 0x423   :  { %v8393_v7 = vld [vmem:[#allocation11 + $0xbf4] sm:$0xf0]  ;;  %4749 = vmatpush.bf16.msra.mxu2 %v6277_v44 }
 0x424   :  { %v7524_v55 = vld [vmem:[#allocation11 + $0xdd8] sm:$0xf]  ;;  %v7269_v23 = vor.u32 %v8393_v7, %v7268_v14  ;;  %4768 = vmatpush.bf16.msra.mxu0 %v7013_v22  ;;  %4737 = vmatmul.bf16.vlgmr.msrb.gmra.mxu1 %v9228_v20 }
 0x425   :  { %v8457_v17 = vld [vmem:[#allocation11 + $0xdf4] sm:$0xf0]  ;;  %4762 = vmatpush.bf16.msra.mxu3 %v6533_v43 }
 0x426   :  { %v7780_v39 = vld [vmem:[#allocation11 + $0xfd8] sm:$0xf]  ;;  %v7525_v26 = vor.u32 %v8457_v17, %v7524_v55  ;;  %4781 = vmatpush.bf16.msra.mxu1 %v7269_v23  ;;  %4750 = vmatmul.bf16.vlgmr.msra.gmra.mxu2 %v9230_v12 }
 0x427   :  { %v8521_v19 = vld [vmem:[#allocation11 + $0xff4] sm:$0xf0] }
 0x428   :  { %v6980_v24 = vld [vmem:[#allocation11 + $0x998] sm:$0xf]  ;;  %v7781_v27 = vor.u32 %v8521_v19, %v7780_v39  ;;  %4794 = vmatpush.bf16.msrb.mxu2 %v7525_v26  ;;  %4763 = vmatmul.bf16.vlgmr.msra.gmra.mxu3 %v9232_v21 }
 0x429   :  { %v8321_v25 = vld [vmem:[#allocation11 + $0x9b4] sm:$0xf0] }
 0x42a   :  { %v7236_v28 = vld [vmem:[#allocation11 + $0xb98] sm:$0xf]  ;;  %v6981_v34 = vor.u32 %v8321_v25, %v6980_v24  ;;  %4807 = vmatpush.bf16.msrb.mxu3 %v7781_v27 }
 0x42b   :  { %v8385_v2 = vld [vmem:[#allocation11 + $0xbb4] sm:$0xf0] }
 0x42c   :  { %v7492_v29 = vld [vmem:[#allocation11 + $0xd98] sm:$0xf]  ;;  %v7237_v36 = vor.u32 %v8385_v2, %v7236_v28  ;;  %4769 = vmatpush.bf16.msra.mxu0 %v6981_v34 }
 0x42d   :  { %v8449_v30 = vld [vmem:[#allocation11 + $0xdb4] sm:$0xf0] }
 0x42e   :  { %v7748_v31 = vld [vmem:[#allocation11 + $0xf98] sm:$0xf]  ;;  %v7493_v42 = vor.u32 %v8449_v30, %v7492_v29  ;;  %4782 = vmatpush.bf16.msra.mxu1 %v7237_v36  ;;  %v4543_v29 = vpop.f32.mrf.mxu2  ;;  %v4556_v30 = vpop.f32.mrf.mxu3 }
 0x42f   :  { %v8513_v32 = vld [vmem:[#allocation11 + $0xfb4] sm:$0xf0]  ;;  %v4544_v36 = vadd.f32 %v4543_v29, %v4531_v60 }
 0x430   :  { %v6948_v37 = vld [vmem:[#allocation11 + $0x958] sm:$0xf]  ;;  %v7749_v45 = vor.u32 %v8513_v32, %v7748_v31  ;;  %4795 = vmatpush.bf16.msrb.mxu2 %v7493_v42 }
 0x431   :  { %v8313_v38 = vld [vmem:[#allocation11 + $0x974] sm:$0xf0] }
 0x432   :  { %v7204_v47 = vld [vmem:[#allocation11 + $0xb58] sm:$0xf]  ;;  %v6949_v53 = vor.u32 %v8313_v38, %v6948_v37  ;;  %4808 = vmatpush.bf16.msrb.mxu3 %v7749_v45  ;;  %v4519_v37 = vpop.f32.mrf.mxu0  ;;  %v4532_v38 = vpop.f32.mrf.mxu1 }
 0x433   :  { %v8377_v48 = vld [vmem:[#allocation11 + $0xb74] sm:$0xf0]  ;;  %v6726_v37 = vld [vmem:[#allocation11 + $0x7b8] sm:$0xf0] }
 0x434   :  { %v7460_v49 = vld [vmem:[#allocation11 + $0xd58] sm:$0xf]  ;;  %v7205_v54 = vor.u32 %v8377_v48, %v7204_v47  ;;  %4770 = vmatpush.bf16.msra.mxu0 %v6949_v53 }
 0x435   :  { %v8441_v50 = vld [vmem:[#allocation11 + $0xd74] sm:$0xf0] }
 0x436   :  { %v7716_v51 = vld [vmem:[#allocation11 + $0xf58] sm:$0xf]  ;;  %v7461_v59 = vor.u32 %v8441_v50, %v7460_v49  ;;  %4783 = vmatpush.bf16.msra.mxu1 %v7205_v54  ;;  %v9323_v49 = vadd.f32 %v4556_v30, %v4544_v36  ;;  %v8125_v30 = vld [vmem:[#allocation11 + $0x39c] sm:$0xf] }
 0x437   :  { %v8505_v52 = vld [vmem:[#allocation11 + $0xf74] sm:$0xf0]  ;;  %v8253_v36 = vld [vmem:[#allocation11 + $0x79c] sm:$0xf] }
 0x438   :  { %v6916_v56 = vld [vmem:[#allocation11 + $0x918] sm:$0xf]  ;;  %v7717_v61 = vor.u32 %v8505_v52, %v7716_v51  ;;  %4796 = vmatpush.bf16.msrb.mxu2 %v7461_v59 }
 0x439   :  { %v8305_v57 = vld [vmem:[#allocation11 + $0x934] sm:$0xf0] }
 0x43a   :  { %v7172_v62 = vld [vmem:[#allocation11 + $0xb18] sm:$0xf]  ;;  %v6917_v13 = vor.u32 %v8305_v57, %v6916_v56  ;;  %4809 = vmatpush.bf16.msrb.mxu3 %v7717_v61 }
 0x43b   :  { %v8369_v0 = vld [vmem:[#allocation11 + $0xb34] sm:$0xf0] }
 0x43c   :  { %v7428_v1 = vld [vmem:[#allocation11 + $0xd18] sm:$0xf]  ;;  %v7173_v11 = vor.u32 %v8369_v0, %v7172_v62  ;;  %4771 = vmatpush.bf16.msra.mxu0 %v6917_v13 }
 0x43d   :  { %v8433_v33 = vld [vmem:[#allocation11 + $0xd34] sm:$0xf0] }
 0x43e   :  { %v7684_v4 = vld [vmem:[#allocation11 + $0xf18] sm:$0xf]  ;;  %v7429_v7 = vor.u32 %v8433_v33, %v7428_v1  ;;  %4784 = vmatpush.bf16.msra.mxu1 %v7173_v11  ;;  %v4545_v11 = vpop.f32.mrf.mxu2 }
 0x43f   :  { %v8497_v8 = vld [vmem:[#allocation11 + $0xf34] sm:$0xf0]  ;;  %v4569_v11 = vpop.f32.mrf.mxu0 }
 0x440   :  { %v6884_v3 = vld [vmem:[#allocation11 + $0x8d8] sm:$0xf]  ;;  %v7685_v55 = vor.u32 %v8497_v8, %v7684_v4  ;;  %4797 = vmatpush.bf16.msrb.mxu2 %v7429_v7  ;;  %v8069_v7 = vld [vmem:[#allocation11 + $0x1dc] sm:$0xf] }
 0x441   :  { %v8297_v14 = vld [vmem:[#allocation11 + $0x8f4] sm:$0xf0] }
 0x442   :  { %v7140_v15 = vld [vmem:[#allocation11 + $0xad8] sm:$0xf]  ;;  %v6885_v43 = vor.u32 %v8297_v14, %v6884_v3  ;;  %4810 = vmatpush.bf16.msrb.mxu3 %v7685_v55  ;;  %v4558_v3 = vpop.f32.mrf.mxu3  ;;  %v5990_v55 = vld [vmem:[#allocation11 + $0x1f8] sm:$0xf0] }
 0x443   :  { %v8361_v16 = vld [vmem:[#allocation11 + $0xaf4] sm:$0xf0]  ;;  %v4582_v3 = vpop.f32.mrf.mxu1 }
 0x444   :  { %v7396_v17 = vld [vmem:[#allocation11 + $0xcd8] sm:$0xf]  ;;  %v7141_v22 = vor.u32 %v8361_v16, %v7140_v15  ;;  %4772 = vmatpush.bf16.msra.mxu0 %v6885_v43  ;;  %v8133_v15 = vld [vmem:[#allocation11 + $0x3dc] sm:$0xf] }
 0x445   :  { %v8425_v39 = vld [vmem:[#allocation11 + $0xcf4] sm:$0xf0]  ;;  %v6246_v16 = vld [vmem:[#allocation11 + $0x3f8] sm:$0xf0] }
 0x446   :  { %v7652_v19 = vld [vmem:[#allocation11 + $0xed8] sm:$0xf]  ;;  %v7397_v25 = vor.u32 %v8425_v39, %v7396_v17  ;;  %4785 = vmatpush.bf16.msra.mxu1 %v7141_v22  ;;  %v8197_v17 = vld [vmem:[#allocation11 + $0x5dc] sm:$0xf] }
 0x447   :  { %v8489_v44 = vld [vmem:[#allocation11 + $0xef4] sm:$0xf0]  ;;  %v8261_v43 = vld [vmem:[#allocation11 + $0x7dc] sm:$0xf] }
 0x448   :  { %v6852_v23 = vld [vmem:[#allocation11 + $0x898] sm:$0xf]  ;;  %v7653_v26 = vor.u32 %v8489_v44, %v7652_v19  ;;  %4798 = vmatpush.bf16.msrb.mxu2 %v7397_v25  ;;  %v6502_v44 = vld [vmem:[#allocation11 + $0x5f8] sm:$0xf0]  ;;  %v5993_v25 = vor.u32 %v8069_v7, %v5990_v55 }
 0x449   :  { %v8289_v24 = vld [vmem:[#allocation11 + $0x8b4] sm:$0xf0]  ;;  %v6758_v22 = vld [vmem:[#allocation11 + $0x7f8] sm:$0xf0] }
 0x44a   :  { %v7108_v27 = vld [vmem:[#allocation11 + $0xa98] sm:$0xf]  ;;  %v6853_v42 = vor.u32 %v8289_v24, %v6852_v23  ;;  %4811 = vmatpush.bf16.msrb.mxu3 %v7653_v26  ;;  %v6249_v26 = vor.u32 %v8133_v15, %v6246_v16  ;;  %v6761_v29 = vor.u32 %v8261_v43, %v6758_v22  ;;  %v8037_v15 = vld [vmem:[#allocation11 + $0xdc] sm:$0xf] }
 0x44b   :  { %v8353_v28 = vld [vmem:[#allocation11 + $0xab4] sm:$0xf0]  ;;  %v5862_v16 = vld [vmem:[#allocation11 + $0xf8] sm:$0xf0] }
 0x44c   :  { %v7364_v2 = vld [vmem:[#allocation11 + $0xc98] sm:$0xf]  ;;  %v7109_v45 = vor.u32 %v8353_v28, %v7108_v27  ;;  %4773 = vmatpush.bf16.msra.mxu0 %v6853_v42  ;;  %v8061_v27 = vld [vmem:[#allocation11 + $0x19c] sm:$0xf] }
 0x44d   :  { %v8417_v31 = vld [vmem:[#allocation11 + $0xcb4] sm:$0xf0]  ;;  %v5958_v28 = vld [vmem:[#allocation11 + $0x1b8] sm:$0xf0] }
 0x44e   :  { %v7620_v32 = vld [vmem:[#allocation11 + $0xe98] sm:$0xf]  ;;  %v7365_v50 = vor.u32 %v8417_v31, %v7364_v2  ;;  %4786 = vmatpush.bf16.msra.mxu1 %v7109_v45  ;;  %v6505_v2 = vor.u32 %v8197_v17, %v6502_v44  ;;  %v6214_v31 = vld [vmem:[#allocation11 + $0x3b8] sm:$0xf0]  ;;  %v5961_v38 = vor.u32 %v8061_v27, %v5958_v28 }
 0x44f   :  { %v8481_v34 = vld [vmem:[#allocation11 + $0xeb4] sm:$0xf0]  ;;  %v6217_v42 = vor.u32 %v8125_v30, %v6214_v31  ;;  %v8053_v45 = vld [vmem:[#allocation11 + $0x15c] sm:$0xf] }
 0x450   :  { %v6820_v47 = vld [vmem:[#allocation11 + $0x858] sm:$0xf]  ;;  %v7621_v51 = vor.u32 %v8481_v34, %v7620_v32  ;;  %4799 = vmatpush.bf16.msrb.mxu2 %v7365_v50  ;;  %v8189_v32 = vld [vmem:[#allocation11 + $0x59c] sm:$0xf]  ;;  %v6729_v50 = vor.u32 %v8253_v36, %v6726_v37  ;;  %v4608_v36 = vpop.f32.mrf.mxu3 }
 0x451   :  { %v8281_v48 = vld [vmem:[#allocation11 + $0x874] sm:$0xf0]  ;;  %v6470_v34 = vld [vmem:[#allocation11 + $0x5b8] sm:$0xf0] }
 0x452   :  { %v7076_v52 = vld [vmem:[#allocation11 + $0xa58] sm:$0xf]  ;;  %v6821_v62 = vor.u32 %v8281_v48, %v6820_v47  ;;  %4812 = vmatpush.bf16.msrb.mxu3 %v7621_v51  ;;  %v5926_v47 = vld [vmem:[#allocation11 + $0x178] sm:$0xf0]  ;;  %v6473_v48 = vor.u32 %v8189_v32, %v6470_v34  ;;  %v4595_v34 = vpop.f32.mrf.mxu2 }
 0x453   :  { %v8345_v53 = vld [vmem:[#allocation11 + $0xa74] sm:$0xf0]  ;;  %v8117_v51 = vld [vmem:[#allocation11 + $0x35c] sm:$0xf] }
 0x454   :  { %v7332_v54 = vld [vmem:[#allocation11 + $0xc58] sm:$0xf]  ;;  %v7077_v0 = vor.u32 %v8345_v53, %v7076_v52  ;;  %4774 = vmatpush.bf16.msra.mxu0 %v6821_v62  ;;  %v6182_v52 = vld [vmem:[#allocation11 + $0x378] sm:$0xf0] }
 0x455   :  { %v8409_v56 = vld [vmem:[#allocation11 + $0xc74] sm:$0xf0]  ;;  %v8181_v53 = vld [vmem:[#allocation11 + $0x55c] sm:$0xf] }
 0x456   :  { %v7588_v57 = vld [vmem:[#allocation11 + $0xe58] sm:$0xf]  ;;  %v7333_v8 = vor.u32 %v8409_v56, %v7332_v54  ;;  %4787 = vmatpush.bf16.msra.mxu1 %v7077_v0  ;;  %v6438_v54 = vld [vmem:[#allocation11 + $0x578] sm:$0xf0] }
 0x457   :  { %v8473_v59 = vld [vmem:[#allocation11 + $0xe74] sm:$0xf0]  ;;  %v8245_v56 = vld [vmem:[#allocation11 + $0x75c] sm:$0xf] }
 0x458   :  { %v6788_v61 = vld [vmem:[#allocation11 + $0x818] sm:$0xf]  ;;  %v7589_v5 = vor.u32 %v8473_v59, %v7588_v57  ;;  %4800 = vmatpush.bf16.msrb.mxu2 %v7333_v8  ;;  %v6694_v57 = vld [vmem:[#allocation11 + $0x778] sm:$0xf0]  ;;  %v5929_v59 = vor.u32 %v8053_v45, %v5926_v47  ;;  %v4571_v47 = vpop.f32.mrf.mxu0 }
 0x459   :  { %v8273_v1 = vld [vmem:[#allocation11 + $0x834] sm:$0xf0]  ;;  %v8045_v62 = vld [vmem:[#allocation11 + $0x11c] sm:$0xf] }
 0x45a   :  { %v7044_v33 = vld [vmem:[#allocation11 + $0xa18] sm:$0xf]  ;;  %v6789_v39 = vor.u32 %v8273_v1, %v6788_v61  ;;  %4813 = vmatpush.bf16.msrb.mxu3 %v7589_v5  ;;  %v6185_v61 = vor.u32 %v8117_v51, %v6182_v52  ;;  %v5894_v0 = vld [vmem:[#allocation11 + $0x138] sm:$0xf0]  ;;  %v6441_v1 = vor.u32 %v8181_v53, %v6438_v54 }
 0x45b   :  { %v8337_v4 = vld [vmem:[#allocation11 + $0xa34] sm:$0xf0]  ;;  %v6150_v8 = vld [vmem:[#allocation11 + $0x338] sm:$0xf0]  ;;  %v5897_v7 = vor.u32 %v8045_v62, %v5894_v0 }
 0x45c   :  { %v7300_v10 = vld [vmem:[#allocation11 + $0xc18] sm:$0xf]  ;;  %v7045_v19 = vor.u32 %v8337_v4, %v7044_v33  ;;  %4775 = vmatpush.bf16.msra.mxu0 %v6789_v39  ;;  %v6697_v33 = vor.u32 %v8245_v56, %v6694_v57  ;;  %v8109_v4 = vld [vmem:[#allocation11 + $0x31c] sm:$0xf] }
 0x45d   :  { %v8401_v60 = vld [vmem:[#allocation11 + $0xc34] sm:$0xf0]  ;;  %v8173_v5 = vld [vmem:[#allocation11 + $0x51c] sm:$0xf]  ;;  %v6153_v55 = vor.u32 %v8109_v4, %v6150_v8 }
 0x45e   :  { %v7556_v13 = vld [vmem:[#allocation11 + $0xe18] sm:$0xf]  ;;  %v7301_v23 = vor.u32 %v8401_v60, %v7300_v10  ;;  %4788 = vmatpush.bf16.msra.mxu1 %v7045_v19  ;;  %v6406_v10 = vld [vmem:[#allocation11 + $0x538] sm:$0xf0] }
 0x45f   :  { %v8465_v14 = vld [vmem:[#allocation11 + $0xe34] sm:$0xf0]  ;;  %4776 = vmatmul.bf16.vlgmr.msra.gmra.mxu0 %v9250_v9  ;;  %v8237_v60 = vld [vmem:[#allocation11 + $0x71c] sm:$0xf]  ;;  %v6409_v17 = vor.u32 %v8173_v5, %v6406_v10 }
 0x460   :  { %v7557_v24 = vor.u32 %v8465_v14, %v7556_v13  ;;  %4801 = vmatpush.bf16.msrb.mxu2 %v7301_v23  ;;  %4820 = vmatpush.bf16.msrb.mxu0 %v5993_v25  ;;  %v6662_v13 = vld [vmem:[#allocation11 + $0x738] sm:$0xf0]  ;;  %v4570_v14 = vadd.f32 %v4569_v11, %v9323_v49 }
 0x461   :  { %4789 = vmatmul.bf16.vlgmr.msra.gmra.mxu1 %v9252_v18  ;;  %v6665_v39 = vor.u32 %v8237_v60, %v6662_v13  ;;  %v8101_v19 = vld [vmem:[#allocation11 + $0x2dc] sm:$0xf] }
 0x462   :  { %4814 = vmatpush.bf16.msrb.mxu3 %v7557_v24  ;;  %4833 = vmatpush.bf16.msrb.mxu1 %v6249_v26  ;;  %v6118_v44 = vld [vmem:[#allocation11 + $0x2f8] sm:$0xf0]  ;;  %v4583_v22 = vadd.f32 %v4582_v3, %v4570_v14  ;;  %v5865_v26 = vor.u32 %v8037_v15, %v5862_v16  ;;  %v4597_v16 = vpop.f32.mrf.mxu2 }
 0x463   :  { %4802 = vmatmul.bf16.vlgmr.msrb.gmra.mxu2 %v9254_v58  ;;  %v8165_v43 = vld [vmem:[#allocation11 + $0x4dc] sm:$0xf]  ;;  %v6121_v27 = vor.u32 %v8101_v19, %v6118_v44 }
 0x464   :  { %4846 = vmatpush.bf16.msra.mxu2 %v6505_v2  ;;  %4821 = vmatpush.bf16.msrb.mxu0 %v5961_v38  ;;  %v6374_v23 = vld [vmem:[#allocation11 + $0x4f8] sm:$0xf0]  ;;  %v4596_v45 = vadd.f32 %v4595_v34, %v4583_v22 }
 0x465   :  { %4815 = vmatmul.bf16.vlgmr.msrb.gmra.mxu3 %v9256_v63  ;;  %v8229_v24 = vld [vmem:[#allocation11 + $0x6dc] sm:$0xf]  ;;  %v6377_v2 = vor.u32 %v8165_v43, %v6374_v23 }
 0x466   :  { %4859 = vmatpush.bf16.msra.mxu3 %v6761_v29  ;;  %4834 = vmatpush.bf16.msrb.mxu1 %v6217_v42  ;;  %v6630_v25 = vld [vmem:[#allocation11 + $0x6f8] sm:$0xf0]  ;;  %v9330_v54 = vadd.f32 %v4608_v36, %v4596_v45 }
 0x467   :  { %v8029_v49 = vld [vmem:[#allocation11 + $0x9c] sm:$0xf]  ;;  %v6633_v29 = vor.u32 %v8229_v24, %v6630_v25 }
 0x468   :  { %4847 = vmatpush.bf16.msra.mxu2 %v6473_v48  ;;  %4822 = vmatpush.bf16.msrb.mxu0 %v5929_v59  ;;  %v5830_v28 = vld [vmem:[#allocation11 + $0xb8] sm:$0xf0]  ;;  %v4584_v48 = vpop.f32.mrf.mxu1  ;;  %v4924_v4 = vmax.f32 %v9278_v35, %v9330_v54 }
 0x469   :  { %v8093_v30 = vld [vmem:[#allocation11 + $0x29c] sm:$0xf] }
 0x46a   :  { %4860 = vmatpush.bf16.msra.mxu3 %v6729_v50  ;;  %4835 = vmatpush.bf16.msrb.mxu1 %v6185_v61  ;;  %v6086_v31 = vld [vmem:[#allocation11 + $0x2b8] sm:$0xf0]  ;;  %v5833_v50 = vor.u32 %v8029_v49, %v5830_v28 }
 0x46b   :  { %v8157_v32 = vld [vmem:[#allocation11 + $0x49c] sm:$0xf]  ;;  %v6089_v51 = vor.u32 %v8093_v30, %v6086_v31 }
 0x46c   :  { %4848 = vmatpush.bf16.msra.mxu2 %v6441_v1  ;;  %4823 = vmatpush.bf16.msrb.mxu0 %v5897_v7  ;;  %v6342_v37 = vld [vmem:[#allocation11 + $0x4b8] sm:$0xf0] }
 0x46d   :  { %v8221_v38 = vld [vmem:[#allocation11 + $0x69c] sm:$0xf]  ;;  %v6345_v56 = vor.u32 %v8157_v32, %v6342_v37 }
 0x46e   :  { %4861 = vmatpush.bf16.msra.mxu3 %v6697_v33  ;;  %4836 = vmatpush.bf16.msrb.mxu1 %v6153_v55  ;;  %v6598_v42 = vld [vmem:[#allocation11 + $0x6b8] sm:$0xf0] }
 0x46f   :  { %v8021_v52 = vld [vmem:[#allocation11 + $0x5c] sm:$0xf]  ;;  %v6601_v57 = vor.u32 %v8221_v38, %v6598_v42 }
 0x470   :  { %4849 = vmatpush.bf16.msra.mxu2 %v6409_v17  ;;  %4824 = vmatpush.bf16.msrb.mxu0 %v5865_v26  ;;  %v5798_v53 = vld [vmem:[#allocation11 + $0x78] sm:$0xf0]  ;;  %v4610_v17 = vpop.f32.mrf.mxu3 }
 0x471   :  { %v8085_v59 = vld [vmem:[#allocation11 + $0x25c] sm:$0xf]  ;;  %v5801_v5 = vor.u32 %v8021_v52, %v5798_v53 }
 0x472   :  { %4862 = vmatpush.bf16.msra.mxu3 %v6665_v39  ;;  %4837 = vmatpush.bf16.msrb.mxu1 %v6121_v27  ;;  %v6054_v61 = vld [vmem:[#allocation11 + $0x278] sm:$0xf0] }
 0x473   :  { %v8149_v62 = vld [vmem:[#allocation11 + $0x45c] sm:$0xf]  ;;  %v6057_v10 = vor.u32 %v8085_v59, %v6054_v61 }
 0x474   :  { %4850 = vmatpush.bf16.msra.mxu2 %v6377_v2  ;;  %v6310_v0 = vld [vmem:[#allocation11 + $0x478] sm:$0xf0]  ;;  %4825 = vmatpush.bf16.msrb.mxu0 %v5833_v50 }
 0x475   :  { %v8213_v1 = vld [vmem:[#allocation11 + $0x65c] sm:$0xf]  ;;  %v6313_v3 = vor.u32 %v8149_v62, %v6310_v0 }
 0x476   :  { %4863 = vmatpush.bf16.msra.mxu3 %v6633_v29  ;;  %v6566_v33 = vld [vmem:[#allocation11 + $0x678] sm:$0xf0]  ;;  %4838 = vmatpush.bf16.msrb.mxu1 %v6089_v51 }
 0x477   :  { %v8013_v8 = vld [vmem:[#allocation11 + $0x1c] sm:$0xf]  ;;  %v6569_v14 = vor.u32 %v8213_v1, %v6566_v33 }
 0x478   :  { %v5766_v60 = vld [vmem:[#allocation11 + $0x38] sm:$0xf0]  ;;  %4851 = vmatpush.bf16.msra.mxu2 %v6345_v56  ;;  %4826 = vmatpush.bf16.msrb.mxu0 %v5801_v5 }
 0x479   :  { %v8077_v13 = vld [vmem:[#allocation11 + $0x21c] sm:$0xf]  ;;  %v5769_v24 = vor.u32 %v8013_v8, %v5766_v60 }
 0x47a   :  { %v6022_v11 = vld [vmem:[#allocation11 + $0x238] sm:$0xf0]  ;;  %4864 = vmatpush.bf16.msra.mxu3 %v6601_v57  ;;  %4839 = vmatpush.bf16.msrb.mxu1 %v6057_v10 }
 0x47b   :  { %v8141_v7 = vld [vmem:[#allocation11 + $0x41c] sm:$0xf]  ;;  %v6025_v25 = vor.u32 %v8077_v13, %v6022_v11 }
 0x47c   :  { %v6278_v55 = vld [vmem:[#allocation11 + $0x438] sm:$0xf0]  ;;  %4852 = vmatpush.bf16.msra.mxu2 %v6313_v3  ;;  %4827 = vmatpush.bf16.msrb.mxu0 %v5769_v24 }
 0x47d   :  { %v8205_v15 = vld [vmem:[#allocation11 + $0x61c] sm:$0xf]  ;;  %v6281_v28 = vor.u32 %v8141_v7, %v6278_v55 }
 0x47e   :  { %v6534_v39 = vld [vmem:[#allocation11 + $0x638] sm:$0xf0]  ;;  %4865 = vmatpush.bf16.msra.mxu3 %v6569_v14  ;;  %4840 = vmatpush.bf16.msrb.mxu1 %v6025_v25 }
 0x47f   :  { %v8325_v19 = vld [vmem:[#allocation11 + $0x9dc] sm:$0xf]  ;;  %v6537_v2 = vor.u32 %v8205_v15, %v6534_v39  ;;  %4828 = vmatmul.bf16.vlgmr.msrb.gmra.mxu0 %v9226_v6  ;;  %v4621_v15 = vpop.f32.mrf.mxu0 }
 0x480   :  { %v7014_v44 = vld [vmem:[#allocation11 + $0x9f8] sm:$0xf0]  ;;  %4853 = vmatpush.bf16.msra.mxu2 %v6281_v28 }
 0x481   :  { %v8389_v43 = vld [vmem:[#allocation11 + $0xbdc] sm:$0xf]  ;;  %v7017_v29 = vor.u32 %v8325_v19, %v7014_v44  ;;  %4841 = vmatmul.bf16.vlgmr.msrb.gmra.mxu1 %v9228_v20 }
 0x482   :  { %v7270_v22 = vld [vmem:[#allocation11 + $0xbf8] sm:$0xf0]  ;;  %4866 = vmatpush.bf16.msra.mxu3 %v6537_v2 }
 0x483   :  { %v8453_v23 = vld [vmem:[#allocation11 + $0xddc] sm:$0xf]  ;;  %v7273_v30 = vor.u32 %v8389_v43, %v7270_v22  ;;  %4872 = vmatpush.bf16.msra.mxu0 %v7017_v29  ;;  %4854 = vmatmul.bf16.vlgmr.msra.gmra.mxu2 %v9230_v12  ;;  %v4634_v12 = vpop.f32.mrf.mxu1 }
 0x484   :  { %v7526_v26 = vld [vmem:[#allocation11 + $0xdf8] sm:$0xf0] }
 0x485   :  { %v8517_v27 = vld [vmem:[#allocation11 + $0xfdc] sm:$0xf]  ;;  %v7529_v34 = vor.u32 %v8453_v23, %v7526_v26  ;;  %4885 = vmatpush.bf16.msra.mxu1 %v7273_v30  ;;  %4867 = vmatmul.bf16.vlgmr.msra.gmra.mxu3 %v9232_v21  ;;  %v4635_v21 = vadd.f32 %v4634_v12, %v4621_v15 }
 0x486   :  { %v7782_v49 = vld [vmem:[#allocation11 + $0xff8] sm:$0xf0] }
 0x487   :  { %v8317_v31 = vld [vmem:[#allocation11 + $0x99c] sm:$0xf]  ;;  %v7785_v36 = vor.u32 %v8517_v27, %v7782_v49  ;;  %4898 = vmatpush.bf16.msrb.mxu2 %v7529_v34 }
 0x488   :  { %v6982_v32 = vld [vmem:[#allocation11 + $0x9b8] sm:$0xf0] }
 0x489   :  { %v8381_v37 = vld [vmem:[#allocation11 + $0xb9c] sm:$0xf]  ;;  %v6985_v50 = vor.u32 %v8317_v31, %v6982_v32  ;;  %4911 = vmatpush.bf16.msrb.mxu3 %v7785_v36 }
 0x48a   :  { %v7238_v38 = vld [vmem:[#allocation11 + $0xbb8] sm:$0xf0] }
 0x48b   :  { %v8445_v42 = vld [vmem:[#allocation11 + $0xd9c] sm:$0xf]  ;;  %v7241_v51 = vor.u32 %v8381_v37, %v7238_v38  ;;  %4873 = vmatpush.bf16.msra.mxu0 %v6985_v50  ;;  %v4647_v37 = vpop.f32.mrf.mxu2  ;;  %v4660_v38 = vpop.f32.mrf.mxu3 }
 0x48c   :  { %v7494_v45 = vld [vmem:[#allocation11 + $0xdb8] sm:$0xf0]  ;;  %v4623_v50 = vpop.f32.mrf.mxu0 }
 0x48d   :  { %v8509_v47 = vld [vmem:[#allocation11 + $0xf9c] sm:$0xf]  ;;  %v7497_v56 = vor.u32 %v8445_v42, %v7494_v45  ;;  %4886 = vmatpush.bf16.msra.mxu1 %v7241_v51  ;;  %v4636_v51 = vpop.f32.mrf.mxu1 }
 0x48e   :  { %v7750_v48 = vld [vmem:[#allocation11 + $0xfb8] sm:$0xf0]  ;;  %v9343_v51 = vld [vmem:[#allocation13] sm:$0xf] }
 0x48f   :  { %v8309_v52 = vld [vmem:[#allocation11 + $0x95c] sm:$0xf]  ;;  %v7753_v57 = vor.u32 %v8509_v47, %v7750_v48  ;;  %4899 = vmatpush.bf16.msrb.mxu2 %v7497_v56  ;;  %v4648_v48 = vadd.f32 %v4647_v37, %v4635_v21 }
 0x490   :  { %v6950_v53 = vld [vmem:[#allocation11 + $0x978] sm:$0xf0] }
 0x491   :  { %v8373_v59 = vld [vmem:[#allocation11 + $0xb5c] sm:$0xf]  ;;  %v6953_v8 = vor.u32 %v8309_v52, %v6950_v53  ;;  %4912 = vmatpush.bf16.msrb.mxu3 %v7753_v57 }
 0x492   :  { %v7206_v61 = vld [vmem:[#allocation11 + $0xb78] sm:$0xf0] }
 0x493   :  { %v8437_v62 = vld [vmem:[#allocation11 + $0xd5c] sm:$0xf]  ;;  %v7209_v5 = vor.u32 %v8373_v59, %v7206_v61  ;;  %4874 = vmatpush.bf16.msra.mxu0 %v6953_v8  ;;  %v4661_v59 = vadd.f32 %v4660_v38, %v4648_v48  ;;  %v4649_v15 = vpop.f32.mrf.mxu2  ;;  %v4662_v12 = vpop.f32.mrf.mxu3 }
 0x494   :  { %v7462_v0 = vld [vmem:[#allocation11 + $0xd78] sm:$0xf0] }
 0x495   :  { %v8501_v1 = vld [vmem:[#allocation11 + $0xf5c] sm:$0xf]  ;;  %v7465_v13 = vor.u32 %v8437_v62, %v7462_v0  ;;  %4887 = vmatpush.bf16.msra.mxu1 %v7209_v5 }
 0x496   :  { %v7718_v33 = vld [vmem:[#allocation11 + $0xf78] sm:$0xf0] }
 0x497   :  { %v8301_v10 = vld [vmem:[#allocation11 + $0x91c] sm:$0xf]  ;;  %v7721_v11 = vor.u32 %v8501_v1, %v7718_v33  ;;  %4900 = vmatpush.bf16.msrb.mxu2 %v7465_v13 }
 0x498   :  { %v6918_v60 = vld [vmem:[#allocation11 + $0x938] sm:$0xf0] }
 0x499   :  { %v8365_v6 = vld [vmem:[#allocation11 + $0xb1c] sm:$0xf]  ;;  %v6921_v16 = vor.u32 %v8301_v10, %v6918_v60  ;;  %4913 = vmatpush.bf16.msrb.mxu3 %v7721_v11 }
 0x49a   :  { %v7174_v3 = vld [vmem:[#allocation11 + $0xb38] sm:$0xf0] }
 0x49b   :  { %v8429_v20 = vld [vmem:[#allocation11 + $0xd1c] sm:$0xf]  ;;  %v7177_v17 = vor.u32 %v8365_v6, %v7174_v3  ;;  %4875 = vmatpush.bf16.msra.mxu0 %v6921_v16 }
 0x49c   :  { %v7430_v14 = vld [vmem:[#allocation11 + $0xd38] sm:$0xf0] }
 0x49d   :  { %v8493_v7 = vld [vmem:[#allocation11 + $0xf1c] sm:$0xf]  ;;  %v7433_v44 = vor.u32 %v8429_v20, %v7430_v14  ;;  %4888 = vmatpush.bf16.msra.mxu1 %v7177_v17 }
 0x49e   :  { %v7686_v55 = vld [vmem:[#allocation11 + $0xf38] sm:$0xf0] }
 0x49f   :  { %v8293_v39 = vld [vmem:[#allocation11 + $0x8dc] sm:$0xf]  ;;  %v7689_v43 = vor.u32 %v8493_v7, %v7686_v55  ;;  %4901 = vmatpush.bf16.msrb.mxu2 %v7433_v44 }
 0x4a0   :  { %v6886_v19 = vld [vmem:[#allocation11 + $0x8f8] sm:$0xf0] }
 0x4a1   :  { %v8357_v22 = vld [vmem:[#allocation11 + $0xadc] sm:$0xf]  ;;  %v6889_v49 = vor.u32 %v8293_v39, %v6886_v19  ;;  %4914 = vmatpush.bf16.msrb.mxu3 %v7689_v43 }
 0x4a2   :  { %v7142_v23 = vld [vmem:[#allocation11 + $0xaf8] sm:$0xf0] }
 0x4a3   :  { %v8421_v24 = vld [vmem:[#allocation11 + $0xcdc] sm:$0xf]  ;;  %v7145_v28 = vor.u32 %v8357_v22, %v7142_v23  ;;  %4876 = vmatpush.bf16.msra.mxu0 %v6889_v49  ;;  %v4673_v22 = vpop.f32.mrf.mxu0  ;;  %v4686_v23 = vpop.f32.mrf.mxu1 }
 0x4a4   :  { %v7398_v25 = vld [vmem:[#allocation11 + $0xcf8] sm:$0xf0] }
 0x4a5   :  { %v8485_v26 = vld [vmem:[#allocation11 + $0xedc] sm:$0xf]  ;;  %v7401_v30 = vor.u32 %v8421_v24, %v7398_v25  ;;  %4889 = vmatpush.bf16.msra.mxu1 %v7145_v28  ;;  %v4674_v24 = vadd.f32 %v4673_v22, %v4661_v59 }
 0x4a6   :  { %v7654_v27 = vld [vmem:[#allocation11 + $0xef8] sm:$0xf0] }
 0x4a7   :  { %v8285_v2 = vld [vmem:[#allocation11 + $0x89c] sm:$0xf]  ;;  %v7657_v31 = vor.u32 %v8485_v26, %v7654_v27  ;;  %4902 = vmatpush.bf16.msrb.mxu2 %v7401_v30  ;;  %v4687_v25 = vadd.f32 %v4686_v23, %v4674_v24  ;;  %v4699_v26 = vpop.f32.mrf.mxu2  ;;  %v4712_v27 = vpop.f32.mrf.mxu3  ;;  %v4931_v23 = vperm.slane %v9343_v51, 1 }
 0x4a8   :  { %v6854_v29 = vld [vmem:[#allocation11 + $0x8b8] sm:$0xf0] }
 0x4a9   :  { %v8349_v32 = vld [vmem:[#allocation11 + $0xa9c] sm:$0xf]  ;;  %v6857_v52 = vor.u32 %v8285_v2, %v6854_v29  ;;  %4915 = vmatpush.bf16.msrb.mxu3 %v7657_v31  ;;  %v4700_v49 = vadd.f32 %v4699_v26, %v4687_v25 }
 0x4aa   :  { %v7110_v34 = vld [vmem:[#allocation11 + $0xab8] sm:$0xf0] }
 0x4ab   :  { %v8413_v36 = vld [vmem:[#allocation11 + $0xc9c] sm:$0xf]  ;;  %v7113_v53 = vor.u32 %v8349_v32, %v7110_v34  ;;  %4877 = vmatpush.bf16.msra.mxu0 %v6857_v52  ;;  %v4675_v28 = vpop.f32.mrf.mxu0  ;;  %v4688_v2 = vpop.f32.mrf.mxu1  ;;  %v4713_v29 = vadd.f32 %v4712_v27, %v4700_v49 }
 0x4ac   :  { %v7366_v42 = vld [vmem:[#allocation11 + $0xcb8] sm:$0xf0]  ;;  %v8973_v28 = vmov 8.0  }
 0x4ad   :  { %v8477_v45 = vld [vmem:[#allocation11 + $0xe9c] sm:$0xf]  ;;  %v7369_v61 = vor.u32 %v8413_v36, %v7366_v42  ;;  %4890 = vmatpush.bf16.msra.mxu1 %v7113_v53  ;;  %v4925_v30 = vmax.f32 %v9291_v41, %v4713_v29  ;;  %v4930_v41 = vperm.slane %v9343_v51, 0  ;;  %8591 = vrcp.f32 %v8973_v28  ;;  %v8523_v28 = vld [vmem:[#allocation17 + $0x8] sm:$0xff] }
 0x4ae   :  { %v7622_v47 = vld [vmem:[#allocation11 + $0xeb8] sm:$0xf0] }
 0x4af   :  { %v8277_v56 = vld [vmem:[#allocation11 + $0x85c] sm:$0xf]  ;;  %v7625_v62 = vor.u32 %v8477_v45, %v7622_v47  ;;  %4903 = vmatpush.bf16.msrb.mxu2 %v7369_v61  ;;  %v4701_v31 = vpop.f32.mrf.mxu2  ;;  %v4938_v59 = vadd.f32 %v4930_v41, %v4924_v4  ;;  %v4939_v27 = vadd.f32 %v4931_v23, %v4925_v30 }
 0x4b0   :  { %v6822_v57 = vld [vmem:[#allocation11 + $0x878] sm:$0xf0] }
 0x4b1   :  { %v8341_v0 = vld [vmem:[#allocation11 + $0xa5c] sm:$0xf]  ;;  %v6825_v60 = vor.u32 %v8277_v56, %v6822_v57  ;;  %4916 = vmatpush.bf16.msrb.mxu3 %v7625_v62  ;;  %vm4942_vm14 = vcmp.gt.f32.partialorder %v4938_v59, 0.0  ;;  %vm4943_vm0 = vcmp.gt.f32.partialorder %v4939_v27, 0.0 }
 0x4b2   :  { %v7078_v1 = vld [vmem:[#allocation11 + $0xa78] sm:$0xf0] }
 0x4b3   :  { %v8405_v33 = vld [vmem:[#allocation11 + $0xc5c] sm:$0xf]  ;;  %v7081_v13 = vor.u32 %v8341_v0, %v7078_v1  ;;  %4878 = vmatpush.bf16.msra.mxu0 %v6825_v60  ;;  %v4725_v32 = vpop.f32.mrf.mxu0 }
 0x4b4   :  { %v7334_v8 = vld [vmem:[#allocation11 + $0xc78] sm:$0xf0] }
 0x4b5   :  { %v8469_v5 = vld [vmem:[#allocation11 + $0xe5c] sm:$0xf]  ;;  %v7337_v3 = vor.u32 %v8405_v33, %v7334_v8  ;;  %4891 = vmatpush.bf16.msra.mxu1 %v7081_v13  ;;  %v4932_v33 = vperm.slane %v9343_v51, 2  ;;  %v4946_v8 = vmul.f32 0.2, %v4938_v59 }
 0x4b6   :  { %v7590_v10 = vld [vmem:[#allocation11 + $0xe78] sm:$0xf0] }
 0x4b7   :  { %v8269_v11 = vld [vmem:[#allocation11 + $0x81c] sm:$0xf]  ;;  %v7593_v20 = vor.u32 %v8469_v5, %v7590_v10  ;;  %4904 = vmatpush.bf16.msrb.mxu2 %v7337_v3 }
 0x4b8   :  { %v6790_v6 = vld [vmem:[#allocation11 + $0x838] sm:$0xf0] }
 0x4b9   :  { %v8333_v14 = vld [vmem:[#allocation11 + $0xa1c] sm:$0xf]  ;;  %v6793_v39 = vor.u32 %v8269_v11, %v6790_v6  ;;  %4917 = vmatpush.bf16.msrb.mxu3 %v7593_v20  ;;  %v9351_v11 = vsel %vm4942_vm14, %v4938_v59, %v4946_v8  ;;  %v8527_v59 = vld [vmem:[#allocation17 + $0x28] sm:$0xff] }
 0x4ba   :  { %v7046_v7 = vld [vmem:[#allocation11 + $0xa38] sm:$0xf0]  ;;  %v4967_v35 = vmul.f32 %v9351_v11, %v9351_v11 }
 0x4bb   :  { %v8397_v55 = vld [vmem:[#allocation11 + $0xc1c] sm:$0xf]  ;;  %v7049_v19 = vor.u32 %v8333_v14, %v7046_v7  ;;  %4879 = vmatpush.bf16.msra.mxu0 %v6793_v39  ;;  %v4727_v37 = vpop.f32.mrf.mxu0 }
 0x4bc   :  { %v7302_v21 = vld [vmem:[#allocation11 + $0xc38] sm:$0xf0]  ;;  %v9368_v37 = vpop.eup %8591 }
 0x4bd   :  { %v8461_v16 = vld [vmem:[#allocation11 + $0xe1c] sm:$0xf]  ;;  %v7305_v44 = vor.u32 %v8397_v55, %v7302_v21  ;;  %4892 = vmatpush.bf16.msra.mxu1 %v7049_v19  ;;  %vm4986_vm3 = vweird.f32 %v9368_v37 }
 0x4be   :  { %v7558_v17 = vld [vmem:[#allocation11 + $0xe38] sm:$0xf0]  ;;  %4880 = vmatmul.bf16.vlgmr.msra.gmra.mxu0 %v9250_v9  ;;  %v4714_v9 = vpop.f32.mrf.mxu3 }
 0x4bf   :  { %v7561_v43 = vor.u32 %v8461_v16, %v7558_v17  ;;  %4905 = vmatpush.bf16.msrb.mxu2 %v7305_v44  ;;  %v4933_v9 = vperm.slane %v9343_v51, 3 }
 0x4c0   :  { %4893 = vmatmul.bf16.vlgmr.msra.gmra.mxu1 %v9252_v18  ;;  %v4738_v18 = vpop.f32.mrf.mxu1 }
 0x4c1   :  { %4918 = vmatpush.bf16.msrb.mxu3 %v7561_v43  ;;  %v4739_v34 = vadd.f32 %v4738_v18, %v4725_v32  ;;  %v8529_v32 = vld [vmem:[#allocation17 + $0x38] sm:$0xff] }
 0x4c2   :  { %4906 = vmatmul.bf16.vlgmr.msrb.gmra.mxu2 %v9254_v58  ;;  %v4751_v58 = vpop.f32.mrf.mxu2  ;;  %v8537_v18 = vld [vmem:[#allocation17 + $0x78] sm:$0xff]  ;;  %5281 = vmatpush.bf16.msrb.mxu0 %v8529_v32  ;;  %v8547_v32 = vld [vmem:[#allocation17 + $0xc8] sm:$0xff] }
 0x4c3   :  { %5294 = vmatpush.bf16.msrb.mxu1 %v8537_v18  ;;  %v8522_v18 = vld [vmem:[#allocation17] sm:$0xff] }
 0x4c4   :  { %4919 = vmatmul.bf16.vlgmr.msrb.gmra.mxu3 %v9256_v63  ;;  %v4752_v63 = vadd.f32 %v4751_v58, %v4739_v34  ;;  %v8545_v34 = vld [vmem:[#allocation17 + $0xb8] sm:$0xff]  ;;  %v4947_v58 = vmul.f32 0.2, %v4939_v27 }
 0x4c5   :  { %5307 = vmatpush.bf16.msra.mxu2 %v8545_v34  ;;  %v8530_v34 = vld [vmem:[#allocation17 + $0x40] sm:$0xff] }
 0x4c6   :  { %v4764_v36 = vpop.f32.mrf.mxu3 }
 0x4c7   :  { %v4765_v42 = vadd.f32 %v4764_v36, %v4752_v63  ;;  %v8553_v63 = vld [vmem:[#allocation17 + $0xf8] sm:$0xff] }
 0x4c8   :  { %v4740_v38 = vpop.f32.mrf.mxu1  ;;  %5320 = vmatpush.bf16.msra.mxu3 %v8553_v63  ;;  %v8538_v63 = vld [vmem:[#allocation17 + $0x80] sm:$0xff] }
 0x4ca   :  { %v4753_v45 = vpop.f32.mrf.mxu2 }
 0x4cb   :  { %v8528_v45 = vld [vmem:[#allocation17 + $0x30] sm:$0xff] }
 0x4cc   :  { %5282 = vmatpush.bf16.msrb.mxu0 %v8528_v45  ;;  %v8561_v45 = vld [vmem:[#allocation20 + $0x38] sm:$0xff] }
 0x4ce   :  { %v4766_v47 = vpop.f32.mrf.mxu3 }
 0x4cf   :  { %v8536_v47 = vld [vmem:[#allocation17 + $0x70] sm:$0xff] }
 0x4d0   :  { %5295 = vmatpush.bf16.msrb.mxu1 %v8536_v47  ;;  %5283 = vmatpush.bf16.msrb.mxu0 %v8527_v59  ;;  %v8560_v47 = vld [vmem:[#allocation20 + $0x30] sm:$0xff]  ;;  %v8557_v59 = vld [vmem:[#allocation20 + $0x18] sm:$0xff] }
 0x4dc   :  { %v4777_v48 = vpop.f32.mrf.mxu0 }
 0x4dd   :  { %v4778_v52 = vadd.f32 %v4777_v48, %v4765_v42  ;;  %v8544_v48 = vld [vmem:[#allocation17 + $0xb0] sm:$0xff] }
 0x4de   :  { %v4790_v50 = vpop.f32.mrf.mxu1  ;;  %5308 = vmatpush.bf16.msra.mxu2 %v8544_v48  ;;  %v8559_v48 = vld [vmem:[#allocation20 + $0x28] sm:$0xff] }
 0x4df   :  { %v4791_v53 = vadd.f32 %v4790_v50, %v4778_v52  ;;  %v9370_v50 = vsel %vm4943_vm0, %v4939_v27, %v4947_v58  ;;  %v8552_v52 = vld [vmem:[#allocation17 + $0xf0] sm:$0xff] }
 0x4e0   :  { %5321 = vmatpush.bf16.msra.mxu3 %v8552_v52  ;;  %v4968_v41 = vmul.f32 %v9370_v50, %v9370_v50 }
 0x4e4   :  { %v4779_v62 = vpop.f32.mrf.mxu0 }
 0x4e5   :  { %v8543_v62 = vld [vmem:[#allocation17 + $0xa8] sm:$0xff] }
 0x4e6   :  { %v4803_v56 = vpop.f32.mrf.mxu2  ;;  %v4792_v0 = vpop.f32.mrf.mxu1  ;;  %5309 = vmatpush.bf16.msra.mxu2 %v8543_v62 }
 0x4e7   :  { %v4804_v61 = vadd.f32 %v4803_v56, %v4791_v53  ;;  %v8551_v0 = vld [vmem:[#allocation17 + $0xe8] sm:$0xff] }
 0x4e8   :  { %v4816_v57 = vpop.f32.mrf.mxu3  ;;  %5322 = vmatpush.bf16.msra.mxu3 %v8551_v0 }
 0x4e9   :  { %v4817_v1 = vadd.f32 %v4816_v57, %v4804_v61  ;;  %v8535_v61 = vld [vmem:[#allocation17 + $0x68] sm:$0xff] }
 0x4ea   :  { %5296 = vmatpush.bf16.msrb.mxu1 %v8535_v61  ;;  %v4954_v61 = vld [vmem:[#allocation14] sm:$0x1] }
 0x4eb   :  { %v4926_v5 = vmax.f32 %v9304_v40, %v4817_v1 }
 0x4ed   :  { %v4940_v10 = vadd.f32 %v4932_v33, %v4926_v5 }
 0x4ee   :  { %v4805_v60 = vpop.f32.mrf.mxu2 }
 0x4ef   :  { %vm4944_vm15 = vcmp.gt.f32.partialorder %v4940_v10, 0.0  ;;  %v4948_v6 = vmul.f32 0.2, %v4940_v10  ;;  %v8526_v60 = vld [vmem:[#allocation17 + $0x20] sm:$0xff] }
 0x4f0   :  { %v4818_v13 = vpop.f32.mrf.mxu3  ;;  %5284 = vmatpush.bf16.msrb.mxu0 %v8526_v60 }
 0x4f1   :  { %v9353_v3 = vsel %vm4944_vm15, %v4940_v10, %v4948_v6  ;;  %v8534_v13 = vld [vmem:[#allocation17 + $0x60] sm:$0xff] }
 0x4f2   :  { %v9359_v54 = vadd.f32 %v9353_v3, %v9351_v11  ;;  %v4969_v40 = vmul.f32 %v9353_v3, %v9353_v3  ;;  %v8542_v6 = vld [vmem:[#allocation17 + $0xa0] sm:$0xff]  ;;  %5297 = vmatpush.bf16.msrb.mxu1 %v8534_v13 }
 0x4f3   :  { %5310 = vmatpush.bf16.msra.mxu2 %v8542_v6 }
 0x4f4   :  { %v9363_v4 = vadd.f32 %v4969_v40, %v4967_v35  ;;  %v8550_v40 = vld [vmem:[#allocation17 + $0xe0] sm:$0xff] }
 0x4f5   :  { %5323 = vmatpush.bf16.msra.mxu3 %v8550_v40 }
 0x4fc   :  { %v4829_v20 = vpop.f32.mrf.mxu0 }
 0x4fe   :  { %v4842_v14 = vpop.f32.mrf.mxu1 }
 0x4ff   :  { %v4843_v17 = vadd.f32 %v4842_v14, %v4829_v20 }
 0x504   :  { %v4831_v15 = vpop.f32.mrf.mxu0 }
 0x505   :  { %v8533_v15 = vld [vmem:[#allocation17 + $0x58] sm:$0xff] }
 0x506   :  { %v4855_v7 = vpop.f32.mrf.mxu2  ;;  %v4844_v12 = vpop.f32.mrf.mxu1  ;;  %5298 = vmatpush.bf16.msrb.mxu1 %v8533_v15 }
 0x507   :  { %v4856_v39 = vadd.f32 %v4855_v7, %v4843_v17  ;;  %v8541_v12 = vld [vmem:[#allocation17 + $0x98] sm:$0xff] }
 0x508   :  { %v4868_v55 = vpop.f32.mrf.mxu3  ;;  %5311 = vmatpush.bf16.msra.mxu2 %v8541_v12 }
 0x509   :  { %v4869_v19 = vadd.f32 %v4868_v55, %v4856_v39  ;;  %v8525_v55 = vld [vmem:[#allocation17 + $0x18] sm:$0xff] }
 0x50a   :  { %5285 = vmatpush.bf16.msrb.mxu0 %v8525_v55 }
 0x50e   :  { %v4857_v21 = vpop.f32.mrf.mxu2 }
 0x510   :  { %v4870_v16 = vpop.f32.mrf.mxu3 }
 0x511   :  { %v8549_v16 = vld [vmem:[#allocation17 + $0xd8] sm:$0xff] }
 0x512   :  { %5324 = vmatpush.bf16.msra.mxu3 %v8549_v16 }
 0x53b   :  { %v4881_v44 = vpop.f32.mrf.mxu0 }
 0x53c   :  { %v4882_v22 = vadd.f32 %v4881_v44, %v4869_v19  ;;  %v8524_v44 = vld [vmem:[#allocation17 + $0x10] sm:$0xff] }
 0x53d   :  { %v4894_v43 = vpop.f32.mrf.mxu1  ;;  %5286 = vmatpush.bf16.msrb.mxu0 %v8524_v44 }
 0x53e   :  { %v4895_v24 = vadd.f32 %v4894_v43, %v4882_v22  ;;  %v8532_v43 = vld [vmem:[#allocation17 + $0x50] sm:$0xff] }
 0x53f   :  { %v8540_v22 = vld [vmem:[#allocation17 + $0x90] sm:$0xff]  ;;  %5299 = vmatpush.bf16.msrb.mxu1 %v8532_v43 }
 0x540   :  { %5312 = vmatpush.bf16.msra.mxu2 %v8540_v22 }
 0x541   :  { %5287 = vmatpush.bf16.msrb.mxu0 %v8523_v28 }
 0x543   :  { %v4883_v2 = vpop.f32.mrf.mxu0 }
 0x544   :  { %v8531_v2 = vld [vmem:[#allocation17 + $0x48] sm:$0xff] }
 0x545   :  { %v4907_v25 = vpop.f32.mrf.mxu2  ;;  %v4896_v29 = vpop.f32.mrf.mxu1  ;;  %5300 = vmatpush.bf16.msrb.mxu1 %v8531_v2  ;;  %5288 = vmatpush.bf16.msrb.mxu0 %v8522_v18 }
 0x546   :  { %v4908_v49 = vadd.f32 %v4907_v25, %v4895_v24  ;;  %v8548_v25 = vld [vmem:[#allocation17 + $0xd0] sm:$0xff]  ;;  %v8539_v29 = vld [vmem:[#allocation17 + $0x88] sm:$0xff] }
 0x547   :  { %v4920_v26 = vpop.f32.mrf.mxu3  ;;  %5325 = vmatpush.bf16.msra.mxu3 %v8548_v25  ;;  %5313 = vmatpush.bf16.msra.mxu2 %v8539_v29  ;;  %v8585_v29 = vld [vmem:[#allocation23] ss:$0 sm:$0xff] }
 0x548   :  { %v4921_v31 = vadd.f32 %v4920_v26, %v4908_v49 }
 0x549   :  { %5301 = vmatpush.bf16.msrb.mxu1 %v8530_v34  ;;  %5402 = vmatpush.bf16.msra.mxu0 %v8561_v45  ;;  %v8586_v34 = vld [vmem:[#allocation2] ss:$0 sm:$0xff] }
 0x54a   :  { %v4927_v36 = vmax.f32 %v9317_v46, %v4921_v31  ;;  %v4982_v46 = vmul.f32 8.0, %v9368_v37 }
 0x54b   :  { %5326 = vmatpush.bf16.msra.mxu3 %v8547_v32  ;;  %5314 = vmatpush.bf16.msra.mxu2 %v8538_v63 }
 0x54c   :  { %v4941_v30 = vadd.f32 %v4933_v9, %v4927_v36  ;;  %v4983_v8 = vsub.f32 1.0, %v4982_v46 }
 0x54d   :  { %v4909_v38 = vpop.f32.mrf.mxu2  ;;  %5403 = vmatpush.bf16.msra.mxu0 %v8560_v47 }
 0x54e   :  { %vm4945_vm1 = vcmp.gt.f32.partialorder %v4941_v30, 0.0  ;;  %v4949_v51 = vmul.f32 0.2, %v4941_v30  ;;  %v4984_v14 = vmul.f32 %v9368_v37, %v4983_v8 }
 0x54f   :  { %v4922_v42 = vpop.f32.mrf.mxu3 }
 0x550   :  { %v9373_v53 = vsel %vm4945_vm1, %v4941_v30, %v4949_v51  ;;  %v4985_v17 = vadd.f32 %v9368_v37, %v4984_v14 }
 0x551   :  { %v4957_v56 = vadd.f32 %v9373_v53, %v9370_v50  ;;  %v4970_v57 = vmul.f32 %v9373_v53, %v9373_v53  ;;  %5404 = vmatpush.bf16.msra.mxu0 %v8559_v48 }
 0x552   :  { %v4987_v26 = vsel %vm4986_vm3, %v9368_v37, %v4985_v17  ;;  %v8546_v37 = vld [vmem:[#allocation17 + $0xc0] sm:$0xff] }
 0x553   :  { %v4958_v1 = vadd.f32 %v4957_v56, %v9359_v54  ;;  %v4972_v33 = vadd.f32 %v4970_v57, %v4968_v41  ;;  %5327 = vmatpush.bf16.msra.mxu3 %v8546_v37  ;;  %v8558_v41 = vld [vmem:[#allocation20 + $0x20] sm:$0xff] }
 0x555   :  { %v4960_v5 = vsel %vm4959_vm2, %v4958_v1, 0.0  ;;  %v4973_v10 = vadd.f32 %v4972_v33, %v9363_v4  ;;  %5405 = vmatpush.bf16.msra.mxu0 %v8558_v41  ;;  %v4955_v33 = vld [vmem:[#allocation16] sm:$0x1] }
 0x556   :  { %v4961_v35 = vrot.slane %v4960_v5, 4 }
 0x557   :  { %v4974_v20 = vsel %vm4959_vm2, %v4973_v10, 0.0 }
 0x558   :  { %v4962_v54 = vadd.f32 %v4961_v35, %v4960_v5  ;;  %v4975_v7 = vrot.slane %v4974_v20, 4 }
 0x559   :  { %5406 = vmatpush.bf16.msra.mxu0 %v8557_v59 }
 0x55a   :  { %v4963_v21 = vrot.slane %v4962_v54, 2  ;;  %v4976_v4 = vadd.f32 %v4975_v7, %v4974_v20 }
 0x55c   :  { %v4964_v39 = vadd.f32 %v4963_v21, %v4962_v54  ;;  %v4977_v19 = vrot.slane %v4976_v4, 2 }
 0x55e   :  { %v4965_v23 = vrot.slane %v4964_v39, 1  ;;  %v4978_v24 = vadd.f32 %v4977_v19, %v4976_v4 }
 0x560   :  { %v4966_v27 = vadd.f32 %v4965_v23, %v4964_v39  ;;  %v4979_v49 = vrot.slane %v4978_v24, 1 }
 0x562   :  { %v4980_v31 = vadd.f32 %v4979_v49, %v4978_v24  ;;  %v4988_v9 = vmul.f32 %v4987_v26, %v4966_v27  ;;  %v8584_v49 = vld [vmem:[#allocation22] ss:$0 sm:$0xff] }
 0x564   :  { %v4989_v58 = vmul.f32 %v4987_v26, %v4980_v31  ;;  %v4990_v36 = vmul.f32 %v4988_v9, %v4988_v9 }
 0x566   :  { %v4991_v30 = vsub.f32 %v4989_v58, %v4990_v36 }
 0x568   :  { %v4992_v38 = vmax.f32 %v4991_v30, 0.0 }
 0x56a   :  { %v4993_v42 = vadd.f32 1e-05, %v4992_v38 }
 0x56c   :  { %8593 = vrsqrt.f32 %v4993_v42  ;;  %vm5000_vm5 = vweird.f32 %v4993_v42 }
 0x572   :  { %v8594_v51 = vpop.eup %8593 }
 0x573   :  { %v4995_v52 = vmul.f32 %v8594_v51, %v4993_v42  ;;  %vm5001_vm4 = vweird.f32 %v8594_v51 }
 0x574   :  { %vm5002_vm6 = vmor %vm5000_vm5, %vm5001_vm4 }
 0x575   :  { %v4996_v46 = vmul.f32 %v8594_v51, %v4995_v52 }
 0x577   :  { %v4997_v56 = vmul.f32 0.5, %v4996_v46 }
 0x579   :  { %v4998_v57 = vsub.f32 1.5, %v4997_v56 }
 0x57b   :  { %v4999_v62 = vmul.f32 %v8594_v51, %v4998_v57 }
 0x57d   :  { %v5003_v0 = vsel %vm5002_vm6, %v8594_v51, %v4999_v62 }
 0x57e   :  { %v5004_v1 = vmul.f32 %v5003_v0, %v4954_v61 }
 0x580   :  { %v5007_v8 = vperm.slane %v5004_v1, 0  ;;  %v5005_v5 = vmul.f32 %v5004_v1, %v4988_v9 }
 0x582   :  { %v5011_v10 = vmul.f32 %v5007_v8, %v9373_v53  ;;  %v5006_v60 = vsub.f32 %v4955_v33, %v5005_v5  ;;  %v5008_v13 = vmul.f32 %v5007_v8, %v9351_v11  ;;  %v5009_v6 = vmul.f32 %v5007_v8, %v9370_v50  ;;  %v8556_v53 = vld [vmem:[#allocation20 + $0x10] sm:$0xff]  ;;  %v8555_v11 = vld [vmem:[#allocation20 + $0x8] sm:$0xff]  ;;  %v8554_v50 = vld [vmem:[#allocation20] sm:$0xff] }
 0x583   :  { %v5010_v35 = vmul.f32 %v5007_v8, %v9353_v3  ;;  %5407 = vmatpush.bf16.msra.mxu0 %v8556_v53  ;;  %v8583_v3 = vld [vmem:[#allocation19] ss:$0 sm:$0xff] }
 0x584   :  { %v5012_v40 = vperm.slane %v5006_v60, 0 }
 0x586   :  { %v5013_v20 = vadd.f32 %v5012_v40, %v5008_v13  ;;  %v5014_v14 = vadd.f32 %v5012_v40, %v5009_v6  ;;  %v5015_v54 = vadd.f32 %v5012_v40, %v5010_v35  ;;  %v5016_v7 = vadd.f32 %v5012_v40, %v5011_v10 }
 0x587   :  { %5408 = vmatpush.bf16.msra.mxu0 %v8555_v11 }
 0x588   :  { %v5017_v55 = vpack.c.bf16 %v5013_v20, %v5013_v20  ;;  %v5018_v15 = vpack.c.bf16 %v5014_v14, %v5014_v14  ;;  %v5019_v12 = vpack.c.bf16 %v5015_v54, %v5015_v54  ;;  %v5020_v21 = vpack.c.bf16 %v5016_v7, %v5016_v7 }
 0x58a   :  { %5289 = vmatmul.bf16.vlgmr.msrb.gmra.mxu0 %v5017_v55  ;;  %5302 = vmatmul.bf16.vlgmr.msrb.gmra.mxu1 %v5018_v15 }
 0x58b   :  { %5315 = vmatmul.bf16.vlgmr.msra.gmra.mxu2 %v5019_v12  ;;  %5328 = vmatmul.bf16.vlgmr.msra.gmra.mxu3 %v5020_v21 }
 0x58c   :  { %5409 = vmatpush.bf16.msra.mxu0 %v8554_v50 }
 0x607   :  { %v5290_v4 = vpop.f32.mrf.mxu0  ;;  %v5303_v16 = vpop.f32.mrf.mxu1 }
 0x608   :  { %v5291_v17 = vadd.f32 %v8583_v3, %v5290_v4 }
 0x60a   :  { %v5304_v39 = vadd.f32 %v5303_v16, %v5291_v17 }
 0x60e   :  { %v5316_v19 = vpop.f32.mrf.mxu2  ;;  %v5329_v44 = vpop.f32.mrf.mxu3 }
 0x60f   :  { %v5317_v43 = vadd.f32 %v5316_v19, %v5304_v39  ;;  %v5292_v22 = vpop.f32.mrf.mxu0  ;;  %v5305_v23 = vpop.f32.mrf.mxu1 }
 0x611   :  { %v5330_v24 = vadd.f32 %v5329_v44, %v5317_v43 }
 0x613   :  { %v5333_v25 = vpack.c.bf16 %v5330_v24, %v5330_v24 }
 0x615   :  { %5410 = vmatmul.bf16.vlgmr.msra.gmra.mxu0 %v5333_v25 }
 0x616   :  { %v5318_v26 = vpop.f32.mrf.mxu2  ;;  %v5331_v27 = vpop.f32.mrf.mxu3 }
 0x692   :  { %v5411_v28 = vpop.f32.mrf.mxu0 }
 0x693   :  { %v5412_v2 = vadd.f32 %v8584_v49, %v5411_v28 }
 0x695   :  { %8595 = vtanh.f32 %v5412_v2 }
 0x69a   :  { %v5413_v31 = vpop.f32.mrf.mxu0 }
 0x69b   :  { %v8596_v9 = vpop.eup %8595 }
 0x69c   :  { %v5420_v32 = vmul.f32 %v8596_v9, %v8585_v29 }
 0x69e   :  { %v5421_v18 = vsel %vm4959_vm2, %v5420_v32, 0.0 }
 0x69f   :  { %5422 = vadd.xlane.f32.xlu2 %v5421_v18 }
 0x712   :  { %v5423_v58 = vpop.xlane.xlu2 %5422 }
 0x713   :  { %v5428_v36 = vadd.f32 %v8586_v34, %v5423_v58 }
 0x715   :  { %v5429_v63 = vand.u32 2147483647, %v5428_v36  ;;  %vm5433_vm12 = vcmp.ge.f32.partialorder %v5428_v36, 0.0 }
 0x717   :  { %v5430_v37 = vsub.f32 0.0, %v5429_v63 }
 0x719   :  { %v5431_v30 = vmul.f32 1.442695, %v5430_v37 }
 0x71b   :  { %8597 = vpow2.f32 %v5431_v30 }
 0x721   :  { %v8598_v38 = vpop.eup %8597 }
 0x722   :  { %v5434_v42 = vadd.f32 1.0, %v8598_v38 }
 0x724   :  { %8599 = vrcp.f32 %v5434_v42  ;;  %v5446_v51 = vand.u32 2147483648, %v5434_v42  ;;  %v5444_v46 = vand.u32 2147483647, %v5434_v42  ;;  %vm5440_vm8 = vweird.f32 %v5434_v42 }
 0x726   :  { %v5447_v56 = vor.u32 1.1754944e-38, %v5446_v51  ;;  %vm5445_vm10 = vcmp.eq.f32.partialorder %v5444_v46, 8.507059e+37 }
 0x72a   :  { %v8600_v45 = vpop.eup %8599 }
 0x72b   :  { %v5436_v47 = vmul.f32 %v8600_v45, %v5434_v42  ;;  %vm5441_vm7 = vweird.f32 %v8600_v45 }
 0x72c   :  { %vm5442_vm9 = vmor %vm5440_vm8, %vm5441_vm7 }
 0x72d   :  { %v5437_v48 = vsub.f32 1.0, %v5436_v47 }
 0x72f   :  { %v5438_v52 = vmul.f32 %v8600_v45, %v5437_v48 }
 0x731   :  { %v5439_v41 = vadd.f32 %v8600_v45, %v5438_v52 }
 0x733   :  { %v5443_v57 = vsel %vm5442_vm9, %v8600_v45, %v5439_v41 }
 0x734   :  { %v5448_v59 = vsel %vm5445_vm10, %v5447_v56, %v5443_v57 }
 0x735   :  { %v5450_v61 = vmul.f32 %v8598_v38, %v5448_v59 }
 0x737   :  { %v5451_v62 = vsel %vm5433_vm12, %v5448_v59, %v5450_v61 }
 0x738   :  { %5453 = vst.msk [vmem:[%s9412_s15] sm:$0x3] %vm5452_vm11, %v5451_v62 }
 0x739   :  { %5458 = vsyncpa [#allocation4], 1 }
 0x73a   :  { %5459 = vsyncpa [#allocation6], 1 }
 0x73b   :  { %5460 = vsyncpa [#allocation9], 1 }
 0x73c   :  { %5461 = vsyncpa [#allocation12], 1 }
 0x73d   :  { %5462 = vsyncpa [#allocation15], 1 }
 0x73e   :  { %5463 = vsyncpa [#allocation18], 1 }
 0x73f   :  { %5464 = vsyncpa [#allocation21], 1 }
 0x740   :  { %5465 = vsyncpa [#allocation24], 1 }

</bundles_post_ra>
